<compile_context>
chip_gen: v7x
topology: tpu7x:2x2x1
jax: 0.10.0
libtpu: 0.0.40
codegen_flags: <defaults>
</compile_context>

<pallas_src>
import functools
import math

import jax
import jax.numpy as jnp
from jax import lax
from jax.experimental import pallas as pl
from jax.experimental.pallas import tpu as pltpu

LANE = 128                       # output-channel tile (lane width)
MXU_DTYPE = jnp.float32          # set to jnp.bfloat16 on v6e/v7x for ~2x MXU/DMA rate
VMEM_LIMIT = 64 * 1024 * 1024    # explicit scoped-VMEM budget (safe on v5e/v6e/v7x)
BN_EPS = 1e-5


def _round_up(x, m):
    return ((x + m - 1) // m) * m


def _cparams(sem):
    return pltpu.CompilerParams(dimension_semantics=sem,
                                vmem_limit_bytes=VMEM_LIMIT)


# ---------------------------------------------------------------------------
# Fused conv kernel: conv(bias) [+ReLU] [+ per-channel sum/sumsq for BN]
# grid = (Cout_tiles, batch); in-kernel im2col over (kh, kw).
# ---------------------------------------------------------------------------
def _conv_kernel(x_ref, w_ref, b_ref, y_ref, *stat_refs,
                 kh_kw, out_hw, relu, want_stats):
    KH, KW = kh_kw
    Ho, Wo = out_hw
    M = Ho * Wo
    Cin = x_ref.shape[-1]
    TN = y_ref.shape[-1]

    acc = jnp.zeros((M, TN), jnp.float32)
    for kh in range(KH):
        for kw in range(KW):
            patch = x_ref[0, kh:kh + Ho, kw:kw + Wo, :].reshape(M, Cin)
            acc = acc + jnp.dot(patch.astype(MXU_DTYPE),
                                w_ref[kh, kw].astype(MXU_DTYPE),
                                preferred_element_type=jnp.float32)
    acc = acc + b_ref[...]

    if want_stats:
        sum_ref, sq_ref = stat_refs

        @pl.when(pl.program_id(1) == 0)
        def _init():
            sum_ref[...] = jnp.zeros_like(sum_ref)
            sq_ref[...] = jnp.zeros_like(sq_ref)

        sum_ref[...] += jnp.sum(acc, axis=0, keepdims=True)
        sq_ref[...] += jnp.sum(acc * acc, axis=0, keepdims=True)

    if relu:
        acc = jnp.maximum(acc, 0.0)
    y_ref[0] = acc


def conv2d_block(x_nhwc, w_packed, b_packed, *, relu, want_stats):
    N, H, W, Cin = x_nhwc.shape
    KH, KW, Cin_w, Cpad = w_packed.shape
    assert Cin_w == Cin and Cpad % LANE == 0
    Ho = H + 2 - KH + 1          # padding=1, stride=1 (as in the PyTorch module)
    Wo = W + 2 - KW + 1
    xp = jnp.pad(x_nhwc, ((0, 0), (1, 1), (1, 1), (0, 0)))
    Hp, Wp = H + 2, W + 2
    n_ct = Cpad // LANE
    M = Ho * Wo

    kernel = functools.partial(_conv_kernel, kh_kw=(KH, KW), out_hw=(Ho, Wo),
                               relu=relu, want_stats=want_stats)

    if want_stats:
        out_shape = (jax.ShapeDtypeStruct((N, M, Cpad), jnp.float32),
                     jax.ShapeDtypeStruct((1, Cpad), jnp.float32),
                     jax.ShapeDtypeStruct((1, Cpad), jnp.float32))
        out_specs = (pl.BlockSpec((1, M, LANE), lambda j, b: (b, 0, j)),
                     pl.BlockSpec((1, LANE), lambda j, b: (0, j)),
                     pl.BlockSpec((1, LANE), lambda j, b: (0, j)))
        sem = ("parallel", "arbitrary")   # batch axis accumulates the BN stats
    else:
        out_shape = jax.ShapeDtypeStruct((N, M, Cpad), jnp.float32)
        out_specs = pl.BlockSpec((1, M, LANE), lambda j, b: (b, 0, j))
        sem = ("parallel", "parallel")

    cost = pl.CostEstimate(
        flops=2 * N * M * Cpad * KH * KW * Cin,
        transcendentals=0,
        bytes_accessed=4 * (N * Hp * Wp * Cin + KH * KW * Cin * Cpad + N * M * Cpad))

    result = pl.pallas_call(
        kernel,
        grid=(n_ct, N),
        in_specs=[
            pl.BlockSpec((1, Hp, Wp, Cin), lambda j, b: (b, 0, 0, 0)),
            pl.BlockSpec((KH, KW, Cin, LANE), lambda j, b: (0, 0, 0, j)),
            pl.BlockSpec((1, LANE), lambda j, b: (0, j)),
        ],
        out_specs=out_specs,
        out_shape=out_shape,
        compiler_params=_cparams(sem),
        cost_estimate=cost,
    )(xp, w_packed, b_packed)

    if want_stats:
        y, s, sq = result
        return y, s, sq
    return result, None, None


# ---------------------------------------------------------------------------
# BN normalize + optional ReLU (used when a BN block is NOT followed by pool)
# ---------------------------------------------------------------------------
def _bn_act_kernel(y_ref, sum_ref, sq_ref, g_ref, bt_ref, o_ref, *, count, relu):
    inv_n = 1.0 / count
    mean = sum_ref[...] * inv_n
    var = jnp.maximum(sq_ref[...] * inv_n - mean * mean, 0.0)
    scale = g_ref[...] * lax.rsqrt(var + BN_EPS)
    shift = bt_ref[...] - mean * scale
    out = y_ref[0] * scale + shift
    if relu:
        out = jnp.maximum(out, 0.0)
    o_ref[0] = out


def bn_act(y_flat, s, sq, gamma, beta, *, count, relu):
    N, M, Cpad = y_flat.shape
    n_ct = Cpad // LANE
    vec_spec = pl.BlockSpec((1, LANE), lambda j, b: (0, j))
    return pl.pallas_call(
        functools.partial(_bn_act_kernel, count=float(count), relu=relu),
        grid=(n_ct, N),
        in_specs=[pl.BlockSpec((1, M, LANE), lambda j, b: (b, 0, j)),
                  vec_spec, vec_spec, vec_spec, vec_spec],
        out_specs=pl.BlockSpec((1, M, LANE), lambda j, b: (b, 0, j)),
        out_shape=jax.ShapeDtypeStruct((N, M, Cpad), jnp.float32),
        compiler_params=_cparams(("parallel", "parallel")),
    )(y_flat, s, sq, gamma, beta)


# ---------------------------------------------------------------------------
# Single-input 2x2 max-pool kernel, with optional fused BN-normalize + ReLU.
# The input is a FREE (metadata-only) reshape (N, Ho/2, 2, Wo/2, 2*C) of the
# flat conv output; the W-pair lives on the lane axis so no strided reads.
# ---------------------------------------------------------------------------
def _pool_kernel(*refs, bn, relu, count):
    if bn:
        y_ref, sum_ref, sq_ref, g_ref, bt_ref, o_ref = refs
    else:
        y_ref, o_ref = refs
    C = o_ref.shape[-1]
    a = y_ref[0, :, 0, :, 0:C]
    b = y_ref[0, :, 0, :, C:2 * C]
    c = y_ref[0, :, 1, :, 0:C]
    d = y_ref[0, :, 1, :, C:2 * C]
    if bn:
        inv_n = 1.0 / count
        mean = sum_ref[...] * inv_n
        var = jnp.maximum(sq_ref[...] * inv_n - mean * mean, 0.0)
        scale = g_ref[...] * lax.rsqrt(var + BN_EPS)
        shift = bt_ref[...] - mean * scale
        a = a * scale + shift
        b = b * scale + shift
        c = c * scale + shift
        d = d * scale + shift
    out = jnp.maximum(jnp.maximum(a, b), jnp.maximum(c, d))
    if relu:
        out = jnp.maximum(out, 0.0)
    o_ref[0] = out


def maxpool2x2_block(y_flat, Ho, Wo, *, bn=None, relu=False, count=1):
    N, M, Cpad = y_flat.shape
    assert M == Ho * Wo and Ho % 2 == 0 and Wo % 2 == 0
    Ho2, Wo2 = Ho // 2, Wo // 2
    y5 = y_flat.reshape(N, Ho2, 2, Wo2, 2 * Cpad)      # free reshape
    in_arrays = [y5]
    in_specs = [pl.BlockSpec((1, Ho2, 2, Wo2, 2 * Cpad),
                             lambda bi: (bi, 0, 0, 0, 0))]
    if bn is not None:
        s, sq, gamma, beta = bn
        in_arrays += [s, sq, gamma, beta]
        in_specs += [pl.BlockSpec((1, Cpad), lambda bi: (0, 0))] * 4
    return pl.pallas_call(
        functools.partial(_pool_kernel, bn=bn is not None, relu=relu,
                          count=float(count)),
        grid=(N,),
        in_specs=in_specs,
        out_specs=pl.BlockSpec((1, Ho2, Wo2, Cpad), lambda bi: (bi, 0, 0, 0)),
        out_shape=jax.ShapeDtypeStruct((N, Ho2, Wo2, Cpad), jnp.float32),
        compiler_params=_cparams(("parallel",)),
    )(*in_arrays)


# ---------------------------------------------------------------------------
# Fused linear kernel: matmul + bias + optional ReLU, gridded over lane-padded
# output-feature tiles.
# ---------------------------------------------------------------------------
def _linear_kernel(x_ref, w_ref, b_ref, o_ref, *, relu):
    acc = jnp.dot(x_ref[...].astype(MXU_DTYPE), w_ref[...].astype(MXU_DTYPE),
                  preferred_element_type=jnp.float32)
    acc = acc + b_ref[...]
    if relu:
        acc = jnp.maximum(acc, 0.0)
    o_ref[...] = acc


def linear_block(x2d, w_packed, b_packed, *, relu):
    Mb, K = x2d.shape
    K_w, Dpad = w_packed.shape
    assert K_w == K and Dpad % LANE == 0
    n_nt = Dpad // LANE
    cost = pl.CostEstimate(flops=2 * Mb * K * Dpad, transcendentals=0,
                           bytes_accessed=4 * (Mb * K + K * Dpad + Mb * Dpad))
    return pl.pallas_call(
        functools.partial(_linear_kernel, relu=relu),
        grid=(n_nt,),
        in_specs=[
            pl.BlockSpec((Mb, K), lambda j: (0, 0)),
            pl.BlockSpec((K, LANE), lambda j: (0, j)),
            pl.BlockSpec((1, LANE), lambda j: (0, j)),
        ],
        out_specs=pl.BlockSpec((Mb, LANE), lambda j: (0, j)),
        out_shape=jax.ShapeDtypeStruct((Mb, Dpad), jnp.float32),
        compiler_params=_cparams(("parallel",)),
        cost_estimate=cost,
    )(x2d, w_packed, b_packed)


# ---------------------------------------------------------------------------
# Standalone ReLU (fallback; normally fused into conv/linear/pool kernels)
# ---------------------------------------------------------------------------
def _relu_kernel(x_ref, o_ref):
    o_ref[...] = jnp.maximum(x_ref[...], 0.0)


def relu_standalone(x2d):
    vspec = pl.BlockSpec(memory_space=pltpu.MemorySpace.VMEM)
    return pl.pallas_call(
        _relu_kernel,
        out_shape=jax.ShapeDtypeStruct(x2d.shape, jnp.float32),
        in_specs=[vspec],
        out_specs=vspec,
    )(x2d)


# ---------------------------------------------------------------------------
# Parameter construction mirroring VGG_cifar10.__init__ (+ one-time packing:
# conv weights -> (KH,KW,Cin_carry,Cout_pad), linear -> (K_carry, Dout_pad),
# biases/gamma/beta -> (1, padded)).  Raw params kept for the JAX reference.
# ---------------------------------------------------------------------------
def build_layers(key, layers_desc, data_input_shape):
    cin_real, h, w = data_input_shape
    carry_c = _round_up(cin_real, 8)     # channel width the activation arrays carry
    carry_f = None                       # feature width after flatten / linears
    in_shape = (cin_real, h, w)
    layers = []
    for name, params in layers_desc:
        if name == 'conv':
            cout = params['out']
            bn = params.get('bn', False)
            kh, kw = params.get('stride', (3, 3))   # (mis)named 'stride' == kernel size
            cin, hh, ww = in_shape
            key, k1, k2 = jax.random.split(key, 3)
            fan_in, fan_out = cin * kh * kw, cout * kh * kw
            std = math.sqrt(2.0 / (fan_in + fan_out))           # xavier_normal_
            w_oihw = jax.random.normal(k1, (cout, cin, kh, kw), jnp.float32) * std
            bias = jax.random.normal(k2, (cout,), jnp.float32)  # init.normal_
            cpad = _round_up(cout, LANE)
            w_pack = jnp.zeros((kh, kw, carry_c, cpad), jnp.float32)
            w_pack = w_pack.at[:, :, :cin, :cout].set(jnp.transpose(w_oihw, (2, 3, 1, 0)))
            b_pack = jnp.zeros((1, cpad), jnp.float32).at[0, :cout].set(bias)
            layers.append(('conv', {'w': w_pack, 'b': b_pack, 'cout': cout,
                                    'w_raw': w_oihw, 'b_raw': bias}))
            carry_c = cpad
            in_shape = (cout, hh + 2 - kh + 1, ww + 2 - kw + 1)
            if bn:
                gamma = jnp.ones((cout,), jnp.float32)
                beta = jnp.zeros((cout,), jnp.float32)
                g_pack = jnp.zeros((1, cpad), jnp.float32).at[0, :cout].set(gamma)
                bt_pack = jnp.zeros((1, cpad), jnp.float32).at[0, :cout].set(beta)
                layers.append(('bn', {'gamma': g_pack, 'beta': bt_pack,
                                      'gamma_raw': gamma, 'beta_raw': beta}))
        elif name == 'relu':
            layers.append(('relu', {}))
        elif name == 'pool':
            cin, hh, ww = in_shape
            layers.append(('pool', {}))
            in_shape = (cin, hh // 2, ww // 2)
        elif name == 'flatten':
            layers.append(('flatten', {}))
            in_shape = (int(math.prod(in_shape)),)
            carry_f = in_shape[0]        # channels are sliced to real width at flatten
        elif name == 'linear':
            dout = params['out']
            (din,) = in_shape
            key, k1, k2 = jax.random.split(key, 3)
            std = math.sqrt(2.0 / (din + dout))                 # xavier_normal_
            w_lin = jax.random.normal(k1, (dout, din), jnp.float32) * std
            bias = jax.random.normal(k2, (dout,), jnp.float32)  # init.normal_
            dpad = _round_up(dout, LANE)
            kcar = carry_f if carry_f is not None else din
            w_pack = jnp.zeros((kcar, dpad), jnp.float32).at[:din, :dout].set(w_lin.T)
            b_pack = jnp.zeros((1, dpad), jnp.float32).at[0, :dout].set(bias)
            layers.append(('linear', {'w': w_pack, 'b': b_pack, 'dout': dout,
                                      'w_raw': w_lin, 'b_raw': bias}))
            in_shape = (dout,)
            carry_f = dpad
        else:
            raise Exception(f'layer {name} not implemented')
    return layers


# ---------------------------------------------------------------------------
# Peephole fusion plan: conv[+bn][+relu][+pool] and linear[+relu] blocks.
# ---------------------------------------------------------------------------
def make_plan(layers):
    plan, i, n = [], 0, len(layers)
    while i < n:
        name, p = layers[i]
        if name == 'conv':
            blk = {'conv': p, 'bn': None, 'relu': False, 'pool': False}
            j = i + 1
            if j < n and layers[j][0] == 'bn':
                blk['bn'] = layers[j][1]; j += 1
            if j < n and layers[j][0] == 'relu':
                blk['relu'] = True; j += 1
            if j < n and layers[j][0] == 'pool':
                blk['pool'] = True; j += 1
            plan.append(('conv_block', blk)); i = j
        elif name == 'linear':
            blk = {'linear': p, 'relu': False}
            j = i + 1
            if j < n and layers[j][0] == 'relu':
                blk['relu'] = True; j += 1
            plan.append(('linear_block', blk)); i = j
        else:
            plan.append((name, p)); i += 1
    return plan


# ---------------------------------------------------------------------------
# Forward (semantics of VGG_cifar10.forward, training-mode BatchNorm).
# TODO(synk): BatchNorm running_mean/running_var bookkeeping (a training side
# effect) is not modeled; forward output matches PyTorch training-mode BN.
# ---------------------------------------------------------------------------
def vgg_forward(x_nchw, layers):
    plan = make_plan(layers)
    h = jnp.transpose(x_nchw, (0, 2, 3, 1))          # NCHW -> NHWC
    c_real = x_nchw.shape[1]
    feat_real = None
    for kind, blk in plan:
        if kind == 'conv_block':
            p = blk['conv']
            carry_c = p['w'].shape[2]
            if h.shape[-1] < carry_c:                # zero-pad channels to packed width
                h = jnp.pad(h, ((0, 0), (0, 0), (0, 0), (0, carry_c - h.shape[-1])))
            N, H, W, _ = h.shape
            has_bn = blk['bn'] is not None
            y, s, sq = conv2d_block(h, p['w'], p['b'],
                                    relu=(blk['relu'] and not has_bn),
                                    want_stats=has_bn)
            KH, KW, _, Cpad = p['w'].shape
            Ho, Wo = H + 2 - KH + 1, W + 2 - KW + 1
            count = N * Ho * Wo
            if blk['pool']:
                bn_args = (s, sq, blk['bn']['gamma'], blk['bn']['beta']) if has_bn else None
                h = maxpool2x2_block(y, Ho, Wo, bn=bn_args,
                                     relu=(blk['relu'] and has_bn), count=count)
            else:
                if has_bn:
                    y = bn_act(y, s, sq, blk['bn']['gamma'], blk['bn']['beta'],
                               count=count, relu=blk['relu'])
                h = y.reshape(N, Ho, Wo, Cpad)
            c_real = p['cout']
        elif kind == 'linear_block':
            p = blk['linear']
            h = linear_block(h, p['w'], p['b'], relu=blk['relu'])
            feat_real = p['dout']
        elif kind == 'flatten':
            N, H, W, _ = h.shape
            h = h[..., :c_real]                      # drop padded channels
            # nn.Flatten(start_dim=1) flattens NCHW order -> transpose first.
            h = jnp.transpose(h, (0, 3, 1, 2)).reshape(N, c_real * H * W)
            feat_real = c_real * H * W
        elif kind == 'relu':                         # standalone (not fused)
            if h.ndim == 2:
                h = relu_standalone(h)
            else:
                N, H, W, C = h.shape
                h = relu_standalone(h.reshape(N * H * W, C)).reshape(N, H, W, C)
        elif kind == 'pool':                         # standalone (not fused)
            N, H, W, C = h.shape
            h = maxpool2x2_block(h.reshape(N, H * W, C), H, W)
        else:
            raise Exception(f'layer {kind} not implemented')
    if h.ndim == 2 and feat_real is not None and feat_real < h.shape[1]:
        h = h[:, :feat_real]                         # drop padded output features
    return h


# ---------------------------------------------------------------------------
# Pure-JAX reference (mirrors the PyTorch module, training-mode BN)
# ---------------------------------------------------------------------------
def reference_forward(x_nchw, layers):
    h = x_nchw
    for name, p in layers:
        if name == 'conv':
            h = lax.conv_general_dilated(
                h, p['w_raw'], window_strides=(1, 1), padding=((1, 1), (1, 1)),
                dimension_numbers=('NCHW', 'OIHW', 'NCHW'),
                precision=lax.Precision.HIGHEST)
            h = h + p['b_raw'][None, :, None, None]
        elif name == 'bn':
            mean = jnp.mean(h, axis=(0, 2, 3), keepdims=True)
            var = jnp.mean((h - mean) ** 2, axis=(0, 2, 3), keepdims=True)
            h = (h - mean) * lax.rsqrt(var + BN_EPS)
            h = h * p['gamma_raw'][None, :, None, None] + p['beta_raw'][None, :, None, None]
        elif name == 'relu':
            h = jnp.maximum(h, 0.0)
        elif name == 'pool':
            N, C, H, W = h.shape
            h = h.reshape(N, C, H // 2, 2, W // 2, 2).max(axis=(3, 5))
        elif name == 'flatten':
            h = h.reshape(h.shape[0], -1)
        elif name == 'linear':
            h = jnp.dot(h, p['w_raw'].T, precision=lax.Precision.HIGHEST) + p['b_raw']
    return h


if __name__ == "__main__":
    key = jax.random.PRNGKey(0)
    kx, kp = jax.random.split(key)

    layers_desc = [
        ('conv', {'out': 8, 'bn': True, 'stride': (3, 3)}),
        ('relu', {}),
        ('pool', {}),
        ('conv', {'out': 16}),
        ('relu', {}),
        ('pool', {}),
        ('flatten', {}),
        ('linear', {'out': 32}),
        ('relu', {}),
        ('linear', {'out': 10}),
    ]
    data_input_shape = (3, 16, 16)   # small CIFAR-like shape
    batch = 2

    layers = build_layers(kp, layers_desc, data_input_shape)
    x = jax.random.normal(kx, (batch,) + data_input_shape, jnp.float32)

    fwd = jax.jit(functools.partial(vgg_forward, layers=layers))
    out = jax.block_until_ready(fwd(x))

    assert out.shape == (batch, 10), out.shape
    assert bool(jnp.all(jnp.isfinite(out)))

    ref = reference_forward(x, layers)
    assert bool(jnp.allclose(out, ref, rtol=1e-2, atol=1e-2)), \
        float(jnp.max(jnp.abs(out - ref)))

    print("KERNEL_OK")
</pallas_src>

<mosaic_0001>
module attributes {stable_mosaic.version = 11 : i64} {
  func.func @_conv_kernel(%arg0: i32, %arg1: i32, %arg2: memref<1x18x18x8xf32, #tpu.memory_space<vmem>>, %arg3: memref<3x3x8x128xf32, #tpu.memory_space<vmem>>, %arg4: memref<1x128xf32, #tpu.memory_space<vmem>>, %arg5: memref<1x256x128xf32, #tpu.memory_space<vmem>>, %arg6: memref<1x128xf32, #tpu.memory_space<vmem>>, %arg7: memref<1x128xf32, #tpu.memory_space<vmem>>) attributes {dimension_semantics = [#tpu.dimension_semantics<parallel>, #tpu.dimension_semantics<arbitrary>], iteration_bounds = array<i64: 1, 2>, scalar_prefetch = 0 : i64, scratch_operands = 0 : i64, tpu.core_type = #tpu.core_type<tc>, window_params = [{transform_indices = @transform_0, window_bounds = array<i64: 1, 18, 18, 8>}, {transform_indices = @transform_1, window_bounds = array<i64: 3, 3, 8, 128>}, {transform_indices = @transform_2, window_bounds = array<i64: 1, 128>}, {transform_indices = @transform_3, window_bounds = array<i64: 1, 256, 128>}, {transform_indices = @transform_4, window_bounds = array<i64: 1, 128>}, {transform_indices = @transform_5, window_bounds = array<i64: 1, 128>}]} {
    %cst = arith.constant 0.000000e+00 : f32
    %0 = vector.broadcast %cst : f32 to vector<256x128xf32>
    %c0 = arith.constant 0 : index
    %c0_0 = arith.constant 0 : index
    %c0_1 = arith.constant 0 : index
    %c0_2 = arith.constant 0 : index
    %1 = vector.load %arg2[%c0, %c0_0, %c0_1, %c0_2] : memref<1x18x18x8xf32, #tpu.memory_space<vmem>>, vector<1x16x16x8xf32>
    %2 = vector.shape_cast %1 : vector<1x16x16x8xf32> to vector<16x16x8xf32>
    %3 = vector.shape_cast %2 : vector<16x16x8xf32> to vector<256x8xf32>
    %c0_3 = arith.constant 0 : index
    %c0_4 = arith.constant 0 : index
    %c0_5 = arith.constant 0 : index
    %c0_6 = arith.constant 0 : index
    %4 = vector.load %arg3[%c0_3, %c0_4, %c0_5, %c0_6] : memref<3x3x8x128xf32, #tpu.memory_space<vmem>>, vector<1x1x8x128xf32>
    %5 = vector.shape_cast %4 : vector<1x1x8x128xf32> to vector<8x128xf32>
    %cst_7 = arith.constant dense<0.000000e+00> : vector<256x128xf32>
    %6 = tpu.matmul %3, %5, %cst_7 {dimension_numbers = #tpu.dot_dimension_numbers<[1], [0], [0], [1], [0, 0, 1, 1], [], []>} : vector<256x8xf32>, vector<8x128xf32>, vector<256x128xf32> -> vector<256x128xf32>
    %7 = arith.addf %0, %6 : vector<256x128xf32>
    %c0_8 = arith.constant 0 : index
    %c0_9 = arith.constant 0 : index
    %c1 = arith.constant 1 : index
    %c0_10 = arith.constant 0 : index
    %8 = vector.load %arg2[%c0_8, %c0_9, %c1, %c0_10] : memref<1x18x18x8xf32, #tpu.memory_space<vmem>>, vector<1x16x16x8xf32>
    %9 = vector.shape_cast %8 : vector<1x16x16x8xf32> to vector<16x16x8xf32>
    %10 = vector.shape_cast %9 : vector<16x16x8xf32> to vector<256x8xf32>
    %c0_11 = arith.constant 0 : index
    %c1_12 = arith.constant 1 : index
    %c0_13 = arith.constant 0 : index
    %c0_14 = arith.constant 0 : index
    %11 = vector.load %arg3[%c0_11, %c1_12, %c0_13, %c0_14] : memref<3x3x8x128xf32, #tpu.memory_space<vmem>>, vector<1x1x8x128xf32>
    %12 = vector.shape_cast %11 : vector<1x1x8x128xf32> to vector<8x128xf32>
    %cst_15 = arith.constant dense<0.000000e+00> : vector<256x128xf32>
    %13 = tpu.matmul %10, %12, %cst_15 {dimension_numbers = #tpu.dot_dimension_numbers<[1], [0], [0], [1], [0, 0, 1, 1], [], []>} : vector<256x8xf32>, vector<8x128xf32>, vector<256x128xf32> -> vector<256x128xf32>
    %14 = arith.addf %7, %13 : vector<256x128xf32>
    %c0_16 = arith.constant 0 : index
    %c0_17 = arith.constant 0 : index
    %c2 = arith.constant 2 : index
    %c0_18 = arith.constant 0 : index
    %15 = vector.load %arg2[%c0_16, %c0_17, %c2, %c0_18] : memref<1x18x18x8xf32, #tpu.memory_space<vmem>>, vector<1x16x16x8xf32>
    %16 = vector.shape_cast %15 : vector<1x16x16x8xf32> to vector<16x16x8xf32>
    %17 = vector.shape_cast %16 : vector<16x16x8xf32> to vector<256x8xf32>
    %c0_19 = arith.constant 0 : index
    %c2_20 = arith.constant 2 : index
    %c0_21 = arith.constant 0 : index
    %c0_22 = arith.constant 0 : index
    %18 = vector.load %arg3[%c0_19, %c2_20, %c0_21, %c0_22] : memref<3x3x8x128xf32, #tpu.memory_space<vmem>>, vector<1x1x8x128xf32>
    %19 = vector.shape_cast %18 : vector<1x1x8x128xf32> to vector<8x128xf32>
    %cst_23 = arith.constant dense<0.000000e+00> : vector<256x128xf32>
    %20 = tpu.matmul %17, %19, %cst_23 {dimension_numbers = #tpu.dot_dimension_numbers<[1], [0], [0], [1], [0, 0, 1, 1], [], []>} : vector<256x8xf32>, vector<8x128xf32>, vector<256x128xf32> -> vector<256x128xf32>
    %21 = arith.addf %14, %20 : vector<256x128xf32>
    %c0_24 = arith.constant 0 : index
    %c1_25 = arith.constant 1 : index
    %c0_26 = arith.constant 0 : index
    %c0_27 = arith.constant 0 : index
    %22 = vector.load %arg2[%c0_24, %c1_25, %c0_26, %c0_27] : memref<1x18x18x8xf32, #tpu.memory_space<vmem>>, vector<1x16x16x8xf32>
    %23 = vector.shape_cast %22 : vector<1x16x16x8xf32> to vector<16x16x8xf32>
    %24 = vector.shape_cast %23 : vector<16x16x8xf32> to vector<256x8xf32>
    %c1_28 = arith.constant 1 : index
    %c0_29 = arith.constant 0 : index
    %c0_30 = arith.constant 0 : index
    %c0_31 = arith.constant 0 : index
    %25 = vector.load %arg3[%c1_28, %c0_29, %c0_30, %c0_31] : memref<3x3x8x128xf32, #tpu.memory_space<vmem>>, vector<1x1x8x128xf32>
    %26 = vector.shape_cast %25 : vector<1x1x8x128xf32> to vector<8x128xf32>
    %cst_32 = arith.constant dense<0.000000e+00> : vector<256x128xf32>
    %27 = tpu.matmul %24, %26, %cst_32 {dimension_numbers = #tpu.dot_dimension_numbers<[1], [0], [0], [1], [0, 0, 1, 1], [], []>} : vector<256x8xf32>, vector<8x128xf32>, vector<256x128xf32> -> vector<256x128xf32>
    %28 = arith.addf %21, %27 : vector<256x128xf32>
    %c0_33 = arith.constant 0 : index
    %c1_34 = arith.constant 1 : index
    %c1_35 = arith.constant 1 : index
    %c0_36 = arith.constant 0 : index
    %29 = vector.load %arg2[%c0_33, %c1_34, %c1_35, %c0_36] : memref<1x18x18x8xf32, #tpu.memory_space<vmem>>, vector<1x16x16x8xf32>
    %30 = vector.shape_cast %29 : vector<1x16x16x8xf32> to vector<16x16x8xf32>
    %31 = vector.shape_cast %30 : vector<16x16x8xf32> to vector<256x8xf32>
    %c1_37 = arith.constant 1 : index
    %c1_38 = arith.constant 1 : index
    %c0_39 = arith.constant 0 : index
    %c0_40 = arith.constant 0 : index
    %32 = vector.load %arg3[%c1_37, %c1_38, %c0_39, %c0_40] : memref<3x3x8x128xf32, #tpu.memory_space<vmem>>, vector<1x1x8x128xf32>
    %33 = vector.shape_cast %32 : vector<1x1x8x128xf32> to vector<8x128xf32>
    %cst_41 = arith.constant dense<0.000000e+00> : vector<256x128xf32>
    %34 = tpu.matmul %31, %33, %cst_41 {dimension_numbers = #tpu.dot_dimension_numbers<[1], [0], [0], [1], [0, 0, 1, 1], [], []>} : vector<256x8xf32>, vector<8x128xf32>, vector<256x128xf32> -> vector<256x128xf32>
    %35 = arith.addf %28, %34 : vector<256x128xf32>
    %c0_42 = arith.constant 0 : index
    %c1_43 = arith.constant 1 : index
    %c2_44 = arith.constant 2 : index
    %c0_45 = arith.constant 0 : index
    %36 = vector.load %arg2[%c0_42, %c1_43, %c2_44, %c0_45] : memref<1x18x18x8xf32, #tpu.memory_space<vmem>>, vector<1x16x16x8xf32>
    %37 = vector.shape_cast %36 : vector<1x16x16x8xf32> to vector<16x16x8xf32>
    %38 = vector.shape_cast %37 : vector<16x16x8xf32> to vector<256x8xf32>
    %c1_46 = arith.constant 1 : index
    %c2_47 = arith.constant 2 : index
    %c0_48 = arith.constant 0 : index
    %c0_49 = arith.constant 0 : index
    %39 = vector.load %arg3[%c1_46, %c2_47, %c0_48, %c0_49] : memref<3x3x8x128xf32, #tpu.memory_space<vmem>>, vector<1x1x8x128xf32>
    %40 = vector.shape_cast %39 : vector<1x1x8x128xf32> to vector<8x128xf32>
    %cst_50 = arith.constant dense<0.000000e+00> : vector<256x128xf32>
    %41 = tpu.matmul %38, %40, %cst_50 {dimension_numbers = #tpu.dot_dimension_numbers<[1], [0], [0], [1], [0, 0, 1, 1], [], []>} : vector<256x8xf32>, vector<8x128xf32>, vector<256x128xf32> -> vector<256x128xf32>
    %42 = arith.addf %35, %41 : vector<256x128xf32>
    %c0_51 = arith.constant 0 : index
    %c2_52 = arith.constant 2 : index
    %c0_53 = arith.constant 0 : index
    %c0_54 = arith.constant 0 : index
    %43 = vector.load %arg2[%c0_51, %c2_52, %c0_53, %c0_54] : memref<1x18x18x8xf32, #tpu.memory_space<vmem>>, vector<1x16x16x8xf32>
    %44 = vector.shape_cast %43 : vector<1x16x16x8xf32> to vector<16x16x8xf32>
    %45 = vector.shape_cast %44 : vector<16x16x8xf32> to vector<256x8xf32>
    %c2_55 = arith.constant 2 : index
    %c0_56 = arith.constant 0 : index
    %c0_57 = arith.constant 0 : index
    %c0_58 = arith.constant 0 : index
    %46 = vector.load %arg3[%c2_55, %c0_56, %c0_57, %c0_58] : memref<3x3x8x128xf32, #tpu.memory_space<vmem>>, vector<1x1x8x128xf32>
    %47 = vector.shape_cast %46 : vector<1x1x8x128xf32> to vector<8x128xf32>
    %cst_59 = arith.constant dense<0.000000e+00> : vector<256x128xf32>
    %48 = tpu.matmul %45, %47, %cst_59 {dimension_numbers = #tpu.dot_dimension_numbers<[1], [0], [0], [1], [0, 0, 1, 1], [], []>} : vector<256x8xf32>, vector<8x128xf32>, vector<256x128xf32> -> vector<256x128xf32>
    %49 = arith.addf %42, %48 : vector<256x128xf32>
    %c0_60 = arith.constant 0 : index
    %c2_61 = arith.constant 2 : index
    %c1_62 = arith.constant 1 : index
    %c0_63 = arith.constant 0 : index
    %50 = vector.load %arg2[%c0_60, %c2_61, %c1_62, %c0_63] : memref<1x18x18x8xf32, #tpu.memory_space<vmem>>, vector<1x16x16x8xf32>
    %51 = vector.shape_cast %50 : vector<1x16x16x8xf32> to vector<16x16x8xf32>
    %52 = vector.shape_cast %51 : vector<16x16x8xf32> to vector<256x8xf32>
    %c2_64 = arith.constant 2 : index
    %c1_65 = arith.constant 1 : index
    %c0_66 = arith.constant 0 : index
    %c0_67 = arith.constant 0 : index
    %53 = vector.load %arg3[%c2_64, %c1_65, %c0_66, %c0_67] : memref<3x3x8x128xf32, #tpu.memory_space<vmem>>, vector<1x1x8x128xf32>
    %54 = vector.shape_cast %53 : vector<1x1x8x128xf32> to vector<8x128xf32>
    %cst_68 = arith.constant dense<0.000000e+00> : vector<256x128xf32>
    %55 = tpu.matmul %52, %54, %cst_68 {dimension_numbers = #tpu.dot_dimension_numbers<[1], [0], [0], [1], [0, 0, 1, 1], [], []>} : vector<256x8xf32>, vector<8x128xf32>, vector<256x128xf32> -> vector<256x128xf32>
    %56 = arith.addf %49, %55 : vector<256x128xf32>
    %c0_69 = arith.constant 0 : index
    %c2_70 = arith.constant 2 : index
    %c2_71 = arith.constant 2 : index
    %c0_72 = arith.constant 0 : index
    %57 = vector.load %arg2[%c0_69, %c2_70, %c2_71, %c0_72] : memref<1x18x18x8xf32, #tpu.memory_space<vmem>>, vector<1x16x16x8xf32>
    %58 = vector.shape_cast %57 : vector<1x16x16x8xf32> to vector<16x16x8xf32>
    %59 = vector.shape_cast %58 : vector<16x16x8xf32> to vector<256x8xf32>
    %c2_73 = arith.constant 2 : index
    %c2_74 = arith.constant 2 : index
    %c0_75 = arith.constant 0 : index
    %c0_76 = arith.constant 0 : index
    %60 = vector.load %arg3[%c2_73, %c2_74, %c0_75, %c0_76] : memref<3x3x8x128xf32, #tpu.memory_space<vmem>>, vector<1x1x8x128xf32>
    %61 = vector.shape_cast %60 : vector<1x1x8x128xf32> to vector<8x128xf32>
    %cst_77 = arith.constant dense<0.000000e+00> : vector<256x128xf32>
    %62 = tpu.matmul %59, %61, %cst_77 {dimension_numbers = #tpu.dot_dimension_numbers<[1], [0], [0], [1], [0, 0, 1, 1], [], []>} : vector<256x8xf32>, vector<8x128xf32>, vector<256x128xf32> -> vector<256x128xf32>
    %63 = arith.addf %56, %62 : vector<256x128xf32>
    %c0_78 = arith.constant 0 : index
    %c0_79 = arith.constant 0 : index
    %64 = vector.load %arg4[%c0_78, %c0_79] : memref<1x128xf32, #tpu.memory_space<vmem>>, vector<1x128xf32>
    %65 = vector.broadcast %64 : vector<1x128xf32> to vector<256x128xf32>
    %66 = arith.addf %63, %65 : vector<256x128xf32>
    %c0_i32 = arith.constant 0 : i32
    %67 = arith.cmpi eq, %arg1, %c0_i32 : i32
    %68 = arith.extui %67 : i1 to i32
    %c0_i32_80 = arith.constant 0 : i32
    %69 = arith.cmpi ne, %68, %c0_i32_80 : i32
    scf.if %69 {
      %cst_94 = arith.constant 0.000000e+00 : f32
      %84 = vector.broadcast %cst_94 : f32 to vector<1x128xf32>
      %c0_95 = arith.constant 0 : index
      %c0_96 = arith.constant 0 : index
      %85 = vector.load %arg6[%c0_95, %c0_96] : memref<1x128xf32, #tpu.memory_space<vmem>>, vector<1x128xf32>
      tpu.vector_store %arg6[%c0_95, %c0_96], %84 {strides = array<i32>} : memref<1x128xf32, #tpu.memory_space<vmem>>, vector<1x128xf32>,
      %cst_97 = arith.constant 0.000000e+00 : f32
      %86 = vector.broadcast %cst_97 : f32 to vector<1x128xf32>
      %c0_98 = arith.constant 0 : index
      %c0_99 = arith.constant 0 : index
      %87 = vector.load %arg7[%c0_98, %c0_99] : memref<1x128xf32, #tpu.memory_space<vmem>>, vector<1x128xf32>
      tpu.vector_store %arg7[%c0_98, %c0_99], %86 {strides = array<i32>} : memref<1x128xf32, #tpu.memory_space<vmem>>, vector<1x128xf32>,
    } else {
    }
    %c0_81 = arith.constant 0 : index
    %c0_82 = arith.constant 0 : index
    %70 = vector.load %arg6[%c0_81, %c0_82] : memref<1x128xf32, #tpu.memory_space<vmem>>, vector<1x128xf32>
    %cst_83 = arith.constant dense<0.000000e+00> : vector<128xf32>
    %71 = vector.multi_reduction <add>, %66, %cst_83 [0] : vector<256x128xf32> to vector<128xf32>
    %72 = vector.shape_cast %71 : vector<128xf32> to vector<1x128xf32>
    %73 = arith.addf %70, %72 : vector<1x128xf32>
    %c0_84 = arith.constant 0 : index
    %c0_85 = arith.constant 0 : index
    %74 = vector.load %arg6[%c0_84, %c0_85] : memref<1x128xf32, #tpu.memory_space<vmem>>, vector<1x128xf32>
    tpu.vector_store %arg6[%c0_84, %c0_85], %73 {strides = array<i32>} : memref<1x128xf32, #tpu.memory_space<vmem>>, vector<1x128xf32>,
    %c0_86 = arith.constant 0 : index
    %c0_87 = arith.constant 0 : index
    %75 = vector.load %arg7[%c0_86, %c0_87] : memref<1x128xf32, #tpu.memory_space<vmem>>, vector<1x128xf32>
    %76 = arith.mulf %66, %66 : vector<256x128xf32>
    %cst_88 = arith.constant dense<0.000000e+00> : vector<128xf32>
    %77 = vector.multi_reduction <add>, %76, %cst_88 [0] : vector<256x128xf32> to vector<128xf32>
    %78 = vector.shape_cast %77 : vector<128xf32> to vector<1x128xf32>
    %79 = arith.addf %75, %78 : vector<1x128xf32>
    %c0_89 = arith.constant 0 : index
    %c0_90 = arith.constant 0 : index
    %80 = vector.load %arg7[%c0_89, %c0_90] : memref<1x128xf32, #tpu.memory_space<vmem>>, vector<1x128xf32>
    tpu.vector_store %arg7[%c0_89, %c0_90], %79 {strides = array<i32>} : memref<1x128xf32, #tpu.memory_space<vmem>>, vector<1x128xf32>,
    %c0_91 = arith.constant 0 : index
    %c0_92 = arith.constant 0 : index
    %c0_93 = arith.constant 0 : index
    %81 = vector.load %arg5[%c0_91, %c0_92, %c0_93] : memref<1x256x128xf32, #tpu.memory_space<vmem>>, vector<1x256x128xf32>
    %82 = vector.shape_cast %81 : vector<1x256x128xf32> to vector<256x128xf32>
    %83 = vector.shape_cast %66 : vector<256x128xf32> to vector<1x256x128xf32>
    tpu.vector_store %arg5[%c0_91, %c0_92, %c0_93], %83 {strides = array<i32>} : memref<1x256x128xf32, #tpu.memory_space<vmem>>, vector<1x256x128xf32>,
    return
  }
  func.func @transform_0(%arg0: i32, %arg1: i32) -> (i32, i32, i32, i32) {
    %c0_i32 = arith.constant 0 : i32
    %c0_i32_0 = arith.constant 0 : i32
    %c0_i32_1 = arith.constant 0 : i32
    %c0_i32_2 = arith.constant 0 : i32
    return %arg1, %c0_i32, %c0_i32_0, %c0_i32_1 : i32, i32, i32, i32
  }
  func.func @transform_1(%arg0: i32, %arg1: i32) -> (i32, i32, i32, i32) {
    %c0_i32 = arith.constant 0 : i32
    %c0_i32_0 = arith.constant 0 : i32
    %c0_i32_1 = arith.constant 0 : i32
    %c0_i32_2 = arith.constant 0 : i32
    return %c0_i32, %c0_i32_0, %c0_i32_1, %arg0 : i32, i32, i32, i32
  }
  func.func @transform_2(%arg0: i32, %arg1: i32) -> (i32, i32) {
    %c0_i32 = arith.constant 0 : i32
    %c0_i32_0 = arith.constant 0 : i32
    return %c0_i32, %arg0 : i32, i32
  }
  func.func @transform_3(%arg0: i32, %arg1: i32) -> (i32, i32, i32) {
    %c0_i32 = arith.constant 0 : i32
    %c0_i32_0 = arith.constant 0 : i32
    return %arg1, %c0_i32, %arg0 : i32, i32, i32
  }
  func.func @transform_4(%arg0: i32, %arg1: i32) -> (i32, i32) {
    %c0_i32 = arith.constant 0 : i32
    %c0_i32_0 = arith.constant 0 : i32
    return %c0_i32, %arg0 : i32, i32
  }
  func.func @transform_5(%arg0: i32, %arg1: i32) -> (i32, i32) {
    %c0_i32 = arith.constant 0 : i32
    %c0_i32_0 = arith.constant 0 : i32
    return %c0_i32, %arg0 : i32, i32
  }
}

module attributes {stable_mosaic.version = 11 : i64} {
  func.func @_pool_kernel(%arg0: i32, %arg1: memref<1x4x2x4x256xf32, #tpu.memory_space<vmem>>, %arg2: memref<1x4x4x128xf32, #tpu.memory_space<vmem>>) attributes {dimension_semantics = [#tpu.dimension_semantics<parallel>], iteration_bounds = array<i64: 2>, scalar_prefetch = 0 : i64, scratch_operands = 0 : i64, tpu.core_type = #tpu.core_type<tc>, window_params = [{transform_indices = @transform_0, window_bounds = array<i64: 1, 4, 2, 4, 256>}, {transform_indices = @transform_1, window_bounds = array<i64: 1, 4, 4, 128>}]} {
    %c0 = arith.constant 0 : index
    %c0_0 = arith.constant 0 : index
    %c0_1 = arith.constant 0 : index
    %c0_2 = arith.constant 0 : index
    %c0_3 = arith.constant 0 : index
    %0 = vector.load %arg1[%c0, %c0_0, %c0_1, %c0_2, %c0_3] : memref<1x4x2x4x256xf32, #tpu.memory_space<vmem>>, vector<1x4x1x4x128xf32>
    %1 = vector.shape_cast %0 : vector<1x4x1x4x128xf32> to vector<4x4x128xf32>
    %c0_4 = arith.constant 0 : index
    %c0_5 = arith.constant 0 : index
    %c0_6 = arith.constant 0 : index
    %c0_7 = arith.constant 0 : index
    %c128 = arith.constant 128 : index
    %2 = vector.load %arg1[%c0_4, %c0_5, %c0_6, %c0_7, %c128] : memref<1x4x2x4x256xf32, #tpu.memory_space<vmem>>, vector<1x4x1x4x128xf32>
    %3 = vector.shape_cast %2 : vector<1x4x1x4x128xf32> to vector<4x4x128xf32>
    %c0_8 = arith.constant 0 : index
    %c0_9 = arith.constant 0 : index
    %c1 = arith.constant 1 : index
    %c0_10 = arith.constant 0 : index
    %c0_11 = arith.constant 0 : index
    %4 = vector.load %arg1[%c0_8, %c0_9, %c1, %c0_10, %c0_11] : memref<1x4x2x4x256xf32, #tpu.memory_space<vmem>>, vector<1x4x1x4x128xf32>
    %5 = vector.shape_cast %4 : vector<1x4x1x4x128xf32> to vector<4x4x128xf32>
    %c0_12 = arith.constant 0 : index
    %c0_13 = arith.constant 0 : index
    %c1_14 = arith.constant 1 : index
    %c0_15 = arith.constant 0 : index
    %c128_16 = arith.constant 128 : index
    %6 = vector.load %arg1[%c0_12, %c0_13, %c1_14, %c0_15, %c128_16] : memref<1x4x2x4x256xf32, #tpu.memory_space<vmem>>, vector<1x4x1x4x128xf32>
    %7 = vector.shape_cast %6 : vector<1x4x1x4x128xf32> to vector<4x4x128xf32>
    %8 = arith.maximumf %1, %3 : vector<4x4x128xf32>
    %9 = arith.maximumf %5, %7 : vector<4x4x128xf32>
    %10 = arith.maximumf %8, %9 : vector<4x4x128xf32>
    %c0_17 = arith.constant 0 : index
    %c0_18 = arith.constant 0 : index
    %c0_19 = arith.constant 0 : index
    %c0_20 = arith.constant 0 : index
    %11 = vector.load %arg2[%c0_17, %c0_18, %c0_19, %c0_20] : memref<1x4x4x128xf32, #tpu.memory_space<vmem>>, vector<1x4x4x128xf32>
    %12 = vector.shape_cast %11 : vector<1x4x4x128xf32> to vector<4x4x128xf32>
    %13 = vector.shape_cast %10 : vector<4x4x128xf32> to vector<1x4x4x128xf32>
    tpu.vector_store %arg2[%c0_17, %c0_18, %c0_19, %c0_20], %13 {strides = array<i32>} : memref<1x4x4x128xf32, #tpu.memory_space<vmem>>, vector<1x4x4x128xf32>,
    return
  }
  func.func @transform_0(%arg0: i32) -> (i32, i32, i32, i32, i32) {
    %c0_i32 = arith.constant 0 : i32
    %c0_i32_0 = arith.constant 0 : i32
    %c0_i32_1 = arith.constant 0 : i32
    %c0_i32_2 = arith.constant 0 : i32
    %c0_i32_3 = arith.constant 0 : i32
    return %arg0, %c0_i32, %c0_i32_0, %c0_i32_1, %c0_i32_2 : i32, i32, i32, i32, i32
  }
  func.func @transform_1(%arg0: i32) -> (i32, i32, i32, i32) {
    %c0_i32 = arith.constant 0 : i32
    %c0_i32_0 = arith.constant 0 : i32
    %c0_i32_1 = arith.constant 0 : i32
    %c0_i32_2 = arith.constant 0 : i32
    return %arg0, %c0_i32, %c0_i32_0, %c0_i32_1 : i32, i32, i32, i32
  }
}

module attributes {stable_mosaic.version = 11 : i64} {
  func.func @_pool_kernel(%arg0: i32, %arg1: memref<1x8x2x8x256xf32, #tpu.memory_space<vmem>>, %arg2: memref<1x128xf32, #tpu.memory_space<vmem>>, %arg3: memref<1x128xf32, #tpu.memory_space<vmem>>, %arg4: memref<1x128xf32, #tpu.memory_space<vmem>>, %arg5: memref<1x128xf32, #tpu.memory_space<vmem>>, %arg6: memref<1x8x8x128xf32, #tpu.memory_space<vmem>>) attributes {dimension_semantics = [#tpu.dimension_semantics<parallel>], iteration_bounds = array<i64: 2>, scalar_prefetch = 0 : i64, scratch_operands = 0 : i64, tpu.core_type = #tpu.core_type<tc>, window_params = [{transform_indices = @transform_0, window_bounds = array<i64: 1, 8, 2, 8, 256>}, {pipeline_mode = #tpu.pipeline_mode<synchronous>, transform_indices = @transform_1, window_bounds = array<i64: 1, 128>}, {pipeline_mode = #tpu.pipeline_mode<synchronous>, transform_indices = @transform_2, window_bounds = array<i64: 1, 128>}, {pipeline_mode = #tpu.pipeline_mode<synchronous>, transform_indices = @transform_3, window_bounds = array<i64: 1, 128>}, {pipeline_mode = #tpu.pipeline_mode<synchronous>, transform_indices = @transform_4, window_bounds = array<i64: 1, 128>}, {transform_indices = @transform_5, window_bounds = array<i64: 1, 8, 8, 128>}]} {
    %c0 = arith.constant 0 : index
    %c0_0 = arith.constant 0 : index
    %c0_1 = arith.constant 0 : index
    %c0_2 = arith.constant 0 : index
    %c0_3 = arith.constant 0 : index
    %0 = vector.load %arg1[%c0, %c0_0, %c0_1, %c0_2, %c0_3] : memref<1x8x2x8x256xf32, #tpu.memory_space<vmem>>, vector<1x8x1x8x128xf32>
    %1 = vector.shape_cast %0 : vector<1x8x1x8x128xf32> to vector<8x8x128xf32>
    %c0_4 = arith.constant 0 : index
    %c0_5 = arith.constant 0 : index
    %c0_6 = arith.constant 0 : index
    %c0_7 = arith.constant 0 : index
    %c128 = arith.constant 128 : index
    %2 = vector.load %arg1[%c0_4, %c0_5, %c0_6, %c0_7, %c128] : memref<1x8x2x8x256xf32, #tpu.memory_space<vmem>>, vector<1x8x1x8x128xf32>
    %3 = vector.shape_cast %2 : vector<1x8x1x8x128xf32> to vector<8x8x128xf32>
    %c0_8 = arith.constant 0 : index
    %c0_9 = arith.constant 0 : index
    %c1 = arith.constant 1 : index
    %c0_10 = arith.constant 0 : index
    %c0_11 = arith.constant 0 : index
    %4 = vector.load %arg1[%c0_8, %c0_9, %c1, %c0_10, %c0_11] : memref<1x8x2x8x256xf32, #tpu.memory_space<vmem>>, vector<1x8x1x8x128xf32>
    %5 = vector.shape_cast %4 : vector<1x8x1x8x128xf32> to vector<8x8x128xf32>
    %c0_12 = arith.constant 0 : index
    %c0_13 = arith.constant 0 : index
    %c1_14 = arith.constant 1 : index
    %c0_15 = arith.constant 0 : index
    %c128_16 = arith.constant 128 : index
    %6 = vector.load %arg1[%c0_12, %c0_13, %c1_14, %c0_15, %c128_16] : memref<1x8x2x8x256xf32, #tpu.memory_space<vmem>>, vector<1x8x1x8x128xf32>
    %7 = vector.shape_cast %6 : vector<1x8x1x8x128xf32> to vector<8x8x128xf32>
    %c0_17 = arith.constant 0 : index
    %c0_18 = arith.constant 0 : index
    %8 = vector.load %arg2[%c0_17, %c0_18] : memref<1x128xf32, #tpu.memory_space<vmem>>, vector<1x128xf32>
    %cst = arith.constant 0.001953125 : f32
    %9 = vector.broadcast %cst : f32 to vector<1x128xf32>
    %10 = arith.mulf %8, %9 : vector<1x128xf32>
    %c0_19 = arith.constant 0 : index
    %c0_20 = arith.constant 0 : index
    %11 = vector.load %arg3[%c0_19, %c0_20] : memref<1x128xf32, #tpu.memory_space<vmem>>, vector<1x128xf32>
    %cst_21 = arith.constant 0.001953125 : f32
    %12 = vector.broadcast %cst_21 : f32 to vector<1x128xf32>
    %13 = arith.mulf %11, %12 : vector<1x128xf32>
    %14 = arith.mulf %10, %10 : vector<1x128xf32>
    %15 = arith.subf %13, %14 : vector<1x128xf32>
    %cst_22 = arith.constant 0.000000e+00 : f32
    %16 = vector.broadcast %cst_22 : f32 to vector<1x128xf32>
    %17 = arith.maximumf %15, %16 : vector<1x128xf32>
    %c0_23 = arith.constant 0 : index
    %c0_24 = arith.constant 0 : index
    %18 = vector.load %arg4[%c0_23, %c0_24] : memref<1x128xf32, #tpu.memory_space<vmem>>, vector<1x128xf32>
    %cst_25 = arith.constant 9.99999974E-6 : f32
    %19 = vector.broadcast %cst_25 : f32 to vector<1x128xf32>
    %20 = arith.addf %17, %19 : vector<1x128xf32>
    %21 = math.rsqrt %20 : vector<1x128xf32>
    %22 = arith.mulf %18, %21 : vector<1x128xf32>
    %c0_26 = arith.constant 0 : index
    %c0_27 = arith.constant 0 : index
    %23 = vector.load %arg5[%c0_26, %c0_27] : memref<1x128xf32, #tpu.memory_space<vmem>>, vector<1x128xf32>
    %24 = arith.mulf %10, %22 : vector<1x128xf32>
    %25 = arith.subf %23, %24 : vector<1x128xf32>
    %26 = vector.shape_cast %22 : vector<1x128xf32> to vector<1x1x128xf32>
    %27 = vector.broadcast %26 : vector<1x1x128xf32> to vector<8x8x128xf32>
    %28 = arith.mulf %1, %27 : vector<8x8x128xf32>
    %29 = vector.shape_cast %25 : vector<1x128xf32> to vector<1x1x128xf32>
    %30 = vector.broadcast %29 : vector<1x1x128xf32> to vector<8x8x128xf32>
    %31 = arith.addf %28, %30 : vector<8x8x128xf32>
    %32 = vector.shape_cast %22 : vector<1x128xf32> to vector<1x1x128xf32>
    %33 = vector.broadcast %32 : vector<1x1x128xf32> to vector<8x8x128xf32>
    %34 = arith.mulf %3, %33 : vector<8x8x128xf32>
    %35 = vector.shape_cast %25 : vector<1x128xf32> to vector<1x1x128xf32>
    %36 = vector.broadcast %35 : vector<1x1x128xf32> to vector<8x8x128xf32>
    %37 = arith.addf %34, %36 : vector<8x8x128xf32>
    %38 = vector.shape_cast %22 : vector<1x128xf32> to vector<1x1x128xf32>
    %39 = vector.broadcast %38 : vector<1x1x128xf32> to vector<8x8x128xf32>
    %40 = arith.mulf %5, %39 : vector<8x8x128xf32>
    %41 = vector.shape_cast %25 : vector<1x128xf32> to vector<1x1x128xf32>
    %42 = vector.broadcast %41 : vector<1x1x128xf32> to vector<8x8x128xf32>
    %43 = arith.addf %40, %42 : vector<8x8x128xf32>
    %44 = vector.shape_cast %22 : vector<1x128xf32> to vector<1x1x128xf32>
    %45 = vector.broadcast %44 : vector<1x1x128xf32> to vector<8x8x128xf32>
    %46 = arith.mulf %7, %45 : vector<8x8x128xf32>
    %47 = vector.shape_cast %25 : vector<1x128xf32> to vector<1x1x128xf32>
    %48 = vector.broadcast %47 : vector<1x1x128xf32> to vector<8x8x128xf32>
    %49 = arith.addf %46, %48 : vector<8x8x128xf32>
    %50 = arith.maximumf %31, %37 : vector<8x8x128xf32>
    %51 = arith.maximumf %43, %49 : vector<8x8x128xf32>
    %52 = arith.maximumf %50, %51 : vector<8x8x128xf32>
    %cst_28 = arith.constant 0.000000e+00 : f32
    %53 = vector.broadcast %cst_28 : f32 to vector<8x8x128xf32>
    %54 = arith.maximumf %52, %53 : vector<8x8x128xf32>
    %c0_29 = arith.constant 0 : index
    %c0_30 = arith.constant 0 : index
    %c0_31 = arith.constant 0 : index
    %c0_32 = arith.constant 0 : index
    %55 = vector.load %arg6[%c0_29, %c0_30, %c0_31, %c0_32] : memref<1x8x8x128xf32, #tpu.memory_space<vmem>>, vector<1x8x8x128xf32>
    %56 = vector.shape_cast %55 : vector<1x8x8x128xf32> to vector<8x8x128xf32>
    %57 = vector.shape_cast %54 : vector<8x8x128xf32> to vector<1x8x8x128xf32>
    tpu.vector_store %arg6[%c0_29, %c0_30, %c0_31, %c0_32], %57 {strides = array<i32>} : memref<1x8x8x128xf32, #tpu.memory_space<vmem>>, vector<1x8x8x128xf32>,
    return
  }
  func.func @transform_0(%arg0: i32) -> (i32, i32, i32, i32, i32) {
    %c0_i32 = arith.constant 0 : i32
    %c0_i32_0 = arith.constant 0 : i32
    %c0_i32_1 = arith.constant 0 : i32
    %c0_i32_2 = arith.constant 0 : i32
    %c0_i32_3 = arith.constant 0 : i32
    return %arg0, %c0_i32, %c0_i32_0, %c0_i32_1, %c0_i32_2 : i32, i32, i32, i32, i32
  }
  func.func @transform_1(%arg0: i32) -> (i32, i32) {
    %c0_i32 = arith.constant 0 : i32
    %c0_i32_0 = arith.constant 0 : i32
    %c0_i32_1 = arith.constant 0 : i32
    return %c0_i32, %c0_i32_0 : i32, i32
  }
  func.func @transform_2(%arg0: i32) -> (i32, i32) {
    %c0_i32 = arith.constant 0 : i32
    %c0_i32_0 = arith.constant 0 : i32
    %c0_i32_1 = arith.constant 0 : i32
    return %c0_i32, %c0_i32_0 : i32, i32
  }
  func.func @transform_3(%arg0: i32) -> (i32, i32) {
    %c0_i32 = arith.constant 0 : i32
    %c0_i32_0 = arith.constant 0 : i32
    %c0_i32_1 = arith.constant 0 : i32
    return %c0_i32, %c0_i32_0 : i32, i32
  }
  func.func @transform_4(%arg0: i32) -> (i32, i32) {
    %c0_i32 = arith.constant 0 : i32
    %c0_i32_0 = arith.constant 0 : i32
    %c0_i32_1 = arith.constant 0 : i32
    return %c0_i32, %c0_i32_0 : i32, i32
  }
  func.func @transform_5(%arg0: i32) -> (i32, i32, i32, i32) {
    %c0_i32 = arith.constant 0 : i32
    %c0_i32_0 = arith.constant 0 : i32
    %c0_i32_1 = arith.constant 0 : i32
    %c0_i32_2 = arith.constant 0 : i32
    return %arg0, %c0_i32, %c0_i32_0, %c0_i32_1 : i32, i32, i32, i32
  }
}

module attributes {stable_mosaic.version = 11 : i64} {
  func.func @_conv_kernel(%arg0: i32, %arg1: i32, %arg2: memref<1x10x10x128xf32, #tpu.memory_space<vmem>>, %arg3: memref<3x3x128x128xf32, #tpu.memory_space<vmem>>, %arg4: memref<1x128xf32, #tpu.memory_space<vmem>>, %arg5: memref<1x64x128xf32, #tpu.memory_space<vmem>>) attributes {dimension_semantics = [#tpu.dimension_semantics<parallel>, #tpu.dimension_semantics<parallel>], iteration_bounds = array<i64: 1, 2>, scalar_prefetch = 0 : i64, scratch_operands = 0 : i64, tpu.core_type = #tpu.core_type<tc>, window_params = [{transform_indices = @transform_0, window_bounds = array<i64: 1, 10, 10, 128>}, {transform_indices = @transform_1, window_bounds = array<i64: 3, 3, 128, 128>}, {transform_indices = @transform_2, window_bounds = array<i64: 1, 128>}, {transform_indices = @transform_3, window_bounds = array<i64: 1, 64, 128>}]} {
    %cst = arith.constant 0.000000e+00 : f32
    %0 = vector.broadcast %cst : f32 to vector<64x128xf32>
    %c0 = arith.constant 0 : index
    %c0_0 = arith.constant 0 : index
    %c0_1 = arith.constant 0 : index
    %c0_2 = arith.constant 0 : index
    %1 = vector.load %arg2[%c0, %c0_0, %c0_1, %c0_2] : memref<1x10x10x128xf32, #tpu.memory_space<vmem>>, vector<1x8x8x128xf32>
    %2 = vector.shape_cast %1 : vector<1x8x8x128xf32> to vector<8x8x128xf32>
    %3 = vector.shape_cast %2 : vector<8x8x128xf32> to vector<64x128xf32>
    %c0_3 = arith.constant 0 : index
    %c0_4 = arith.constant 0 : index
    %c0_5 = arith.constant 0 : index
    %c0_6 = arith.constant 0 : index
    %4 = vector.load %arg3[%c0_3, %c0_4, %c0_5, %c0_6] : memref<3x3x128x128xf32, #tpu.memory_space<vmem>>, vector<1x1x128x128xf32>
    %5 = vector.shape_cast %4 : vector<1x1x128x128xf32> to vector<128x128xf32>
    %cst_7 = arith.constant dense<0.000000e+00> : vector<64x128xf32>
    %6 = tpu.matmul %3, %5, %cst_7 {dimension_numbers = #tpu.dot_dimension_numbers<[1], [0], [0], [1], [0, 0, 1, 1], [], []>} : vector<64x128xf32>, vector<128x128xf32>, vector<64x128xf32> -> vector<64x128xf32>
    %7 = arith.addf %0, %6 : vector<64x128xf32>
    %c0_8 = arith.constant 0 : index
    %c0_9 = arith.constant 0 : index
    %c1 = arith.constant 1 : index
    %c0_10 = arith.constant 0 : index
    %8 = vector.load %arg2[%c0_8, %c0_9, %c1, %c0_10] : memref<1x10x10x128xf32, #tpu.memory_space<vmem>>, vector<1x8x8x128xf32>
    %9 = vector.shape_cast %8 : vector<1x8x8x128xf32> to vector<8x8x128xf32>
    %10 = vector.shape_cast %9 : vector<8x8x128xf32> to vector<64x128xf32>
    %c0_11 = arith.constant 0 : index
    %c1_12 = arith.constant 1 : index
    %c0_13 = arith.constant 0 : index
    %c0_14 = arith.constant 0 : index
    %11 = vector.load %arg3[%c0_11, %c1_12, %c0_13, %c0_14] : memref<3x3x128x128xf32, #tpu.memory_space<vmem>>, vector<1x1x128x128xf32>
    %12 = vector.shape_cast %11 : vector<1x1x128x128xf32> to vector<128x128xf32>
    %cst_15 = arith.constant dense<0.000000e+00> : vector<64x128xf32>
    %13 = tpu.matmul %10, %12, %cst_15 {dimension_numbers = #tpu.dot_dimension_numbers<[1], [0], [0], [1], [0, 0, 1, 1], [], []>} : vector<64x128xf32>, vector<128x128xf32>, vector<64x128xf32> -> vector<64x128xf32>
    %14 = arith.addf %7, %13 : vector<64x128xf32>
    %c0_16 = arith.constant 0 : index
    %c0_17 = arith.constant 0 : index
    %c2 = arith.constant 2 : index
    %c0_18 = arith.constant 0 : index
    %15 = vector.load %arg2[%c0_16, %c0_17, %c2, %c0_18] : memref<1x10x10x128xf32, #tpu.memory_space<vmem>>, vector<1x8x8x128xf32>
    %16 = vector.shape_cast %15 : vector<1x8x8x128xf32> to vector<8x8x128xf32>
    %17 = vector.shape_cast %16 : vector<8x8x128xf32> to vector<64x128xf32>
    %c0_19 = arith.constant 0 : index
    %c2_20 = arith.constant 2 : index
    %c0_21 = arith.constant 0 : index
    %c0_22 = arith.constant 0 : index
    %18 = vector.load %arg3[%c0_19, %c2_20, %c0_21, %c0_22] : memref<3x3x128x128xf32, #tpu.memory_space<vmem>>, vector<1x1x128x128xf32>
    %19 = vector.shape_cast %18 : vector<1x1x128x128xf32> to vector<128x128xf32>
    %cst_23 = arith.constant dense<0.000000e+00> : vector<64x128xf32>
    %20 = tpu.matmul %17, %19, %cst_23 {dimension_numbers = #tpu.dot_dimension_numbers<[1], [0], [0], [1], [0, 0, 1, 1], [], []>} : vector<64x128xf32>, vector<128x128xf32>, vector<64x128xf32> -> vector<64x128xf32>
    %21 = arith.addf %14, %20 : vector<64x128xf32>
    %c0_24 = arith.constant 0 : index
    %c1_25 = arith.constant 1 : index
    %c0_26 = arith.constant 0 : index
    %c0_27 = arith.constant 0 : index
    %22 = vector.load %arg2[%c0_24, %c1_25, %c0_26, %c0_27] : memref<1x10x10x128xf32, #tpu.memory_space<vmem>>, vector<1x8x8x128xf32>
    %23 = vector.shape_cast %22 : vector<1x8x8x128xf32> to vector<8x8x128xf32>
    %24 = vector.shape_cast %23 : vector<8x8x128xf32> to vector<64x128xf32>
    %c1_28 = arith.constant 1 : index
    %c0_29 = arith.constant 0 : index
    %c0_30 = arith.constant 0 : index
    %c0_31 = arith.constant 0 : index
    %25 = vector.load %arg3[%c1_28, %c0_29, %c0_30, %c0_31] : memref<3x3x128x128xf32, #tpu.memory_space<vmem>>, vector<1x1x128x128xf32>
    %26 = vector.shape_cast %25 : vector<1x1x128x128xf32> to vector<128x128xf32>
    %cst_32 = arith.constant dense<0.000000e+00> : vector<64x128xf32>
    %27 = tpu.matmul %24, %26, %cst_32 {dimension_numbers = #tpu.dot_dimension_numbers<[1], [0], [0], [1], [0, 0, 1, 1], [], []>} : vector<64x128xf32>, vector<128x128xf32>, vector<64x128xf32> -> vector<64x128xf32>
    %28 = arith.addf %21, %27 : vector<64x128xf32>
    %c0_33 = arith.constant 0 : index
    %c1_34 = arith.constant 1 : index
    %c1_35 = arith.constant 1 : index
    %c0_36 = arith.constant 0 : index
    %29 = vector.load %arg2[%c0_33, %c1_34, %c1_35, %c0_36] : memref<1x10x10x128xf32, #tpu.memory_space<vmem>>, vector<1x8x8x128xf32>
    %30 = vector.shape_cast %29 : vector<1x8x8x128xf32> to vector<8x8x128xf32>
    %31 = vector.shape_cast %30 : vector<8x8x128xf32> to vector<64x128xf32>
    %c1_37 = arith.constant 1 : index
    %c1_38 = arith.constant 1 : index
    %c0_39 = arith.constant 0 : index
    %c0_40 = arith.constant 0 : index
    %32 = vector.load %arg3[%c1_37, %c1_38, %c0_39, %c0_40] : memref<3x3x128x128xf32, #tpu.memory_space<vmem>>, vector<1x1x128x128xf32>
    %33 = vector.shape_cast %32 : vector<1x1x128x128xf32> to vector<128x128xf32>
    %cst_41 = arith.constant dense<0.000000e+00> : vector<64x128xf32>
    %34 = tpu.matmul %31, %33, %cst_41 {dimension_numbers = #tpu.dot_dimension_numbers<[1], [0], [0], [1], [0, 0, 1, 1], [], []>} : vector<64x128xf32>, vector<128x128xf32>, vector<64x128xf32> -> vector<64x128xf32>
    %35 = arith.addf %28, %34 : vector<64x128xf32>
    %c0_42 = arith.constant 0 : index
    %c1_43 = arith.constant 1 : index
    %c2_44 = arith.constant 2 : index
    %c0_45 = arith.constant 0 : index
    %36 = vector.load %arg2[%c0_42, %c1_43, %c2_44, %c0_45] : memref<1x10x10x128xf32, #tpu.memory_space<vmem>>, vector<1x8x8x128xf32>
    %37 = vector.shape_cast %36 : vector<1x8x8x128xf32> to vector<8x8x128xf32>
    %38 = vector.shape_cast %37 : vector<8x8x128xf32> to vector<64x128xf32>
    %c1_46 = arith.constant 1 : index
    %c2_47 = arith.constant 2 : index
    %c0_48 = arith.constant 0 : index
    %c0_49 = arith.constant 0 : index
    %39 = vector.load %arg3[%c1_46, %c2_47, %c0_48, %c0_49] : memref<3x3x128x128xf32, #tpu.memory_space<vmem>>, vector<1x1x128x128xf32>
    %40 = vector.shape_cast %39 : vector<1x1x128x128xf32> to vector<128x128xf32>
    %cst_50 = arith.constant dense<0.000000e+00> : vector<64x128xf32>
    %41 = tpu.matmul %38, %40, %cst_50 {dimension_numbers = #tpu.dot_dimension_numbers<[1], [0], [0], [1], [0, 0, 1, 1], [], []>} : vector<64x128xf32>, vector<128x128xf32>, vector<64x128xf32> -> vector<64x128xf32>
    %42 = arith.addf %35, %41 : vector<64x128xf32>
    %c0_51 = arith.constant 0 : index
    %c2_52 = arith.constant 2 : index
    %c0_53 = arith.constant 0 : index
    %c0_54 = arith.constant 0 : index
    %43 = vector.load %arg2[%c0_51, %c2_52, %c0_53, %c0_54] : memref<1x10x10x128xf32, #tpu.memory_space<vmem>>, vector<1x8x8x128xf32>
    %44 = vector.shape_cast %43 : vector<1x8x8x128xf32> to vector<8x8x128xf32>
    %45 = vector.shape_cast %44 : vector<8x8x128xf32> to vector<64x128xf32>
    %c2_55 = arith.constant 2 : index
    %c0_56 = arith.constant 0 : index
    %c0_57 = arith.constant 0 : index
    %c0_58 = arith.constant 0 : index
    %46 = vector.load %arg3[%c2_55, %c0_56, %c0_57, %c0_58] : memref<3x3x128x128xf32, #tpu.memory_space<vmem>>, vector<1x1x128x128xf32>
    %47 = vector.shape_cast %46 : vector<1x1x128x128xf32> to vector<128x128xf32>
    %cst_59 = arith.constant dense<0.000000e+00> : vector<64x128xf32>
    %48 = tpu.matmul %45, %47, %cst_59 {dimension_numbers = #tpu.dot_dimension_numbers<[1], [0], [0], [1], [0, 0, 1, 1], [], []>} : vector<64x128xf32>, vector<128x128xf32>, vector<64x128xf32> -> vector<64x128xf32>
    %49 = arith.addf %42, %48 : vector<64x128xf32>
    %c0_60 = arith.constant 0 : index
    %c2_61 = arith.constant 2 : index
    %c1_62 = arith.constant 1 : index
    %c0_63 = arith.constant 0 : index
    %50 = vector.load %arg2[%c0_60, %c2_61, %c1_62, %c0_63] : memref<1x10x10x128xf32, #tpu.memory_space<vmem>>, vector<1x8x8x128xf32>
    %51 = vector.shape_cast %50 : vector<1x8x8x128xf32> to vector<8x8x128xf32>
    %52 = vector.shape_cast %51 : vector<8x8x128xf32> to vector<64x128xf32>
    %c2_64 = arith.constant 2 : index
    %c1_65 = arith.constant 1 : index
    %c0_66 = arith.constant 0 : index
    %c0_67 = arith.constant 0 : index
    %53 = vector.load %arg3[%c2_64, %c1_65, %c0_66, %c0_67] : memref<3x3x128x128xf32, #tpu.memory_space<vmem>>, vector<1x1x128x128xf32>
    %54 = vector.shape_cast %53 : vector<1x1x128x128xf32> to vector<128x128xf32>
    %cst_68 = arith.constant dense<0.000000e+00> : vector<64x128xf32>
    %55 = tpu.matmul %52, %54, %cst_68 {dimension_numbers = #tpu.dot_dimension_numbers<[1], [0], [0], [1], [0, 0, 1, 1], [], []>} : vector<64x128xf32>, vector<128x128xf32>, vector<64x128xf32> -> vector<64x128xf32>
    %56 = arith.addf %49, %55 : vector<64x128xf32>
    %c0_69 = arith.constant 0 : index
    %c2_70 = arith.constant 2 : index
    %c2_71 = arith.constant 2 : index
    %c0_72 = arith.constant 0 : index
    %57 = vector.load %arg2[%c0_69, %c2_70, %c2_71, %c0_72] : memref<1x10x10x128xf32, #tpu.memory_space<vmem>>, vector<1x8x8x128xf32>
    %58 = vector.shape_cast %57 : vector<1x8x8x128xf32> to vector<8x8x128xf32>
    %59 = vector.shape_cast %58 : vector<8x8x128xf32> to vector<64x128xf32>
    %c2_73 = arith.constant 2 : index
    %c2_74 = arith.constant 2 : index
    %c0_75 = arith.constant 0 : index
    %c0_76 = arith.constant 0 : index
    %60 = vector.load %arg3[%c2_73, %c2_74, %c0_75, %c0_76] : memref<3x3x128x128xf32, #tpu.memory_space<vmem>>, vector<1x1x128x128xf32>
    %61 = vector.shape_cast %60 : vector<1x1x128x128xf32> to vector<128x128xf32>
    %cst_77 = arith.constant dense<0.000000e+00> : vector<64x128xf32>
    %62 = tpu.matmul %59, %61, %cst_77 {dimension_numbers = #tpu.dot_dimension_numbers<[1], [0], [0], [1], [0, 0, 1, 1], [], []>} : vector<64x128xf32>, vector<128x128xf32>, vector<64x128xf32> -> vector<64x128xf32>
    %63 = arith.addf %56, %62 : vector<64x128xf32>
    %c0_78 = arith.constant 0 : index
    %c0_79 = arith.constant 0 : index
    %64 = vector.load %arg4[%c0_78, %c0_79] : memref<1x128xf32, #tpu.memory_space<vmem>>, vector<1x128xf32>
    %65 = vector.broadcast %64 : vector<1x128xf32> to vector<64x128xf32>
    %66 = arith.addf %63, %65 : vector<64x128xf32>
    %cst_80 = arith.constant 0.000000e+00 : f32
    %67 = vector.broadcast %cst_80 : f32 to vector<64x128xf32>
    %68 = arith.maximumf %66, %67 : vector<64x128xf32>
    %c0_81 = arith.constant 0 : index
    %c0_82 = arith.constant 0 : index
    %c0_83 = arith.constant 0 : index
    %69 = vector.load %arg5[%c0_81, %c0_82, %c0_83] : memref<1x64x128xf32, #tpu.memory_space<vmem>>, vector<1x64x128xf32>
    %70 = vector.shape_cast %69 : vector<1x64x128xf32> to vector<64x128xf32>
    %71 = vector.shape_cast %68 : vector<64x128xf32> to vector<1x64x128xf32>
    tpu.vector_store %arg5[%c0_81, %c0_82, %c0_83], %71 {strides = array<i32>} : memref<1x64x128xf32, #tpu.memory_space<vmem>>, vector<1x64x128xf32>,
    return
  }
  func.func @transform_0(%arg0: i32, %arg1: i32) -> (i32, i32, i32, i32) {
    %c0_i32 = arith.constant 0 : i32
    %c0_i32_0 = arith.constant 0 : i32
    %c0_i32_1 = arith.constant 0 : i32
    %c0_i32_2 = arith.constant 0 : i32
    return %arg1, %c0_i32, %c0_i32_0, %c0_i32_1 : i32, i32, i32, i32
  }
  func.func @transform_1(%arg0: i32, %arg1: i32) -> (i32, i32, i32, i32) {
    %c0_i32 = arith.constant 0 : i32
    %c0_i32_0 = arith.constant 0 : i32
    %c0_i32_1 = arith.constant 0 : i32
    %c0_i32_2 = arith.constant 0 : i32
    return %c0_i32, %c0_i32_0, %c0_i32_1, %arg0 : i32, i32, i32, i32
  }
  func.func @transform_2(%arg0: i32, %arg1: i32) -> (i32, i32) {
    %c0_i32 = arith.constant 0 : i32
    %c0_i32_0 = arith.constant 0 : i32
    return %c0_i32, %arg0 : i32, i32
  }
  func.func @transform_3(%arg0: i32, %arg1: i32) -> (i32, i32, i32) {
    %c0_i32 = arith.constant 0 : i32
    %c0_i32_0 = arith.constant 0 : i32
    return %arg1, %c0_i32, %arg0 : i32, i32, i32
  }
}

module attributes {stable_mosaic.version = 11 : i64} {
  func.func @_linear_kernel(%arg0: i32, %arg1: memref<2x256xf32, #tpu.memory_space<vmem>>, %arg2: memref<256x128xf32, #tpu.memory_space<vmem>>, %arg3: memref<1x128xf32, #tpu.memory_space<vmem>>, %arg4: memref<2x128xf32, #tpu.memory_space<vmem>>) attributes {dimension_semantics = [#tpu.dimension_semantics<parallel>], iteration_bounds = array<i64: 1>, scalar_prefetch = 0 : i64, scratch_operands = 0 : i64, tpu.core_type = #tpu.core_type<tc>, window_params = [{pipeline_mode = #tpu.pipeline_mode<synchronous>, transform_indices = @transform_0, window_bounds = array<i64: 2, 256>}, {transform_indices = @transform_1, window_bounds = array<i64: 256, 128>}, {transform_indices = @transform_2, window_bounds = array<i64: 1, 128>}, {transform_indices = @transform_3, window_bounds = array<i64: 2, 128>}]} {
    %c0 = arith.constant 0 : index
    %c0_0 = arith.constant 0 : index
    %0 = vector.load %arg1[%c0, %c0_0] : memref<2x256xf32, #tpu.memory_space<vmem>>, vector<2x256xf32>
    %c0_1 = arith.constant 0 : index
    %c0_2 = arith.constant 0 : index
    %1 = vector.load %arg2[%c0_1, %c0_2] : memref<256x128xf32, #tpu.memory_space<vmem>>, vector<256x128xf32>
    %cst = arith.constant dense<0.000000e+00> : vector<2x128xf32>
    %2 = tpu.matmul %0, %1, %cst {dimension_numbers = #tpu.dot_dimension_numbers<[1], [0], [0], [1], [0, 0, 1, 1], [], []>} : vector<2x256xf32>, vector<256x128xf32>, vector<2x128xf32> -> vector<2x128xf32>
    %c0_3 = arith.constant 0 : index
    %c0_4 = arith.constant 0 : index
    %3 = vector.load %arg3[%c0_3, %c0_4] : memref<1x128xf32, #tpu.memory_space<vmem>>, vector<1x128xf32>
    %4 = vector.broadcast %3 : vector<1x128xf32> to vector<2x128xf32>
    %5 = arith.addf %2, %4 : vector<2x128xf32>
    %cst_5 = arith.constant 0.000000e+00 : f32
    %6 = vector.broadcast %cst_5 : f32 to vector<2x128xf32>
    %7 = arith.maximumf %5, %6 : vector<2x128xf32>
    %c0_6 = arith.constant 0 : index
    %c0_7 = arith.constant 0 : index
    %8 = vector.load %arg4[%c0_6, %c0_7] : memref<2x128xf32, #tpu.memory_space<vmem>>, vector<2x128xf32>
    tpu.vector_store %arg4[%c0_6, %c0_7], %7 {strides = array<i32>} : memref<2x128xf32, #tpu.memory_space<vmem>>, vector<2x128xf32>,
    return
  }
  func.func @transform_0(%arg0: i32) -> (i32, i32) {
    %c0_i32 = arith.constant 0 : i32
    %c0_i32_0 = arith.constant 0 : i32
    %c0_i32_1 = arith.constant 0 : i32
    return %c0_i32, %c0_i32_0 : i32, i32
  }
  func.func @transform_1(%arg0: i32) -> (i32, i32) {
    %c0_i32 = arith.constant 0 : i32
    %c0_i32_0 = arith.constant 0 : i32
    return %c0_i32, %arg0 : i32, i32
  }
  func.func @transform_2(%arg0: i32) -> (i32, i32) {
    %c0_i32 = arith.constant 0 : i32
    %c0_i32_0 = arith.constant 0 : i32
    return %c0_i32, %arg0 : i32, i32
  }
  func.func @transform_3(%arg0: i32) -> (i32, i32) {
    %c0_i32 = arith.constant 0 : i32
    %c0_i32_0 = arith.constant 0 : i32
    return %c0_i32, %arg0 : i32, i32
  }
}

module attributes {stable_mosaic.version = 11 : i64} {
  func.func @_linear_kernel(%arg0: i32, %arg1: memref<2x128xf32, #tpu.memory_space<vmem>>, %arg2: memref<128x128xf32, #tpu.memory_space<vmem>>, %arg3: memref<1x128xf32, #tpu.memory_space<vmem>>, %arg4: memref<2x128xf32, #tpu.memory_space<vmem>>) attributes {dimension_semantics = [#tpu.dimension_semantics<parallel>], iteration_bounds = array<i64: 1>, scalar_prefetch = 0 : i64, scratch_operands = 0 : i64, tpu.core_type = #tpu.core_type<tc>, window_params = [{pipeline_mode = #tpu.pipeline_mode<synchronous>, transform_indices = @transform_0, window_bounds = array<i64: 2, 128>}, {transform_indices = @transform_1, window_bounds = array<i64: 128, 128>}, {transform_indices = @transform_2, window_bounds = array<i64: 1, 128>}, {transform_indices = @transform_3, window_bounds = array<i64: 2, 128>}]} {
    %c0 = arith.constant 0 : index
    %c0_0 = arith.constant 0 : index
    %0 = vector.load %arg1[%c0, %c0_0] : memref<2x128xf32, #tpu.memory_space<vmem>>, vector<2x128xf32>
    %c0_1 = arith.constant 0 : index
    %c0_2 = arith.constant 0 : index
    %1 = vector.load %arg2[%c0_1, %c0_2] : memref<128x128xf32, #tpu.memory_space<vmem>>, vector<128x128xf32>
    %cst = arith.constant dense<0.000000e+00> : vector<2x128xf32>
    %2 = tpu.matmul %0, %1, %cst {dimension_numbers = #tpu.dot_dimension_numbers<[1], [0], [0], [1], [0, 0, 1, 1], [], []>} : vector<2x128xf32>, vector<128x128xf32>, vector<2x128xf32> -> vector<2x128xf32>
    %c0_3 = arith.constant 0 : index
    %c0_4 = arith.constant 0 : index
    %3 = vector.load %arg3[%c0_3, %c0_4] : memref<1x128xf32, #tpu.memory_space<vmem>>, vector<1x128xf32>
    %4 = vector.broadcast %3 : vector<1x128xf32> to vector<2x128xf32>
    %5 = arith.addf %2, %4 : vector<2x128xf32>
    %c0_5 = arith.constant 0 : index
    %c0_6 = arith.constant 0 : index
    %6 = vector.load %arg4[%c0_5, %c0_6] : memref<2x128xf32, #tpu.memory_space<vmem>>, vector<2x128xf32>
    tpu.vector_store %arg4[%c0_5, %c0_6], %5 {strides = array<i32>} : memref<2x128xf32, #tpu.memory_space<vmem>>, vector<2x128xf32>,
    return
  }
  func.func @transform_0(%arg0: i32) -> (i32, i32) {
    %c0_i32 = arith.constant 0 : i32
    %c0_i32_0 = arith.constant 0 : i32
    %c0_i32_1 = arith.constant 0 : i32
    return %c0_i32, %c0_i32_0 : i32, i32
  }
  func.func @transform_1(%arg0: i32) -> (i32, i32) {
    %c0_i32 = arith.constant 0 : i32
    %c0_i32_0 = arith.constant 0 : i32
    return %c0_i32, %arg0 : i32, i32
  }
  func.func @transform_2(%arg0: i32) -> (i32, i32) {
    %c0_i32 = arith.constant 0 : i32
    %c0_i32_0 = arith.constant 0 : i32
    return %c0_i32, %arg0 : i32, i32
  }
  func.func @transform_3(%arg0: i32) -> (i32, i32) {
    %c0_i32 = arith.constant 0 : i32
    %c0_i32_0 = arith.constant 0 : i32
    return %c0_i32, %arg0 : i32, i32
  }
}

</mosaic_0001>

<bundles_post_ra>
// kernel: vgg_forward.9
= control target key start
LH: loop header
LB: loop body
LE: loop exit
PB: predicated region body
PF: predicated region fallthrough
CT: control target
= control target key end

     0   :  { %6 = vsyncpa [#allocation3], 0  ;;  %s615_s0 = inlined_call_operand.hbm [shape: f32[2,4,2,4,256], index: 0, kind: input, shape index: {}]   ;;  %s616_s1 = inlined_call_operand.hbm [shape: f32[2,4,4,128], index: 1, kind: output, shape index: {}]  }
   0x1   :  { %8 = vsyncpa [#allocation3 + $0x1], 0 }
   0x2   :  { %9 = vsyncpa [#allocation4], 0 }
   0x3   :  { %11 = vsyncpa [#allocation4 + $0x1], 0  ;;  %s443_s6 = smov 0   ;;  %s445_s7 = smov 0  }
   0x4   :  { %s447_s8 = smov 0   ;;  %s449_s9 = smov 0  }
   0x5 LB: > { %s464_s10 = sadd.s32 4294967295, %s425_s9   ;;  %s255_s11 = sadd.s32 4294967294, %s425_s9   ;;  %s425_s9 = sphi %s449_s9, %s629_s9   ;;  %s421_s8 = sphi %s447_s8, %s628_s8   ;;  %s417_s7 = sphi %s445_s7, %s627_s7   ;;  %s413_s6 = sphi %s443_s6, %s626_s6  }
   0x6   : > { %s468_s12 = sadd.s32 1, %s425_s9   ;;  %s24_s13 = sadd.s32 1, %s421_s8 }
   0x7   : > { %s21_s14 = ssub.s32 %s425_s9, %s468_s12  ;;  %p31_p0 = scmp.ne.s32.totalorder %s421_s8, %s417_s7 }
   0x8   : > { %p22_p1 = scmp.eq.s32.totalorder %s21_s14, 0  ;;  %p32_p2 = scmp.eq.s32.totalorder %s425_s9, 0 }
   0x9   : > { %p37_p3 = scmp.ne.s32.totalorder %s417_s7, %s413_s6  ;;  %p38_p4 = scmp.eq.s32.totalorder %s464_s10, 0 }
   0xa   : > { %s480_s15 = scalar_select %p22_p1, %s421_s8, %s24_s13  }
   0xb   : > { %p482_p5 = por %p32_p2, %p31_p0  ;;  %p486_p6 = por %p38_p4, %p37_p3 }
   0xc   : > { %p61_p7 = scmp.eq.s32.totalorder %s464_s10, 1  ;;  %p67_p8 = scmp.eq.s32.totalorder %s255_s11, 1 }
   0xd   : > { %p291_p10 = scmp.lt.s32.totalorder %s425_s9, 2  ;;  %s87_s20 = sand.u32 1, %s421_s8  }
   0xe   : > { %p493_p11 = por %p61_p7, %p31_p0  ;;  %p497_p12 = por %p67_p8, %p37_p3 }
   0xf   : > { %s277_s21 = sshll.u32 %s425_s9, 10  ;;  %s258_s22 = sshll.u32 %s87_s20, 6 }
  0x10   : > { %s620_s18 = scalar_select %p493_p11, 1, 0 }
  0x11   : > { %s621_s19 = scalar_select %p497_p12, 1, 0 }
  0x12   : > { %s506_s25 = scalar_lea.hbm %s615_s0, %s277_s21  ;;  %s91_s26 = scalar_lea.vmem [#allocation2], %s258_s22 }
  0x13   : > { %s98_s27 = sshll.u32 %s91_s26, 4  ;;  %p510_p13 = pnand %p291_p10, %p482_p5  ;;  %s514_s27 = int_to_ptr.vmem [resolvable:$true] %s98_s27 }
  0x14   : > { %s516_s29 = scalar_lea.sflag [#allocation3], %s87_s20  ;;  %s329_s30 = scalar_lea.hbm %s506_s25, 1024 }
  0x15   : > { %p330_p0 = scmp.ne.s32.totalorder %s506_s25, %s329_s30  ;;  %p331_p1 = pneg %p510_p13 }
  0x16   : > { %s334_s4 = scalar_lea.hbm %s615_s0, 2048  ;;  %p335_p4 = scmp.lt.u32.totalorder %s506_s25, %s615_s0 }
  0x17   : > { %p332_p2 = pnand %p331_p1, %p330_p0  ;;  %p336_p5 = scmp.lt.u32.totalorder %s334_s4, %s329_s30 }
  0x18   : > { %p338_p8 = scmp.lt.u32.totalorder %s329_s30, %s506_s25 }
  0x19   : > { %p333_p3 = pneg %p332_p2  ;;  %p337_p7 = por %p336_p5, %p335_p4 }
  0x1b   : > { %p339_p10 = por %p338_p8, %p337_p7 }
  0x1d   : > { %p340_p9 = pnand %p339_p10, %p333_p3 }
  0x1f   : > { %343 = shalt.err (!%p340_p9)
}
  0x20   : > { %s344_s13 = scalar_lea.vmem %s514_s27, 1024  ;;  %s427_s14 = smov [#allocation2]  }
  0x21   : > { %p345_p0 = scmp.ne.s32.totalorder %s514_s27, %s344_s13  ;;  %s349_s16 = sshll.u32 %s427_s14, 4  ;;  %s350_s16 = int_to_ptr.vmem [resolvable:$false] %s349_s16 }
  0x22   : > { %s351_s20 = scalar_lea.vmem %s350_s16, 2048  ;;  %p352_p11 = scmp.lt.s32.totalorder %s514_s27, %s350_s16 }
  0x23   : > { %p347_p2 = pnand %p345_p0, %p331_p1  ;;  %p353_p4 = scmp.lt.s32.totalorder %s351_s20, %s344_s13 }
  0x25   : > { %p348_p12 = pneg %p347_p2  ;;  %p354_p5 = por %p353_p4, %p352_p11 }
  0x27   : > { %p355_p7 = pnand %p354_p5, %p348_p12 }
  0x29   : > { %358 = shalt.err (!%p355_p7)
}
  0x2a   : > { %s428_s21 = smov 128   ;;  %s429_s22 = smov 8  }
  0x2b   : > { %286 = dma.hbm_to_vmem [thread:$0]  (!%p510_p13), %s506_s25, 1024, %s514_s27, %s516_s29, %s428_s21, %s428_s21, %s429_s22  }
  0x2c   : > { %p261_p9 = scmp.ge.s32.totalorder %s425_s9, 1  ;;  %p106_p1 = scmp.lt.s32.totalorder %s425_s9, 3 }
  0x2e   : > { %p107_p3 = pnand %p261_p9, %p106_p1 }
  0x2f   : > { %s547_s23 = sand.u32 (!%p107_p3), 1, %s417_s7  }
  0x30   : > { %110 = sbr.rel (%p107_p3) target bundleno = 86 (0x56), region = 24  ;;  %s262_s24 = sshll.u32 (!%p107_p3), %s547_s23, 6 }
  0x31   : > { %s113_s26 = scalar_lea.sflag (!%p107_p3), [#allocation3], %s547_s23  ;;  %s116_s30 = scalar_lea.vmem (!%p107_p3), [#allocation2], %s262_s24 }
  0x37   : > { %404 = dma.done.wait (%p486_p6), %s113_s26, 1024  }
  0x38   : > { %406 = vsyncadd (%p486_p6), %s113_s26, 4294966272  ;;  %s263_s25 = sshll.u32 %s547_s23, 4  ;;  %s278_s29 = sshll.u32 %s464_s10, 8  ;;  %v135_v0 = vld [vmem:[%s116_s30] sm:$0xf] }
  0x39   : > { %s556_s27 = scalar_lea.vmem [#allocation5], %s263_s25  ;;  %v139_v1 = vld [vmem:[%s116_s30 + $0x4] sm:$0xf]  ;;  %v264_v2 = vld [vmem:[%s116_s30 + $0x8] sm:$0xf]  ;;  %s569_s3 = scalar_lea.hbm %s616_s1, %s278_s29 }
  0x3a   : > { %s182_s28 = sshll.u32 %s556_s27, 4  ;;  %v268_v3 = vld [vmem:[%s116_s30 + $0xc] sm:$0xf]  ;;  %v152_v4 = vmax.f32 %v135_v0, %v139_v1  ;;  %v136_v5 = vld [vmem:[%s116_s30 + $0x10] sm:$0xf]  ;;  %s169_s4 = scalar_lea.sflag [#allocation4], %s547_s23  ;;  %s561_s28 = int_to_ptr.vmem [resolvable:$true] %s182_s28 }
  0x3b   : > { %v140_v6 = vld [vmem:[%s116_s30 + $0x14] sm:$0xf]  ;;  %v156_v7 = vmax.f32 %v264_v2, %v268_v3  ;;  %v265_v8 = vld [vmem:[%s116_s30 + $0x18] sm:$0xf]  ;;  %v269_v9 = vld [vmem:[%s116_s30 + $0x1c] sm:$0xf] }
  0x3c   : > { %v153_v10 = vmax.f32 %v136_v5, %v140_v6  ;;  %v137_v11 = vld [vmem:[%s116_s30 + $0x20] sm:$0xf]  ;;  %v157_v12 = vmax.f32 %v265_v8, %v269_v9  ;;  %v141_v13 = vld [vmem:[%s116_s30 + $0x24] sm:$0xf]  ;;  %v266_v14 = vld [vmem:[%s116_s30 + $0x28] sm:$0xf] }
  0x3d   : > { %v270_v15 = vld [vmem:[%s116_s30 + $0x2c] sm:$0xf]  ;;  %v160_v16 = vmax.f32 %v152_v4, %v156_v7  ;;  %v154_v17 = vmax.f32 %v137_v11, %v141_v13  ;;  %v138_v19 = vld [vmem:[%s116_s30 + $0x30] sm:$0xf]  ;;  %v142_v20 = vld [vmem:[%s116_s30 + $0x34] sm:$0xf] }
  0x3e   : > { %v158_v18 = vmax.f32 %v266_v14, %v270_v15  ;;  %v267_v21 = vld [vmem:[%s116_s30 + $0x38] sm:$0xf]  ;;  %v161_v22 = vmax.f32 %v153_v10, %v157_v12  ;;  %v271_v23 = vld [vmem:[%s116_s30 + $0x3c] sm:$0xf]  ;;  %v155_v24 = vmax.f32 %v138_v19, %v142_v20  ;;  %s359_s5 = scalar_lea.vmem %s561_s28, 256  ;;  %p623_p11 = scmp.ne.s32.totalorder %s620_s18, 0 }
  0x3f   : > { %164 = vst [vmem:[%s556_s27] sm:$0xf] %v160_v16  ;;  %v159_v26 = vmax.f32 %v267_v21, %v271_v23  ;;  %p360_p6 = scmp.ne.s32.totalorder %s561_s28, %s359_s5  ;;  %s430_s11 = smov [#allocation5]  }
  0x40   : > { %v162_v25 = vmax.f32 %v154_v17, %v158_v18  ;;  %165 = vst [vmem:[%s556_s27 + $0x4] sm:$0xf] %v161_v22  ;;  %s363_s13 = sshll.u32 %s430_s11, 4  ;;  %s364_s13 = int_to_ptr.vmem [resolvable:$false] %s363_s13 }
  0x41   : > { %v163_v27 = vmax.f32 %v155_v24, %v159_v26  ;;  %p361_p12 = pnand %p360_p6, %p623_p11  ;;  %s365_s14 = scalar_lea.vmem %s364_s13, 512 }
  0x42   : > { %166 = vst [vmem:[%s556_s27 + $0x8] sm:$0xf] %v162_v25  ;;  %p366_p8 = scmp.lt.s32.totalorder %s561_s28, %s364_s13  ;;  %p367_p10 = scmp.lt.s32.totalorder %s365_s14, %s359_s5 }
  0x43   : > { %167 = vst [vmem:[%s556_s27 + $0xc] sm:$0xf] %v163_v27  ;;  %p362_p13 = pneg %p361_p12 }
  0x44   : > { %p368_p0 = por %p367_p10, %p366_p8 }
  0x46   : > { %p369_p2 = pnand %p368_p0, %p362_p13 }
  0x48   : > { %372 = shalt.err (!%p369_p2)
}
  0x49   : > { %s373_s10 = scalar_lea.hbm %s569_s3, 256  ;;  %s377_s21 = scalar_lea.hbm %s616_s1, 512 }
  0x4a   : > { %p374_p4 = scmp.ne.s32.totalorder %s569_s3, %s373_s10  ;;  %p378_p9 = scmp.lt.u32.totalorder %s569_s3, %s616_s1 }
  0x4b   : > { %p379_p1 = scmp.lt.u32.totalorder %s377_s21, %s373_s10  ;;  %p381_p6 = scmp.lt.u32.totalorder %s373_s10, %s569_s3 }
  0x4c   : > { %p375_p5 = pnand %p374_p4, %p623_p11 }
  0x4d   : > { %p380_p3 = por %p379_p1, %p378_p9 }
  0x4e   : > { %p376_p7 = pneg %p375_p5 }
  0x4f   : > { %p382_p12 = por %p381_p6, %p380_p3 }
  0x51   : > { %p383_p13 = pnand %p382_p12, %p376_p7 }
  0x53   : > { %386 = shalt.err (!%p383_p13)
}
  0x54   : > { %s431_s26 = smov 64   ;;  %s432_s30 = smov 4  }
  0x55   : > { %281 = dma.vmem_to_hbm [thread:$0]  (%p623_p11), %s561_s28, 256, %s569_s3, %s169_s4, %s431_s26, %s431_s26, %s432_s30  }
  0x56 PF: > { %s197_s25 = sand.u32 1, %s413_s6   ;;  %p624_p8 = scmp.ne.s32.totalorder %s621_s19, 0 }
  0x57   : > { %p625_p10 = scmp.ge.s32.totalorder %s425_s9, 2  ;;  %s198_s27 = scalar_lea.sflag [#allocation4], %s197_s25 }
  0x59   : > { %p288_p0 = pnand %p625_p10, %p624_p8 }
  0x5b   : > { %408 = dma.done.wait (!%p288_p0), %s198_s27, 256  }
  0x5c   : > { %410 = vsyncadd (!%p288_p0), %s198_s27, 4294967040  ;;  %p14_p2 = scmp.ge.s32.totalorder %s468_s12, 4   ;;  %s626_s6 = smov %s417_s7 }
  0x5d   : > { %s627_s7 = smov %s421_s8  ;;  %s628_s8 = smov %s480_s15 }
  0x5e   : > { %s629_s9 = smov %s468_s12  ;;  %16 = sbr.rel (!%p14_p2) target bundleno = 5 (0x5), region = 70 }
  0x65   :  { %203 = vsyncpa [#allocation3], 1 }
  0x66   :  { %205 = vsyncpa [#allocation3 + $0x1], 1 }
  0x67   :  { %206 = vsyncpa [#allocation4], 1 }
  0x68   :  { %208 = vsyncpa [#allocation4 + $0x1], 1 }

// kernel: vgg_forward.7
= control target key start
LH: loop header
LB: loop body
LE: loop exit
PB: predicated region body
PF: predicated region fallthrough
CT: control target
= control target key end

     0   :  { %10 = vsyncpa [#allocation3], 0  ;;  %s1364_s0 = inlined_call_operand.hbm [shape: f32[2,8,2,8,256], index: 0, kind: input, shape index: {}]   ;;  %s1365_s1 = inlined_call_operand.hbm [shape: f32[1,128], index: 1, kind: input, shape index: {}]   ;;  %s1366_s2 = inlined_call_operand.hbm [shape: f32[1,128], index: 2, kind: input, shape index: {}]   ;;  %s1367_s3 = inlined_call_operand.hbm [shape: f32[1,128], index: 3, kind: input, shape index: {}]   ;;  %s1368_s4 = inlined_call_operand.hbm [shape: f32[1,128], index: 4, kind: input, shape index: {}]   ;;  %s1369_s5 = inlined_call_operand.hbm [shape: f32[2,8,8,128], index: 5, kind: output, shape index: {}]  }
   0x1   :  { %12 = vsyncpa [#allocation3 + $0x1], 0 }
   0x2   :  { %13 = vsyncpa [#allocation6], 0 }
   0x3   :  { %14 = vsyncpa [#allocation9], 0 }
   0x4   :  { %15 = vsyncpa [#allocation4], 0 }
   0x5   :  { %17 = vsyncpa [#allocation4 + $0x1], 0  ;;  %s972_s18 = smov 0   ;;  %s974_s19 = smov 0  }
   0x6   :  { %s976_s20 = smov 0   ;;  %s978_s21 = smov 0  }
   0x7 LB: > { %s993_s22 = sadd.s32 4294967295, %s930_s21   ;;  %s581_s23 = sadd.s32 4294967294, %s930_s21   ;;  %s930_s21 = sphi %s978_s21, %s1392_s21   ;;  %s926_s20 = sphi %s976_s20, %s1391_s20   ;;  %s922_s19 = sphi %s974_s19, %s1390_s19   ;;  %s918_s18 = sphi %s972_s18, %s1389_s18  }
   0x8   : > { %p43_p0 = scmp.ne.s32.totalorder %s922_s19, %s918_s18  ;;  %p1370_p1 = scmp.eq.s32.totalorder %s993_s22, 0 }
   0x9   : > { %p157_p3 = scmp.eq.s32.totalorder %s581_s23, 1  ;;  %p582_p5 = scmp.ge.s32.totalorder %s930_s21, 1 }
   0xa   : > { %p1002_p4 = por %p1370_p1, %p43_p0  ;;  %p164_p7 = scmp.lt.s32.totalorder %s930_s21, 3 }
   0xb   : > { %p1007_p6 = por %p157_p3, %p43_p0  ;;  %s932_s27 = smov [#allocation5]  }
   0xc   : > { %s1373_s24 = scalar_select %p1002_p4, 1, 0 }
   0xd   : > { %s1374_s25 = scalar_select %p1007_p6, 1, 0 }
   0xe   : > { %p1012_p8 = pnand %p582_p5, %p164_p7  ;;  %s177_s28 = sshll.u32 %s932_s27, 4  ;;  %s178_s28 = int_to_ptr.vmem [resolvable:$true] %s177_s28 }
   0xf   : > { %s933_s29 = smov [#allocation8]   ;;  %s934_s7 = smov [#allocation7]  }
  0x10   : > { %s1375_s26 = scalar_select %p1012_p8, 1, 0 }
  0x11   : > { %p641_p10 = pneg %p1012_p8  ;;  %s199_s30 = sshll.u32 %s933_s29, 4  ;;  %s1025_s30 = int_to_ptr.vmem [resolvable:$true] %s199_s30 }
  0x12   : > { %s188_s8 = sshll.u32 %s934_s7, 4  ;;  %s714_s11 = scalar_lea.hbm %s1365_s1, 16  ;;  %s1027_s8 = int_to_ptr.vmem [resolvable:$true] %s188_s8 }
  0x13   : > { %p1021_p11 = pnand %p641_p10, %p1370_p1  ;;  %p715_p12 = scmp.ne.s32.totalorder %s1365_s1, %s714_s11 }
  0x14   : > { %p721_p5 = scmp.lt.u32.totalorder %s714_s11, %s1365_s1 }
  0x15   : > { %p1037_p13 = pneg %p1021_p11 }
  0x17   : > { %p717_p0 = pnand %p1037_p13, %p715_p12 }
  0x19   : > { %p718_p3 = pneg %p717_p0 }
  0x1b   : > { %p723_p7 = pnand %p721_p5, %p718_p3 }
  0x1d   : > { %726 = shalt.err (!%p723_p7)
}
  0x1e   : > { %s727_s17 = scalar_lea.vmem %s178_s28, 16  ;;  %s734_s23 = scalar_lea.vmem %s178_s28, 32 }
  0x1f   : > { %p728_p10 = scmp.ne.s32.totalorder %s178_s28, %s727_s17  ;;  %p735_p2 = scmp.lt.s32.totalorder %s178_s28, %s178_s28 }
  0x20   : > { %p736_p6 = scmp.lt.s32.totalorder %s734_s23, %s727_s17 }
  0x21   : > { %p730_p9 = pnand %p728_p10, %p1037_p13 }
  0x22   : > { %p737_p4 = por %p736_p6, %p735_p2 }
  0x23   : > { %p731_p1 = pneg %p730_p9 }
  0x25   : > { %p738_p8 = pnand %p737_p4, %p731_p1 }
  0x27   : > { %741 = shalt.err (!%p738_p8)
}
  0x28   : > { %644 = dma.hbm_to_vmem [thread:$0]  (!%p1021_p11), %s1365_s1, 16, %s178_s28, [#allocation6]  }
  0x29   : > { %s742_s10 = scalar_lea.hbm %s1367_s3, 16 }
  0x2a   : > { %p743_p9 = scmp.ne.s32.totalorder %s1367_s3, %s742_s10  ;;  %p749_p1 = scmp.lt.u32.totalorder %s742_s10, %s1367_s3 }
  0x2c   : > { %p745_p12 = pnand %p743_p9, %p1037_p13 }
  0x2e   : > { %p746_p2 = pneg %p745_p12 }
  0x30   : > { %p751_p4 = pnand %p749_p1, %p746_p2 }
  0x32   : > { %754 = shalt.err (!%p751_p4)
}
  0x33   : > { %s755_s28 = scalar_lea.vmem %s1025_s30, 16  ;;  %s762_s16 = scalar_lea.vmem %s1025_s30, 32 }
  0x34   : > { %p756_p6 = scmp.ne.s32.totalorder %s1025_s30, %s755_s28  ;;  %p763_p3 = scmp.lt.s32.totalorder %s1025_s30, %s1025_s30 }
  0x35   : > { %p764_p5 = scmp.lt.s32.totalorder %s762_s16, %s755_s28 }
  0x36   : > { %p758_p8 = pnand %p756_p6, %p1037_p13 }
  0x37   : > { %p765_p7 = por %p764_p5, %p763_p3 }
  0x38   : > { %p759_p0 = pneg %p758_p8 }
  0x3a   : > { %p766_p10 = pnand %p765_p7, %p759_p0 }
  0x3c   : > { %769 = shalt.err (!%p766_p10)
}
  0x3d   : > { %650 = dma.hbm_to_vmem [thread:$0]  (!%p1021_p11), %s1367_s3, 16, %s1025_s30, [#allocation9]  }
  0x3e   : > { %s770_s7 = scalar_lea.hbm %s1366_s2, 16 }
  0x3f   : > { %p771_p9 = scmp.ne.s32.totalorder %s1366_s2, %s770_s7  ;;  %p777_p1 = scmp.lt.u32.totalorder %s770_s7, %s1366_s2 }
  0x41   : > { %p773_p12 = pnand %p771_p9, %p1037_p13 }
  0x43   : > { %p774_p2 = pneg %p773_p12 }
  0x45   : > { %p779_p4 = pnand %p777_p1, %p774_p2 }
  0x47   : > { %782 = shalt.err (!%p779_p4)
}
  0x48   : > { %s783_s30 = scalar_lea.vmem %s1027_s8, 16  ;;  %s790_s13 = scalar_lea.vmem %s1027_s8, 32 }
  0x49   : > { %p784_p6 = scmp.ne.s32.totalorder %s1027_s8, %s783_s30  ;;  %p791_p3 = scmp.lt.s32.totalorder %s1027_s8, %s1027_s8 }
  0x4a   : > { %p792_p5 = scmp.lt.s32.totalorder %s790_s13, %s783_s30 }
  0x4b   : > { %p786_p8 = pnand %p784_p6, %p1037_p13 }
  0x4c   : > { %p793_p7 = por %p792_p5, %p791_p3 }
  0x4d   : > { %p787_p0 = pneg %p786_p8 }
  0x4f   : > { %p794_p10 = pnand %p793_p7, %p787_p0 }
  0x51   : > { %797 = shalt.err (!%p794_p10)
}
  0x52   : > { %647 = dma.hbm_to_vmem [thread:$0]  (!%p1021_p11), %s1366_s2, 16, %s1027_s8, [#allocation6]  }
  0x53   : > { %s935_s16 = smov [#allocation10]   ;;  %s798_s29 = scalar_lea.hbm %s1368_s4, 16 }
  0x54   : > { %s210_s17 = sshll.u32 %s935_s16, 4  ;;  %p799_p9 = scmp.ne.s32.totalorder %s1368_s4, %s798_s29  ;;  %s211_s17 = int_to_ptr.vmem [resolvable:$true] %s210_s17 }
  0x55   : > { %p805_p1 = scmp.lt.u32.totalorder %s798_s29, %s1368_s4 }
  0x56   : > { %p801_p12 = pnand %p799_p9, %p1037_p13 }
  0x58   : > { %p802_p2 = pneg %p801_p12 }
  0x5a   : > { %p807_p4 = pnand %p805_p1, %p802_p2 }
  0x5c   : > { %810 = shalt.err (!%p807_p4)
}
  0x5d   : > { %s811_s8 = scalar_lea.vmem %s211_s17, 16  ;;  %s818_s12 = scalar_lea.vmem %s211_s17, 32 }
  0x5e   : > { %p812_p6 = scmp.ne.s32.totalorder %s211_s17, %s811_s8  ;;  %p819_p3 = scmp.lt.s32.totalorder %s211_s17, %s211_s17 }
  0x5f   : > { %p820_p5 = scmp.lt.s32.totalorder %s818_s12, %s811_s8 }
  0x60   : > { %p814_p8 = pnand %p812_p6, %p1037_p13 }
  0x61   : > { %p821_p7 = por %p820_p5, %p819_p3 }
  0x62   : > { %p815_p0 = pneg %p814_p8 }
  0x64   : > { %p822_p10 = pnand %p821_p7, %p815_p0 }
  0x66   : > { %825 = shalt.err (!%p822_p10)
}
  0x67   : > { %653 = dma.hbm_to_vmem [thread:$0]  (!%p1021_p11), %s1368_s4, 16, %s211_s17, [#allocation9]  }
  0x68   : > { %s1120_s14 = sadd.s32 1, %s930_s21   ;;  %s30_s15 = sadd.s32 1, %s926_s20 }
  0x69   : > { %s27_s6 = ssub.s32 %s930_s21, %s1120_s14  ;;  %p37_p13 = scmp.ne.s32.totalorder %s926_s20, %s922_s19 }
  0x6a   : > { %p28_p9 = scmp.eq.s32.totalorder %s27_s6, 0  ;;  %p38_p12 = scmp.eq.s32.totalorder %s930_s21, 0 }
  0x6b   : > { %p1378_p2 = scmp.eq.s32.totalorder %s993_s22, 1  ;;  %p666_p4 = scmp.lt.s32.totalorder %s930_s21, 2 }
  0x6c   : > { %s1136_s16 = scalar_select %p28_p9, %s926_s20, %s30_s15  }
  0x6d   : > { %p1130_p1 = por %p1378_p2, %p37_p13  ;;  %p39_p6 = por %p38_p12, %p37_p13 }
  0x6e   : > { %s221_s23 = sand.u32 1, %s926_s20   ;;  %s619_s17 = sshll.u32 %s930_s21, 12 }
  0x6f   : > { %s588_s27 = sshll.u32 %s221_s23, 8  ;;  %s1143_s9 = scalar_lea.hbm %s1364_s0, %s619_s17 }
  0x70   : > { %s225_s10 = scalar_lea.vmem [#allocation2], %s588_s27  ;;  %p1147_p11 = pnand %p666_p4, %p39_p6 }
  0x71   : > { %s232_s11 = sshll.u32 %s225_s10, 4  ;;  %s1151_s12 = scalar_lea.sflag [#allocation3], %s221_s23  ;;  %s1145_s11 = int_to_ptr.vmem [resolvable:$true] %s232_s11 }
  0x72   : > { %s826_s30 = scalar_lea.hbm %s1143_s9, 4096  ;;  %p828_p0 = pneg %p1147_p11 }
  0x73   : > { %p827_p8 = scmp.ne.s32.totalorder %s1143_s9, %s826_s30  ;;  %s831_s6 = scalar_lea.hbm %s1364_s0, 8192 }
  0x74   : > { %p832_p7 = scmp.lt.u32.totalorder %s1143_s9, %s1364_s0  ;;  %p833_p10 = scmp.lt.u32.totalorder %s831_s6, %s826_s30 }
  0x75   : > { %p829_p3 = pnand %p828_p0, %p827_p8  ;;  %p835_p9 = scmp.lt.u32.totalorder %s826_s30, %s1143_s9 }
  0x76   : > { %p834_p13 = por %p833_p10, %p832_p7 }
  0x77   : > { %p830_p5 = pneg %p829_p3 }
  0x78   : > { %p836_p12 = por %p835_p9, %p834_p13 }
  0x7a   : > { %p837_p2 = pnand %p836_p12, %p830_p5 }
  0x7c   : > { %840 = shalt.err (!%p837_p2)
}
  0x7d   : > { %s841_s23 = scalar_lea.vmem %s1145_s11, 4096  ;;  %s936_s29 = smov [#allocation2]  }
  0x7e   : > { %p842_p4 = scmp.ne.s32.totalorder %s1145_s11, %s841_s23  ;;  %s846_s7 = sshll.u32 %s936_s29, 4  ;;  %s847_s7 = int_to_ptr.vmem [resolvable:$false] %s846_s7 }
  0x7f   : > { %s848_s10 = scalar_lea.vmem %s847_s7, 8192  ;;  %p849_p3 = scmp.lt.s32.totalorder %s1145_s11, %s847_s7 }
  0x80   : > { %p844_p6 = pnand %p842_p4, %p828_p0  ;;  %p850_p7 = scmp.lt.s32.totalorder %s848_s10, %s841_s23 }
  0x82   : > { %p845_p8 = pneg %p844_p6  ;;  %p851_p10 = por %p850_p7, %p849_p3 }
  0x84   : > { %p852_p13 = pnand %p851_p10, %p845_p8 }
  0x86   : > { %855 = shalt.err (!%p852_p13)
}
  0x87   : > { %s937_s30 = smov 256   ;;  %s938_s13 = smov 16  }
  0x88   : > { %657 = dma.hbm_to_vmem [thread:$0]  (!%p1147_p11), %s1143_s9, 4096, %s1145_s11, %s1151_s12, %s937_s30, %s937_s30, %s938_s13  }
  0x89   : > { %p1381_p0 = scmp.ne.s32.totalorder %s1375_s26, 0 }
  0x8a   : > { %s1182_s15 = sand.u32 (!%p1381_p0), 1, %s922_s19   ;;  %p1382_p5 = scmp.ne.s32.totalorder (!%p1381_p0), %s1373_s24, 0 }
  0x8b   : > { %244 = sbr.rel (%p1381_p0) target bundleno = 226 (0xe2), region = 40  ;;  %s592_s6 = sshll.u32 (!%p1381_p0), %s1182_s15, 8 }
  0x8c   : > { %s247_s27 = scalar_lea.sflag (!%p1381_p0), [#allocation3], %s1182_s15  ;;  %s1186_s17 = scalar_lea.vmem (!%p1381_p0), [#allocation2], %s592_s6 }
  0x92   : > { %901 = dma.done.wait (%p1382_p5), %s247_s27, 4096  }
  0x93   : > { %903 = vsyncadd (%p1382_p5), %s247_s27, 4294963200  ;;  %p1383_p11 = scmp.eq.s32.totalorder %s993_s22, 0 }
  0x95   : > { %905 = dma.done.wait (%p1383_p11), [#allocation6], 32   ;;  %p1384_p9 = pmov %p1383_p11 }
  0x97   : > { %907 = vsyncadd (%p1384_p9), [#allocation6], 4294967264  ;;  %p1385_p12 = pmov %p1384_p9 }
  0x98   : > { %p1386_p2 = pmov %p1384_p9 }
  0x99   : > { %909 = dma.done.wait (%p1385_p12), [#allocation9], 32  }
  0x9a   : > { %911 = vsyncadd (%p1386_p2), [#allocation9], 4294967264  ;;  %v326_v0 = vld [vmem:[#allocation5] sm:$0x1]  ;;  %v328_v1 = vld [vmem:[#allocation7] sm:$0x1]  ;;  %v341_v8 = vlaneseq }
  0x9b   : > { %v327_v2 = vmul.f32 0.001953125, %v326_v0  ;;  %v329_v3 = vmul.f32 0.001953125, %v328_v1  ;;  %v333_v10 = vld [vmem:[#allocation8] sm:$0x1]  ;;  %v301_v14 = vld [vmem:[%s1186_s17 + $0x8] sm:$0xff]  ;;  %v598_v15 = vld [vmem:[%s1186_s17 + $0x10] sm:$0xff] }
  0x9c   : > { %v342_v9 = vshrl.u32 %v341_v8, 7  ;;  %v293_v13 = vld [vmem:[%s1186_s17] sm:$0xff]  ;;  %v606_v17 = vld [vmem:[%s1186_s17 + $0x18] sm:$0xff]  ;;  %v302_v22 = vld [vmem:[%s1186_s17 + $0x28] sm:$0xff]  ;;  %s597_s24 = sshll.u32 %s1182_s15, 6  ;;  %s620_s11 = sshll.u32 %s993_s22, 10 }
  0x9d   : > { %v330_v4 = vmul.f32 %v327_v2, %v327_v2  ;;  %v337_v18 = vld [vmem:[#allocation10] sm:$0x1]  ;;  %v599_v23 = vld [vmem:[%s1186_s17 + $0x30] sm:$0xff]  ;;  %v607_v24 = vld [vmem:[%s1186_s17 + $0x38] sm:$0xff]  ;;  %s1264_s26 = scalar_lea.vmem [#allocation11], %s597_s24  ;;  %s1319_s23 = scalar_lea.hbm %s1369_s5, %s620_s11 }
  0x9e   : > { %v343_v11 = vsub.s32 0, %v342_v9  ;;  %v294_v19 = vld [vmem:[%s1186_s17 + $0x20] sm:$0xff]  ;;  %v303_v26 = vld [vmem:[%s1186_s17 + $0x48] sm:$0xff]  ;;  %v600_v27 = vld [vmem:[%s1186_s17 + $0x50] sm:$0xff]  ;;  %s470_s9 = sshll.u32 %s1264_s26, 4  ;;  %s457_s29 = scalar_lea.sflag [#allocation4], %s1182_s15  ;;  %s1313_s9 = int_to_ptr.vmem [resolvable:$true] %s470_s9 }
  0x9f   : > { %v331_v5 = vsub.f32 %v329_v3, %v330_v4  ;;  %v295_v25 = vld [vmem:[%s1186_s17 + $0x40] sm:$0xff]  ;;  %v608_v32 = vld [vmem:[%s1186_s17 + $0x58] sm:$0xff]  ;;  %v304_v34 = vld [vmem:[%s1186_s17 + $0x68] sm:$0xff]  ;;  %s856_s7 = scalar_lea.vmem %s1313_s9, 1024  ;;  %s939_s22 = smov [#allocation11]  }
  0xa0   : > { %v296_v33 = vld [vmem:[%s1186_s17 + $0x60] sm:$0xff]  ;;  %v601_v59 = vld [vmem:[%s1186_s17 + $0x70] sm:$0xff]  ;;  %v609_v60 = vld [vmem:[%s1186_s17 + $0x78] sm:$0xff]  ;;  %p857_p4 = scmp.ne.s32.totalorder %s1313_s9, %s856_s7  ;;  %s860_s10 = sshll.u32 %s939_s22, 4  ;;  %s861_s10 = int_to_ptr.vmem [resolvable:$false] %s860_s10 }
  0xa1   : > { %v332_v6 = vmax.f32 %v331_v5, 0.0  ;;  %v297_v1 = vld [vmem:[%s1186_s17 + $0x80] sm:$0xff]  ;;  %s862_s30 = scalar_lea.vmem %s861_s10, 2048  ;;  %p863_p3 = scmp.lt.s32.totalorder %s1313_s9, %s861_s10 }
  0xa2   : > { %p858_p6 = pnand %p857_p4, %p1130_p1  ;;  %p864_p7 = scmp.lt.s32.totalorder %s862_s30, %s856_s7 }
  0xa3   : > { %v334_v7 = vadd.f32 1e-05, %v332_v6 }
  0xa4   : > { %p859_p8 = pneg %p858_p6  ;;  %p865_p10 = por %p864_p7, %p863_p3 }
  0xa5   : > { %712 = vrsqrt.f32 %v334_v7 }
  0xa6   : > { %p866_p13 = pnand %p865_p10, %p859_p8 }
  0xaf   : > { %v713_v12 = vpop.eup %712 }
  0xb0   : > { %v336_v16 = vmul.f32 %v713_v12, %v333_v10  ;;  %v610_v12 = vld [vmem:[%s1186_s17 + $0x98] sm:$0xff] }
  0xb2   : > { %v338_v20 = vmul.f32 %v336_v16, %v327_v2  ;;  %v1205_v21 = vrot.slane %v336_v16, %v343_v11  ;;  %v305_v2 = vld [vmem:[%s1186_s17 + $0x88] sm:$0xff] }
  0xb4   : > { %v339_v28 = vsub.f32 %v337_v18, %v338_v20  ;;  %v346_v29 = vmul.f32 %v1205_v21, %v293_v13  ;;  %v368_v30 = vmul.f32 %v1205_v21, %v301_v14  ;;  %v384_v31 = vmul.f32 %v598_v15, %v1205_v21  ;;  %v306_v18 = vld [vmem:[%s1186_s17 + $0xa8] sm:$0xff] }
  0xb5   : > { %v400_v35 = vmul.f32 %v606_v17, %v1205_v21  ;;  %v347_v36 = vmul.f32 %v1205_v21, %v294_v19  ;;  %v369_v37 = vmul.f32 %v1205_v21, %v302_v22  ;;  %v385_v38 = vmul.f32 %v599_v23, %v1205_v21  ;;  %v298_v17 = vld [vmem:[%s1186_s17 + $0xa0] sm:$0xff] }
  0xb6   : > { %v1223_v39 = vrot.slane %v339_v28, %v343_v11  ;;  %v401_v40 = vmul.f32 %v607_v24, %v1205_v21  ;;  %v348_v41 = vmul.f32 %v1205_v21, %v295_v25  ;;  %v370_v42 = vmul.f32 %v1205_v21, %v303_v26  ;;  %v602_v11 = vld [vmem:[%s1186_s17 + $0x90] sm:$0xff] }
  0xb7   : > { %v386_v43 = vmul.f32 %v600_v27, %v1205_v21  ;;  %v402_v44 = vmul.f32 %v608_v32, %v1205_v21  ;;  %v349_v45 = vmul.f32 %v1205_v21, %v296_v33  ;;  %v371_v46 = vmul.f32 %v1205_v21, %v304_v34  ;;  %v603_v24 = vld [vmem:[%s1186_s17 + $0xb0] sm:$0xff]  ;;  %v299_v34 = vld [vmem:[%s1186_s17 + $0xc0] sm:$0xff] }
  0xb8   : > { %v360_v47 = vadd.f32 %v1223_v39, %v346_v29  ;;  %v376_v48 = vadd.f32 %v368_v30, %v1223_v39  ;;  %v392_v49 = vadd.f32 %v384_v31, %v1223_v39  ;;  %v408_v50 = vadd.f32 %v400_v35, %v1223_v39  ;;  %v611_v29 = vld [vmem:[%s1186_s17 + $0xb8] sm:$0xff]  ;;  %v307_v35 = vld [vmem:[%s1186_s17 + $0xc8] sm:$0xff] }
  0xb9   : > { %v361_v51 = vadd.f32 %v1223_v39, %v347_v36  ;;  %v377_v52 = vadd.f32 %v369_v37, %v1223_v39  ;;  %v393_v53 = vadd.f32 %v385_v38, %v1223_v39  ;;  %v409_v54 = vadd.f32 %v401_v40, %v1223_v39 }
  0xba   : > { %v416_v55 = vmax.f32 %v360_v47, %v376_v48  ;;  %v424_v56 = vmax.f32 %v392_v49, %v408_v50  ;;  %v362_v57 = vadd.f32 %v1223_v39, %v348_v41  ;;  %v378_v58 = vadd.f32 %v370_v42, %v1223_v39  ;;  %v604_v41 = vld [vmem:[%s1186_s17 + $0xd0] sm:$0xff] }
  0xbb   : > { %v417_v61 = vmax.f32 %v361_v51, %v377_v52  ;;  %v425_v62 = vmax.f32 %v393_v53, %v409_v54  ;;  %v394_v63 = vadd.f32 %v386_v43, %v1223_v39  ;;  %v410_v0 = vadd.f32 %v402_v44, %v1223_v39  ;;  %v300_v51 = vld [vmem:[%s1186_s17 + $0xe0] sm:$0xff]  ;;  %v308_v52 = vld [vmem:[%s1186_s17 + $0xe8] sm:$0xff] }
  0xbc   : > { %v432_v3 = vmax.f32 %v416_v55, %v424_v56  ;;  %v418_v4 = vmax.f32 %v362_v57, %v378_v58  ;;  %v363_v5 = vadd.f32 %v1223_v39, %v349_v45  ;;  %v379_v6 = vadd.f32 %v371_v46, %v1223_v39  ;;  %v612_v46 = vld [vmem:[%s1186_s17 + $0xd8] sm:$0xff]  ;;  %v605_v57 = vld [vmem:[%s1186_s17 + $0xf0] sm:$0xff] }
  0xbd   : > { %v433_v7 = vmax.f32 %v417_v61, %v425_v62  ;;  %v426_v8 = vmax.f32 %v394_v63, %v410_v0  ;;  %v387_v9 = vmul.f32 %v601_v59, %v1205_v21  ;;  %v403_v10 = vmul.f32 %v609_v60, %v1205_v21  ;;  %v613_v62 = vld [vmem:[%s1186_s17 + $0xf8] sm:$0xff] }
  0xbe   : > { %v440_v13 = vmax.f32 %v432_v3, 0.0  ;;  %v419_v14 = vmax.f32 %v363_v5, %v379_v6  ;;  %v350_v15 = vmul.f32 %v1205_v21, %v297_v1  ;;  %v372_v16 = vmul.f32 %v1205_v21, %v305_v2 }
  0xbf   : > { %v441_v19 = vmax.f32 %v433_v7, 0.0  ;;  %v434_v20 = vmax.f32 %v418_v4, %v426_v8  ;;  %v395_v22 = vadd.f32 %v387_v9, %v1223_v39  ;;  %v411_v23 = vadd.f32 %v403_v10, %v1223_v39 }
  0xc0   : > { %448 = vst [vmem:[%s1264_s26] sm:$0xff] %v440_v13  ;;  %v364_v25 = vadd.f32 %v1223_v39, %v350_v15  ;;  %v380_v26 = vadd.f32 %v372_v16, %v1223_v39  ;;  %v388_v27 = vmul.f32 %v602_v11, %v1205_v21  ;;  %v404_v28 = vmul.f32 %v610_v12, %v1205_v21 }
  0xc1   : > { %449 = vst [vmem:[%s1264_s26 + $0x8] sm:$0xff] %v441_v19  ;;  %v442_v30 = vmax.f32 %v434_v20, 0.0  ;;  %v427_v31 = vmax.f32 %v395_v22, %v411_v23  ;;  %v351_v32 = vmul.f32 %v1205_v21, %v298_v17  ;;  %v373_v33 = vmul.f32 %v1205_v21, %v306_v18 }
  0xc2   : > { %v396_v36 = vadd.f32 %v388_v27, %v1223_v39  ;;  %v412_v37 = vadd.f32 %v404_v28, %v1223_v39  ;;  %v420_v38 = vmax.f32 %v364_v25, %v380_v26  ;;  %v389_v40 = vmul.f32 %v603_v24, %v1205_v21 }
  0xc3   : > { %450 = vst [vmem:[%s1264_s26 + $0x10] sm:$0xff] %v442_v30  ;;  %v435_v42 = vmax.f32 %v419_v14, %v427_v31  ;;  %v365_v43 = vadd.f32 %v1223_v39, %v351_v32  ;;  %v381_v44 = vadd.f32 %v373_v33, %v1223_v39  ;;  %v405_v45 = vmul.f32 %v611_v29, %v1205_v21 }
  0xc4   : > { %v428_v47 = vmax.f32 %v396_v36, %v412_v37  ;;  %v397_v48 = vadd.f32 %v389_v40, %v1223_v39  ;;  %v352_v49 = vmul.f32 %v1205_v21, %v299_v34  ;;  %v374_v50 = vmul.f32 %v1205_v21, %v307_v35 }
  0xc5   : > { %v443_v53 = vmax.f32 %v435_v42, 0.0  ;;  %v413_v54 = vadd.f32 %v405_v45, %v1223_v39  ;;  %v421_v55 = vmax.f32 %v365_v43, %v381_v44  ;;  %v390_v56 = vmul.f32 %v604_v41, %v1205_v21 }
  0xc6   : > { %v436_v58 = vmax.f32 %v420_v38, %v428_v47  ;;  %v366_v59 = vadd.f32 %v1223_v39, %v352_v49  ;;  %v382_v60 = vadd.f32 %v374_v50, %v1223_v39  ;;  %v406_v61 = vmul.f32 %v612_v46, %v1205_v21 }
  0xc7   : > { %451 = vst [vmem:[%s1264_s26 + $0x18] sm:$0xff] %v443_v53  ;;  %v429_v63 = vmax.f32 %v397_v48, %v413_v54  ;;  %v398_v0 = vadd.f32 %v390_v56, %v1223_v39  ;;  %v353_v1 = vmul.f32 %v1205_v21, %v300_v51  ;;  %v375_v2 = vmul.f32 %v1205_v21, %v308_v52 }
  0xc8   : > { %v444_v3 = vmax.f32 %v436_v58, 0.0  ;;  %v414_v4 = vadd.f32 %v406_v61, %v1223_v39  ;;  %v422_v5 = vmax.f32 %v366_v59, %v382_v60  ;;  %v391_v6 = vmul.f32 %v605_v57, %v1205_v21 }
  0xc9   : > { %v437_v7 = vmax.f32 %v421_v55, %v429_v63  ;;  %v367_v8 = vadd.f32 %v1223_v39, %v353_v1  ;;  %v383_v9 = vadd.f32 %v375_v2, %v1223_v39  ;;  %v407_v10 = vmul.f32 %v613_v62, %v1205_v21 }
  0xca   : > { %452 = vst [vmem:[%s1264_s26 + $0x20] sm:$0xff] %v444_v3  ;;  %v430_v11 = vmax.f32 %v398_v0, %v414_v4  ;;  %v399_v12 = vadd.f32 %v391_v6, %v1223_v39 }
  0xcb   : > { %v445_v13 = vmax.f32 %v437_v7, 0.0  ;;  %v415_v14 = vadd.f32 %v407_v10, %v1223_v39  ;;  %v423_v15 = vmax.f32 %v367_v8, %v383_v9 }
  0xcc   : > { %v438_v16 = vmax.f32 %v422_v5, %v430_v11 }
  0xcd   : > { %453 = vst [vmem:[%s1264_s26 + $0x28] sm:$0xff] %v445_v13  ;;  %v431_v17 = vmax.f32 %v399_v12, %v415_v14 }
  0xce   : > { %v446_v18 = vmax.f32 %v438_v16, 0.0 }
  0xcf   : > { %v439_v19 = vmax.f32 %v423_v15, %v431_v17 }
  0xd0   : > { %454 = vst [vmem:[%s1264_s26 + $0x30] sm:$0xff] %v446_v18 }
  0xd1   : > { %v447_v21 = vmax.f32 %v439_v19, 0.0 }
  0xd3   : > { %455 = vst [vmem:[%s1264_s26 + $0x38] sm:$0xff] %v447_v21 }
  0xd4   : > { %869 = shalt.err (!%p866_p13)
}
  0xd5   : > { %s870_s13 = scalar_lea.hbm %s1319_s23, 1024  ;;  %s874_s17 = scalar_lea.hbm %s1369_s5, 2048 }
  0xd6   : > { %p871_p0 = scmp.ne.s32.totalorder %s1319_s23, %s870_s13  ;;  %p875_p9 = scmp.lt.u32.totalorder %s1319_s23, %s1369_s5 }
  0xd7   : > { %p876_p12 = scmp.lt.u32.totalorder %s874_s17, %s870_s13  ;;  %p878_p4 = scmp.lt.u32.totalorder %s870_s13, %s1319_s23 }
  0xd8   : > { %p872_p5 = pnand %p871_p0, %p1130_p1 }
  0xd9   : > { %p877_p2 = por %p876_p12, %p875_p9 }
  0xda   : > { %p873_p11 = pneg %p872_p5 }
  0xdb   : > { %p879_p6 = por %p878_p4, %p877_p2 }
  0xdd   : > { %p880_p8 = pnand %p879_p6, %p873_p11 }
  0xdf   : > { %883 = shalt.err (!%p880_p8)
}
  0xe0   : > { %s940_s11 = smov 128   ;;  %s941_s8 = smov 8  }
  0xe1   : > { %639 = dma.vmem_to_hbm [thread:$0]  (%p1130_p1), %s1313_s9, 1024, %s1319_s23, %s457_s29, %s940_s11, %s940_s11, %s941_s8  }
  0xe2 PF: > { %s485_s12 = sand.u32 1, %s918_s18   ;;  %p1387_p3 = scmp.ne.s32.totalorder %s1374_s25, 0 }
  0xe3   : > { %p1388_p7 = scmp.ge.s32.totalorder %s930_s21, 2  ;;  %s486_s7 = scalar_lea.sflag [#allocation4], %s485_s12 }
  0xe5   : > { %p659_p10 = pnand %p1388_p7, %p1387_p3 }
  0xe7   : > { %913 = dma.done.wait (!%p659_p10), %s486_s7, 1024  }
  0xe8   : > { %915 = vsyncadd (!%p659_p10), %s486_s7, 4294966272  ;;  %p20_p13 = scmp.ge.s32.totalorder %s1120_s14, 4   ;;  %s1389_s18 = smov %s922_s19 }
  0xe9   : > { %s1390_s19 = smov %s926_s20  ;;  %s1391_s20 = smov %s1136_s16 }
  0xea   : > { %s1392_s21 = smov %s1120_s14  ;;  %22 = sbr.rel (!%p20_p13) target bundleno = 7 (0x7), region = 102 }
  0xf1   :  { %491 = vsyncpa [#allocation3], 1 }
  0xf2   :  { %493 = vsyncpa [#allocation3 + $0x1], 1 }
  0xf3   :  { %494 = vsyncpa [#allocation6], 1 }
  0xf4   :  { %495 = vsyncpa [#allocation9], 1 }
  0xf5   :  { %496 = vsyncpa [#allocation4], 1 }
  0xf6   :  { %498 = vsyncpa [#allocation4 + $0x1], 1 }

// kernel: vgg_forward.8
= control target key start
LH: loop header
LB: loop body
LE: loop exit
PB: predicated region body
PF: predicated region fallthrough
CT: control target
= control target key end

     0   :  { %8 = vsyncpa [#allocation3], 0  ;;  %s3364_s0 = inlined_call_operand.hbm [shape: f32[2,10,10,128], index: 0, kind: input, shape index: {}]   ;;  %s3365_s1 = inlined_call_operand.hbm [shape: f32[3,3,128,128], index: 1, kind: input, shape index: {}]   ;;  %s3366_s2 = inlined_call_operand.hbm [shape: f32[1,128], index: 2, kind: input, shape index: {}]   ;;  %s3367_s3 = inlined_call_operand.hbm [shape: f32[2,64,128], index: 3, kind: output, shape index: {}]  }
   0x1   :  { %10 = vsyncpa [#allocation3 + $0x1], 0 }
   0x2   :  { %11 = vsyncpa [#allocation6], 0 }
   0x3   :  { %12 = vsyncpa [#allocation4], 0 }
   0x4   :  { %14 = vsyncpa [#allocation4 + $0x1], 0  ;;  %s2961_s12 = smov 0   ;;  %s2963_s13 = smov 0  }
   0x5   :  { %s2965_s14 = smov 0   ;;  %s2967_s15 = smov 0  }
   0x6   :  { %s2969_s16 = smov 0   ;;  %s2971_s17 = smov 0  }
   0x7 LB: > { %s1623_s18 = sadd.s32 4294967295, %s2931_s17   ;;  %s1624_s19 = sadd.s32 4294967294, %s2931_s17   ;;  %s2931_s17 = sphi %s2971_s17, %s20_s17   ;;  %s2927_s16 = sphi %s2969_s16, %s3389_s16   ;;  %s2923_s15 = sphi %s2967_s15, %s3388_s15   ;;  %s2919_s14 = sphi %s2965_s14, %s3387_s14   ;;  %s2915_s13 = sphi %s2963_s13, %s3386_s13   ;;  %s2911_s12 = sphi %s2961_s12, %s3385_s12  }
   0x8   : > { %p52_p0 = scmp.ne.s32.totalorder %s2915_s13, %s2911_s12  ;;  %p2995_p1 = scmp.eq.s32.totalorder %s1623_s18, 0 }
   0x9   : > { %p2999_p2 = scmp.eq.s32.totalorder %s1623_s18, 1  ;;  %p136_p3 = scmp.eq.s32.totalorder %s1624_s19, 1 }
   0xa   : > { %s3372_s20 = scalar_select %p2995_p1, 1, 0 }
   0xb   : > { %p3005_p4 = por %p2995_p1, %p52_p0  ;;  %p1625_p5 = scmp.ge.s32.totalorder %s2931_s17, 1 }
   0xc   : > { %p3010_p6 = por %p136_p3, %p52_p0  ;;  %p143_p7 = scmp.lt.s32.totalorder %s2931_s17, 3 }
   0xd   : > { %s3374_s22 = scalar_select %p3005_p4, 1, 0 }
   0xe   : > { %s3375_s23 = scalar_select %p3010_p6, 1, 0 }
   0xf   : > { %p3015_p8 = pnand %p1625_p5, %p143_p7  ;;  %s2933_s25 = smov [#allocation5]  }
  0x10   : > { %s157_s26 = sshll.u32 %s2933_s25, 4  ;;  %s2934_s28 = smov [#allocation7]   ;;  %s3019_s26 = int_to_ptr.vmem [resolvable:$true] %s157_s26 }
  0x11   : > { %p2684_p9 = pneg %p3015_p8  ;;  %s173_s29 = sshll.u32 %s2934_s28, 4  ;;  %s3030_s29 = int_to_ptr.vmem [resolvable:$true] %s173_s29 }
  0x12   : > { %s2759_s5 = scalar_lea.hbm %s3365_s1, 18432 }
  0x13   : > { %p3026_p11 = pnand %p2684_p9, %p2995_p1  ;;  %p2760_p12 = scmp.ne.s32.totalorder %s3365_s1, %s2759_s5 }
  0x14   : > { %p2766_p5 = scmp.lt.u32.totalorder %s2759_s5, %s3365_s1 }
  0x15   : > { %p2761_p13 = pneg %p3026_p11 }
  0x17   : > { %p2762_p0 = pnand %p2761_p13, %p2760_p12 }
  0x19   : > { %p2763_p3 = pneg %p2762_p0 }
  0x1b   : > { %p2768_p7 = pnand %p2766_p5, %p2763_p3 }
  0x1d   : > { %2771 = shalt.err (!%p2768_p7)
}
  0x1e   : > { %s2772_s10 = scalar_lea.vmem %s3019_s26, 18432  ;;  %p2780_p1 = scmp.lt.s32.totalorder %s3019_s26, %s3019_s26 }
  0x1f   : > { %p2773_p9 = scmp.ne.s32.totalorder %s3019_s26, %s2772_s10  ;;  %p2781_p12 = scmp.lt.s32.totalorder %s2772_s10, %s2772_s10 }
  0x21   : > { %p2775_p10 = pnand %p2773_p9, %p2761_p13  ;;  %p2782_p0 = por %p2781_p12, %p2780_p1 }
  0x23   : > { %p2776_p6 = pneg %p2775_p10 }
  0x25   : > { %p2783_p4 = pnand %p2782_p0, %p2776_p6 }
  0x27   : > { %2786 = shalt.err (!%p2783_p4)
}
  0x28   : > { %s2935_s11 = smov 128   ;;  %s2936_s18 = smov 8  }
  0x29   : > { %2687 = dma.hbm_to_vmem [thread:$0]  (!%p3026_p11), %s3365_s1, 18432, %s3019_s26, [#allocation6], %s2935_s11, %s2935_s11, %s2936_s18  }
  0x2a   : > { %s2787_s4 = scalar_lea.hbm %s3366_s2, 16 }
  0x2b   : > { %p2788_p1 = scmp.ne.s32.totalorder %s3366_s2, %s2787_s4  ;;  %p2794_p10 = scmp.lt.u32.totalorder %s2787_s4, %s3366_s2 }
  0x2d   : > { %p2790_p4 = pnand %p2788_p1, %p2761_p13 }
  0x2f   : > { %p2791_p6 = pneg %p2790_p4 }
  0x31   : > { %p2796_p3 = pnand %p2794_p10, %p2791_p6 }
  0x33   : > { %2799 = shalt.err (!%p2796_p3)
}
  0x34   : > { %s2800_s26 = scalar_lea.vmem %s3030_s29, 16  ;;  %s2807_s9 = scalar_lea.vmem %s3030_s29, 32 }
  0x35   : > { %p2801_p5 = scmp.ne.s32.totalorder %s3030_s29, %s2800_s26  ;;  %p2808_p12 = scmp.lt.s32.totalorder %s3030_s29, %s3030_s29 }
  0x36   : > { %p2809_p0 = scmp.lt.s32.totalorder %s2807_s9, %s2800_s26 }
  0x37   : > { %p2803_p7 = pnand %p2801_p5, %p2761_p13 }
  0x38   : > { %p2810_p1 = por %p2809_p0, %p2808_p12 }
  0x39   : > { %p2804_p9 = pneg %p2803_p7 }
  0x3b   : > { %p2811_p4 = pnand %p2810_p1, %p2804_p9 }
  0x3d   : > { %2814 = shalt.err (!%p2811_p4)
}
  0x3e   : > { %2690 = dma.hbm_to_vmem [thread:$0]  (!%p3026_p11), %s3366_s2, 16, %s3030_s29, [#allocation6]  }
  0x3f   : > { %s29_s25 = sadd.s32 1, %s2927_s16  ;;  %s39_s28 = sadd.s32 1, %s2919_s14 }
  0x40   : > { %p30_p13 = scmp.ge.s32.totalorder %s29_s25, 2  ;;  %p46_p6 = scmp.ne.s32.totalorder %s2919_s14, %s2915_s13 }
  0x41   : > { %p47_p10 = scmp.eq.s32.totalorder %s2931_s17, 0  ;;  %p2701_p3 = scmp.lt.s32.totalorder %s2931_s17, 2 }
  0x42   : > { %s3391_s25 = smov (%p30_p13, %s29_s25), 0  ;;  %p3098_p7 = por %p2999_p2, %p46_p6 }
  0x43   : > { %p48_p5 = por %p47_p10, %p46_p6  ;;  %s36_s30 = ssub.s32 %s2927_s16, %s3391_s25 }
  0x44   : > { %s3378_s27 = scalar_select %p3098_p7, 1, 0 }
  0x45   : > { %s184_s4 = sand.u32 1, %s2919_s14   ;;  %p37_p9 = scmp.eq.s32.totalorder %s36_s30, 0 }
  0x46   : > { %s2669_s29 = smul.u32 160, %s184_s4  ;;  %p3105_p11 = pnand %p2701_p3, %p48_p5 }
  0x47   : > { %s3110_s6 = scalar_select %p37_p9, %s2919_s14, %s39_s28  }
  0x48   : > { %s2670_s7 = smul.u32 2560, %s2927_s16  ;;  %s188_s8 = scalar_lea.vmem [#allocation2], %s2669_s29 }
  0x49   : > { %s195_s26 = sshll.u32 %s188_s8, 4  ;;  %s3120_s19 = scalar_lea.sflag [#allocation3], %s184_s4  ;;  %s3118_s26 = int_to_ptr.vmem [resolvable:$true] %s195_s26 }
  0x4a   : > { %s3116_s10 = scalar_lea.hbm %s3364_s0, %s2670_s7  ;;  %p2817_p12 = pneg %p3105_p11 }
  0x4b   : > { %s2815_s30 = scalar_lea.hbm %s3116_s10, 2560  ;;  %s2820_s7 = scalar_lea.hbm %s3364_s0, 5120 }
  0x4c   : > { %p2816_p2 = scmp.ne.s32.totalorder %s3116_s10, %s2815_s30  ;;  %p2821_p4 = scmp.lt.u32.totalorder %s3116_s10, %s3364_s0 }
  0x4d   : > { %p2822_p13 = scmp.lt.u32.totalorder %s2820_s7, %s2815_s30  ;;  %p2824_p10 = scmp.lt.u32.totalorder %s2815_s30, %s3116_s10 }
  0x4e   : > { %p2818_p0 = pnand %p2817_p12, %p2816_p2 }
  0x4f   : > { %p2823_p6 = por %p2822_p13, %p2821_p4 }
  0x50   : > { %p2819_p1 = pneg %p2818_p0 }
  0x51   : > { %p2825_p3 = por %p2824_p10, %p2823_p6 }
  0x53   : > { %p2826_p5 = pnand %p2825_p3, %p2819_p1 }
  0x55   : > { %2829 = shalt.err (!%p2826_p5)
}
  0x56   : > { %s2830_s4 = scalar_lea.vmem %s3118_s26, 2560  ;;  %s2937_s9 = smov [#allocation2]  }
  0x57   : > { %p2831_p9 = scmp.ne.s32.totalorder %s3118_s26, %s2830_s4  ;;  %s2835_s28 = sshll.u32 %s2937_s9, 4  ;;  %s2836_s28 = int_to_ptr.vmem [resolvable:$false] %s2835_s28 }
  0x58   : > { %s2837_s29 = scalar_lea.vmem %s2836_s28, 5120  ;;  %p2838_p7 = scmp.lt.s32.totalorder %s3118_s26, %s2836_s28 }
  0x59   : > { %p2833_p2 = pnand %p2831_p9, %p2817_p12  ;;  %p2839_p4 = scmp.lt.s32.totalorder %s2837_s29, %s2830_s4 }
  0x5b   : > { %p2834_p0 = pneg %p2833_p2  ;;  %p2840_p13 = por %p2839_p4, %p2838_p7 }
  0x5d   : > { %p2841_p6 = pnand %p2840_p13, %p2834_p0 }
  0x5f   : > { %2844 = shalt.err (!%p2841_p6)
}
  0x60   : > { %2694 = dma.hbm_to_vmem [thread:$0]  (!%p3105_p11), %s3116_s10, 2560, %s3118_s26, %s3120_s19, %s2935_s11, %s2935_s11, %s2936_s18  }
  0x61   : > { %207 = sbr.rel (%p3015_p8) target bundleno = 510 (0x1fe), region = 32  ;;  %s3154_s30 = sand.u32 (!%p3015_p8), 1, %s2915_s13  }
  0x62   : > { %s2671_s7 = smul.u32 (!%p3015_p8), 160, %s3154_s30  ;;  %s210_s8 = scalar_lea.sflag (!%p3015_p8), [#allocation3], %s3154_s30 }
  0x63   : > { %p3380_p7 = scmp.ne.s32.totalorder (!%p3015_p8), %s3374_s22, 0 }
  0x64   : > { %s3158_s21 = scalar_lea.vmem (!%p3015_p8), [#allocation2], %s2671_s7 }
  0x68   : > { %2898 = dma.done.wait (%p3380_p7), %s210_s8, 2560  }
  0x69   : > { %2900 = vsyncadd (%p3380_p7), %s210_s8, 4294964736  ;;  %p3381_p11 = scmp.ne.s32.totalorder %s3372_s20, 0 }
  0x6b   : > { %2902 = dma.done.wait (%p3381_p11), [#allocation6], 18448  }
  0x6c   : > { %2904 = vsyncadd (%p3381_p11), [#allocation6], 4294948848  ;;  %v277_v0 = vld [vmem:[#allocation5 + $0x80] sm:$0xff]  ;;  %v278_v1 = vld [vmem:[#allocation5 + $0x88] sm:$0xff]  ;;  %s1633_s20 = sshll.u32 %s3154_s30, 6  ;;  %s1688_s11 = sshll.u32 %s2923_s15, 10 }
  0x6d   : > { %v789_v2 = vld [vmem:[#allocation5 + $0x200] sm:$0xff]  ;;  %v2301_v3 = vpack.c.bf16 %v278_v1, %v277_v0  ;;  %v790_v4 = vld [vmem:[#allocation5 + $0x208] sm:$0xff]  ;;  %v279_v5 = vld [vmem:[#allocation5 + $0x90] sm:$0xff]  ;;  %s243_s22 = scalar_lea.vmem [#allocation8], %s1633_s20  ;;  %s3315_s15 = scalar_lea.hbm %s3367_s3, %s1688_s11 }
  0x6e   : > { %v280_v6 = vld [vmem:[#allocation5 + $0x98] sm:$0xff]  ;;  %v2429_v7 = vpack.c.bf16 %v790_v4, %v789_v2  ;;  %v791_v9 = vld [vmem:[#allocation5 + $0x210] sm:$0xff]  ;;  %v281_v11 = vld [vmem:[#allocation5 + $0xa0] sm:$0xff]  ;;  %s1517_s24 = sshll.u32 %s243_s22, 4  ;;  %s1503_s26 = scalar_lea.sflag [#allocation4], %s3154_s30  ;;  %s3310_s24 = int_to_ptr.vmem [resolvable:$true] %s1517_s24 }
  0x6f   : > { %v2305_v8 = vpack.c.bf16 %v280_v6, %v279_v5  ;;  %v792_v10 = vld [vmem:[#allocation5 + $0x218] sm:$0xff]  ;;  %2302 = vmatprep.subr.bf16.mxu1 %v2301_v3  ;;  %v282_v13 = vld [vmem:[#allocation5 + $0xa8] sm:$0xff]  ;;  %v793_v14 = vld [vmem:[#allocation5 + $0x220] sm:$0xff]  ;;  %s2845_s10 = scalar_lea.vmem %s3310_s24, 1024  ;;  %p3382_p12 = scmp.ne.s32.totalorder %s3378_s27, 0 }
  0x70   : > { %v2433_v12 = vpack.c.bf16 %v792_v10, %v791_v9  ;;  %v794_v15 = vld [vmem:[#allocation5 + $0x228] sm:$0xff]  ;;  %2430 = vmatprep.subr.bf16.mxu0 %v2429_v7  ;;  %2304 = vmatpush3.bf16.msra.mxu1 %v2301_v3  ;;  %v2309_v16 = vpack.c.bf16 %v282_v13, %v281_v11  ;;  %v283_v18 = vld [vmem:[#allocation5 + $0xb0] sm:$0xff]  ;;  %v284_v19 = vld [vmem:[#allocation5 + $0xb8] sm:$0xff]  ;;  %p2846_p8 = scmp.ne.s32.totalorder %s3310_s24, %s2845_s10  ;;  %s2938_s19 = smov [#allocation8]  }
  0x71   : > { %2432 = vmatpush3.bf16.msra.mxu0 %v2429_v7  ;;  %2306 = vmatprep.subr.bf16.mxu1 %v2305_v8  ;;  %v2437_v17 = vpack.c.bf16 %v794_v15, %v793_v14  ;;  %v795_v20 = vld [vmem:[#allocation5 + $0x230] sm:$0xff]  ;;  %v796_v21 = vld [vmem:[#allocation5 + $0x238] sm:$0xff]  ;;  %v2313_v22 = vpack.c.bf16 %v284_v19, %v283_v18  ;;  %v285_v24 = vld [vmem:[#allocation5 + $0xc0] sm:$0xff]  ;;  %s2849_s4 = sshll.u32 %s2938_s19, 4  ;;  %s2850_s4 = int_to_ptr.vmem [resolvable:$false] %s2849_s4 }
  0x72   : > { %2434 = vmatprep.subr.bf16.mxu0 %v2433_v12  ;;  %v2441_v23 = vpack.c.bf16 %v796_v21, %v795_v20  ;;  %v286_v25 = vld [vmem:[#allocation5 + $0xc8] sm:$0xff]  ;;  %v797_v27 = vld [vmem:[#allocation5 + $0x240] sm:$0xff]  ;;  %v1642_v29 = vld [vmem:[%s3158_s21 + $0x11] sm:$0xff]  ;;  %p2847_p1 = pnand %p2846_p8, %p3382_p12  ;;  %s2851_s9 = scalar_lea.vmem %s2850_s4, 2048 }
  0x73   : > { %v268_v26 = vld [vmem:[%s3158_s21 + $0x1] sm:$0xff]  ;;  %2113 = vmatprep.mubr.f32.mxu0 %v1642_v29  ;;  %v2317_v30 = vpack.c.bf16 %v286_v25, %v285_v24  ;;  %v287_v32 = vld [vmem:[#allocation5 + $0xd0] sm:$0xff]  ;;  %v288_v33 = vld [vmem:[#allocation5 + $0xd8] sm:$0xff]  ;;  %p2852_p3 = scmp.lt.s32.totalorder %s3310_s24, %s2850_s4  ;;  %p2853_p5 = scmp.lt.s32.totalorder %s2851_s9, %s2845_s10 }
  0x74   : > { %2308 = vmatpush3.bf16.msra.mxu1 %v2305_v8  ;;  %v798_v28 = vld [vmem:[#allocation5 + $0x248] sm:$0xff]  ;;  %1937 = vmatprep.mubr.f32.mxu1 %v268_v26  ;;  %v799_v34 = vld [vmem:[#allocation5 + $0x250] sm:$0xff]  ;;  %v800_v35 = vld [vmem:[#allocation5 + $0x258] sm:$0xff]  ;;  %v2321_v36 = vpack.c.bf16 %v288_v33, %v287_v32  ;;  %p2848_p10 = pneg %p2847_p1 }
  0x75   : > { %2436 = vmatpush3.bf16.msra.mxu0 %v2433_v12  ;;  %2310 = vmatprep.subr.bf16.mxu1 %v2309_v16  ;;  %v2445_v31 = vpack.c.bf16 %v798_v28, %v797_v27  ;;  %v2449_v37 = vpack.c.bf16 %v800_v35, %v799_v34  ;;  %v289_v38 = vld [vmem:[#allocation5 + $0xe0] sm:$0xff]  ;;  %v290_v39 = vld [vmem:[#allocation5 + $0xe8] sm:$0xff]  ;;  %v291_v44 = vld [vmem:[#allocation5 + $0xf0] sm:$0xff]  ;;  %p2854_p9 = por %p2853_p5, %p2852_p3 }
  0x76   : > { %2438 = vmatprep.subr.bf16.mxu0 %v2437_v17  ;;  %v801_v40 = vld [vmem:[#allocation5 + $0x260] sm:$0xff]  ;;  %v802_v41 = vld [vmem:[#allocation5 + $0x268] sm:$0xff]  ;;  %v2325_v42 = vpack.c.bf16 %v290_v39, %v289_v38  ;;  %v292_v45 = vld [vmem:[#allocation5 + $0xf8] sm:$0xff] }
  0x77   : > { %v2453_v43 = vpack.c.bf16 %v802_v41, %v801_v40  ;;  %v803_v46 = vld [vmem:[#allocation5 + $0x270] sm:$0xff]  ;;  %v804_v47 = vld [vmem:[#allocation5 + $0x278] sm:$0xff]  ;;  %v2329_v48 = vpack.c.bf16 %v292_v45, %v291_v44  ;;  %v252_v50 = vld [vmem:[#allocation5] sm:$0xff]  ;;  %p2855_p2 = pnand %p2854_p9, %p2848_p10 }
  0x78   : > { %2312 = vmatpush3.bf16.msra.mxu1 %v2309_v16  ;;  %v2457_v49 = vpack.c.bf16 %v804_v47, %v803_v46  ;;  %v253_v51 = vld [vmem:[#allocation5 + $0x8] sm:$0xff]  ;;  %v927_v52 = vld [vmem:[#allocation5 + $0x280] sm:$0xff]  ;;  %v254_v56 = vld [vmem:[#allocation5 + $0x10] sm:$0xff] }
  0x79   : > { %2440 = vmatpush3.bf16.msra.mxu0 %v2437_v17  ;;  %2314 = vmatprep.subr.bf16.mxu1 %v2313_v22  ;;  %v928_v53 = vld [vmem:[#allocation5 + $0x288] sm:$0xff]  ;;  %v2333_v54 = vpack.c.bf16 %v253_v51, %v252_v50  ;;  %v255_v57 = vld [vmem:[#allocation5 + $0x18] sm:$0xff]  ;;  %v929_v58 = vld [vmem:[#allocation5 + $0x290] sm:$0xff] }
  0x7a   : > { %2442 = vmatprep.subr.bf16.mxu0 %v2441_v23  ;;  %v2461_v55 = vpack.c.bf16 %v928_v53, %v927_v52  ;;  %v930_v59 = vld [vmem:[#allocation5 + $0x298] sm:$0xff]  ;;  %v3171_v60 = vld [vmem:[%s3158_s21 + $0x21] sm:$0xff]  ;;  %v2337_v61 = vpack.c.bf16 %v255_v57, %v254_v56  ;;  %v258_v7 = vld [vmem:[#allocation5 + $0x30] sm:$0xff] }
  0x7b   : > { %v2465_v62 = vpack.c.bf16 %v930_v59, %v929_v58  ;;  %v256_v63 = vld [vmem:[#allocation5 + $0x20] sm:$0xff]  ;;  %v257_v0 = vld [vmem:[#allocation5 + $0x28] sm:$0xff]  ;;  %v3175_v3 = vld [vmem:[%s3158_s21 + $0x31] sm:$0xff] }
  0x7c   : > { %2316 = vmatpush3.bf16.msra.mxu1 %v2313_v22  ;;  %v931_v1 = vld [vmem:[#allocation5 + $0x2a0] sm:$0xff]  ;;  %v932_v2 = vld [vmem:[#allocation5 + $0x2a8] sm:$0xff]  ;;  %v2341_v4 = vpack.c.bf16 %v257_v0, %v256_v63  ;;  %v259_v8 = vld [vmem:[#allocation5 + $0x38] sm:$0xff] }
  0x7d   : > { %2444 = vmatpush3.bf16.msra.mxu0 %v2441_v23  ;;  %2318 = vmatprep.subr.bf16.mxu1 %v2317_v30  ;;  %v3178_v5 = vld [vmem:[%s3158_s21 + $0x41] sm:$0xff]  ;;  %v2469_v6 = vpack.c.bf16 %v932_v2, %v931_v1  ;;  %v933_v9 = vld [vmem:[#allocation5 + $0x2b0] sm:$0xff]  ;;  %v934_v10 = vld [vmem:[#allocation5 + $0x2b8] sm:$0xff]  ;;  %v2345_v12 = vpack.c.bf16 %v259_v8, %v258_v7 }
  0x7e   : > { %2446 = vmatprep.subr.bf16.mxu0 %v2445_v31  ;;  %v3185_v11 = vld [vmem:[%s3158_s21 + $0x51] sm:$0xff]  ;;  %v3188_v13 = vld [vmem:[%s3158_s21 + $0x61] sm:$0xff]  ;;  %v2473_v14 = vpack.c.bf16 %v934_v10, %v933_v9 }
  0x7f   : > { %v260_v15 = vld [vmem:[#allocation5 + $0x40] sm:$0xff]  ;;  %v261_v16 = vld [vmem:[#allocation5 + $0x48] sm:$0xff]  ;;  %v3195_v19 = vld [vmem:[%s3158_s21 + $0x71] sm:$0xff] }
  0x80   : > { %2320 = vmatpush3.bf16.msra.mxu1 %v2317_v30  ;;  %v935_v17 = vld [vmem:[#allocation5 + $0x2c0] sm:$0xff]  ;;  %v936_v18 = vld [vmem:[#allocation5 + $0x2c8] sm:$0xff]  ;;  %v2349_v20 = vpack.c.bf16 %v261_v16, %v260_v15  ;;  %v262_v23 = vld [vmem:[#allocation5 + $0x50] sm:$0xff] }
  0x81   : > { %2448 = vmatpush3.bf16.msra.mxu0 %v2445_v31  ;;  %2322 = vmatprep.subr.bf16.mxu1 %v2321_v36  ;;  %v3198_v21 = vld [vmem:[%s3158_s21 + $0x81] sm:$0xff]  ;;  %v2477_v22 = vpack.c.bf16 %v936_v18, %v935_v17  ;;  %v263_v24 = vld [vmem:[#allocation5 + $0x58] sm:$0xff]  ;;  %v937_v25 = vld [vmem:[#allocation5 + $0x2d0] sm:$0xff] }
  0x82   : > { %2450 = vmatprep.subr.bf16.mxu0 %v2449_v37  ;;  %v938_v26 = vld [vmem:[#allocation5 + $0x2d8] sm:$0xff]  ;;  %v244_v27 = vld [vmem:[%s3158_s21] sm:$0xff]  ;;  %v265_v32 = vld [vmem:[#allocation5 + $0x68] sm:$0xff] }
  0x83   : > { %v3206_v28 = vld [vmem:[%s3158_s21 + $0x12] sm:$0xff]  ;;  %v2481_v30 = vpack.c.bf16 %v938_v26, %v937_v25  ;;  %v264_v31 = vld [vmem:[#allocation5 + $0x60] sm:$0xff]  ;;  %v940_v34 = vld [vmem:[#allocation5 + $0x2e8] sm:$0xff] }
  0x84   : > { %2324 = vmatpush3.bf16.msra.mxu1 %v2321_v36  ;;  %v939_v33 = vld [vmem:[#allocation5 + $0x2e0] sm:$0xff]  ;;  %v2357_v35 = vpack.c.bf16 %v265_v32, %v264_v31  ;;  %v267_v38 = vld [vmem:[#allocation5 + $0x78] sm:$0xff]  ;;  %v941_v39 = vld [vmem:[#allocation5 + $0x2f0] sm:$0xff] }
  0x85   : > { %2452 = vmatpush3.bf16.msra.mxu0 %v2449_v37  ;;  %2326 = vmatprep.subr.bf16.mxu1 %v2325_v42  ;;  %v2485_v36 = vpack.c.bf16 %v940_v34, %v939_v33  ;;  %v266_v37 = vld [vmem:[#allocation5 + $0x70] sm:$0xff]  ;;  %v942_v40 = vld [vmem:[#allocation5 + $0x2f8] sm:$0xff]  ;;  %v513_v44 = vld [vmem:[#allocation5 + $0x108] sm:$0xff] }
  0x86   : > { %2454 = vmatprep.subr.bf16.mxu0 %v2453_v43  ;;  %v2361_v41 = vpack.c.bf16 %v267_v38, %v266_v37  ;;  %v1066_v45 = vld [vmem:[#allocation5 + $0x300] sm:$0xff]  ;;  %v1067_v46 = vld [vmem:[#allocation5 + $0x308] sm:$0xff]  ;;  %v515_v50 = vld [vmem:[#allocation5 + $0x118] sm:$0xff] }
  0x87   : > { %v1068_v51 = vld [vmem:[#allocation5 + $0x310] sm:$0xff]  ;;  %v1069_v52 = vld [vmem:[#allocation5 + $0x318] sm:$0xff]  ;;  %v516_v57 = vld [vmem:[#allocation5 + $0x120] sm:$0xff] }
  0x88   : > { %2328 = vmatpush3.bf16.msra.mxu1 %v2325_v42  ;;  %v2489_v42 = vpack.c.bf16 %v942_v40, %v941_v39  ;;  %v3210_v53 = vld [vmem:[%s3158_s21 + $0x10] sm:$0xff]  ;;  %v2497_v56 = vpack.c.bf16 %v1069_v52, %v1068_v51  ;;  %v517_v58 = vld [vmem:[#allocation5 + $0x128] sm:$0xff]  ;;  %v1070_v59 = vld [vmem:[#allocation5 + $0x320] sm:$0xff] }
  0x89   : > { %2456 = vmatpush3.bf16.msra.mxu0 %v2453_v43  ;;  %2330 = vmatprep.subr.bf16.mxu1 %v2329_v48  ;;  %v512_v43 = vld [vmem:[#allocation5 + $0x100] sm:$0xff]  ;;  %v3221_v63 = vld [vmem:[%s3158_s21 + $0x32] sm:$0xff]  ;;  %v2373_v1 = vpack.c.bf16 %v517_v58, %v516_v57  ;;  %v525_v39 = vld [vmem:[#allocation5 + $0x168] sm:$0xff] }
  0x8a   : > { %2458 = vmatprep.subr.bf16.mxu0 %v2457_v49  ;;  %v2365_v47 = vpack.c.bf16 %v513_v44, %v512_v43  ;;  %v3224_v0 = vld [vmem:[%s3158_s21 + $0x30] sm:$0xff]  ;;  %v3227_v2 = vld [vmem:[%s3158_s21 + $0x42] sm:$0xff]  ;;  %v519_v7 = vld [vmem:[#allocation5 + $0x138] sm:$0xff] }
  0x8b   : > { %v1072_v8 = vld [vmem:[#allocation5 + $0x330] sm:$0xff]  ;;  %v1073_v9 = vld [vmem:[#allocation5 + $0x338] sm:$0xff]  ;;  %v3233_v10 = vld [vmem:[%s3158_s21 + $0x40] sm:$0xff] }
  0x8c   : > { %2332 = vmatpush3.bf16.msra.mxu1 %v2329_v48  ;;  %v2493_v48 = vpack.c.bf16 %v1067_v46, %v1066_v45  ;;  %v3243_v16 = vld [vmem:[%s3158_s21 + $0x62] sm:$0xff]  ;;  %v2505_v17 = vpack.c.bf16 %v1073_v9, %v1072_v8  ;;  %v3253_v25 = vld [vmem:[%s3158_s21 + $0x72] sm:$0xff] }
  0x8d   : > { %2460 = vmatpush3.bf16.msra.mxu0 %v2457_v49  ;;  %2334 = vmatprep.subr.bf16.mxu1 %v2333_v54  ;;  %v514_v49 = vld [vmem:[#allocation5 + $0x110] sm:$0xff]  ;;  %v520_v18 = vld [vmem:[#allocation5 + $0x140] sm:$0xff]  ;;  %v523_v32 = vld [vmem:[#allocation5 + $0x158] sm:$0xff] }
  0x8e   : > { %2462 = vmatprep.subr.bf16.mxu0 %v2461_v55  ;;  %v3256_v26 = vld [vmem:[%s3158_s21 + $0x70] sm:$0xff]  ;;  %v1077_v34 = vld [vmem:[#allocation5 + $0x358] sm:$0xff]  ;;  %v524_v38 = vld [vmem:[#allocation5 + $0x160] sm:$0xff] }
  0x8f   : > { %1938 = vmatmul.mubr.f32.vlgmr.msra.gmra.mrb[0].mxu1 %v1642_v29  ;;  %v2353_v29 = vpack.c.bf16 %v263_v24, %v262_v23  ;;  %v1075_v23 = vld [vmem:[#allocation5 + $0x348] sm:$0xff]  ;;  %v3249_v24 = vld [vmem:[%s3158_s21 + $0x60] sm:$0xff]  ;;  %v522_v31 = vld [vmem:[#allocation5 + $0x150] sm:$0xff] }
  0x90   : > { %2336 = vmatpush3.bf16.msra.mxu1 %v2333_v54  ;;  %2114 = vmatmul.mubr.f32.vlgmr.msra.gmra.mrb[0].mxu0 %v3171_v60  ;;  %v3213_v54 = vld [vmem:[%s3158_s21 + $0x22] sm:$0xff]  ;;  %v1076_v33 = vld [vmem:[#allocation5 + $0x350] sm:$0xff]  ;;  %v527_v45 = vld [vmem:[#allocation5 + $0x178] sm:$0xff] }
  0x91   : > { %2464 = vmatpush3.bf16.msra.mxu0 %v2461_v55  ;;  %2338 = vmatprep.subr.bf16.mxu1 %v2337_v61  ;;  %v2369_v55 = vpack.c.bf16 %v515_v50, %v514_v49  ;;  %v2513_v37 = vpack.c.bf16 %v1077_v34, %v1076_v33  ;;  %v1078_v40 = vld [vmem:[#allocation5 + $0x360] sm:$0xff]  ;;  %v526_v44 = vld [vmem:[#allocation5 + $0x170] sm:$0xff]  ;;  %v652_v51 = vld [vmem:[#allocation5 + $0x188] sm:$0xff] }
  0x92   : > { %2466 = vmatprep.subr.bf16.mxu0 %v2465_v62  ;;  %1940 = vmatprep.mubr.f32.mxu1 %v3171_v60  ;;  %v1080_v46 = vld [vmem:[#allocation5 + $0x370] sm:$0xff]  ;;  %v651_v50 = vld [vmem:[#allocation5 + $0x180] sm:$0xff]  ;;  %v656_v8 = vld [vmem:[#allocation5 + $0x1a8] sm:$0xff] }
  0x93   : > { %2116 = vmatprep.mubr.f32.mxu0 %v3175_v3  ;;  %1941 = vmatmul.mubr.f32.gmra.mrb[2].mxu1 %v3175_v3  ;;  %v1204_v52 = vld [vmem:[#allocation5 + $0x380] sm:$0xff]  ;;  %v653_v58 = vld [vmem:[#allocation5 + $0x190] sm:$0xff]  ;;  %v1213_v34 = vld [vmem:[#allocation5 + $0x3c8] sm:$0xff] }
  0x94   : > { %2340 = vmatpush3.bf16.msra.mxu1 %v2337_v61  ;;  %2117 = vmatmul.mubr.f32.gmra.mrb[2].mxu0 %v3178_v5  ;;  %v1071_v61 = vld [vmem:[#allocation5 + $0x328] sm:$0xff]  ;;  %v1208_v9 = vld [vmem:[#allocation5 + $0x3a0] sm:$0xff] }
  0x95   : > { %2468 = vmatpush3.bf16.msra.mxu0 %v2465_v62  ;;  %2342 = vmatprep.subr.bf16.mxu1 %v2341_v4  ;;  %v3217_v62 = vld [vmem:[%s3158_s21 + $0x20] sm:$0xff] }
  0x96   : > { %2470 = vmatprep.subr.bf16.mxu0 %v2469_v6  ;;  %1943 = vmatprep.mubr.f32.mxu1 %v3178_v5  ;;  %v1212_v33 = vld [vmem:[#allocation5 + $0x3c0] sm:$0xff] }
  0x97   : > { %2119 = vmatprep.mubr.f32.mxu0 %v3185_v11  ;;  %1944 = vmatmul.mubr.f32.gmra.mrb[4].mxu1 %v3185_v11 }
  0x98   : > { %2344 = vmatpush3.bf16.msra.mxu1 %v2341_v4  ;;  %2120 = vmatmul.mubr.f32.gmra.mrb[4].mxu0 %v3188_v13  ;;  %v2501_v4 = vpack.c.bf16 %v1071_v61, %v1070_v59  ;;  %v654_v59 = vld [vmem:[#allocation5 + $0x198] sm:$0xff]  ;;  %v1206_v61 = vld [vmem:[#allocation5 + $0x390] sm:$0xff] }
  0x99   : > { %2472 = vmatpush3.bf16.msra.mxu0 %v2469_v6  ;;  %2346 = vmatprep.subr.bf16.mxu1 %v2345_v12  ;;  %v518_v6 = vld [vmem:[#allocation5 + $0x130] sm:$0xff] }
  0x9a   : > { %2474 = vmatprep.subr.bf16.mxu0 %v2473_v14  ;;  %1946 = vmatprep.mubr.f32.mxu1 %v3188_v13  ;;  %v2377_v15 = vpack.c.bf16 %v519_v7, %v518_v6  ;;  %v655_v7 = vld [vmem:[#allocation5 + $0x1a0] sm:$0xff] }
  0x9b   : > { %2122 = vmatprep.mubr.f32.mxu0 %v3195_v19  ;;  %1947 = vmatmul.mubr.f32.gmra.mrb[6].mxu1 %v3195_v19 }
  0x9c   : > { %2348 = vmatpush3.bf16.msra.mxu1 %v2345_v12  ;;  %2123 = vmatmul.mubr.f32.gmra.mrb[6].mxu0 %v3198_v21  ;;  %v3237_v12 = vld [vmem:[%s3158_s21 + $0x52] sm:$0xff] }
  0x9d   : > { %2476 = vmatpush3.bf16.msra.mxu0 %v2473_v14  ;;  %2350 = vmatprep.subr.bf16.mxu1 %v2349_v20  ;;  %v3240_v14 = vld [vmem:[%s3158_s21 + $0x50] sm:$0xff] }
  0x9e   : > { %2478 = vmatprep.subr.bf16.mxu0 %v2477_v22  ;;  %1981 = vmatprep.mubr.f32.mxu1 %v244_v27 }
  0x9f   : > { %2157 = vmatprep.mubr.f32.mxu0 %v3206_v28 }
  0xa0   : > { %2352 = vmatpush3.bf16.msra.mxu1 %v2349_v20  ;;  %v521_v20 = vld [vmem:[#allocation5 + $0x148] sm:$0xff] }
  0xa1   : > { %2480 = vmatpush3.bf16.msra.mxu0 %v2477_v22  ;;  %2354 = vmatprep.subr.bf16.mxu1 %v2353_v29  ;;  %v1074_v22 = vld [vmem:[#allocation5 + $0x340] sm:$0xff]  ;;  %v2381_v27 = vpack.c.bf16 %v521_v20, %v520_v18  ;;  %v657_v20 = vld [vmem:[#allocation5 + $0x1b0] sm:$0xff] }
  0xa2   : > { %2482 = vmatprep.subr.bf16.mxu0 %v2481_v30 }
  0xa4   : > { %2356 = vmatpush3.bf16.msra.mxu1 %v2353_v29  ;;  %v3259_v29 = vld [vmem:[%s3158_s21 + $0x82] sm:$0xff] }
  0xa5   : > { %2484 = vmatpush3.bf16.msra.mxu0 %v2481_v30  ;;  %2358 = vmatprep.subr.bf16.mxu1 %v2357_v35  ;;  %v2509_v30 = vpack.c.bf16 %v1075_v23, %v1074_v22  ;;  %v658_v22 = vld [vmem:[#allocation5 + $0x1b8] sm:$0xff]  ;;  %v1210_v23 = vld [vmem:[#allocation5 + $0x3b0] sm:$0xff] }
  0xa6   : > { %2486 = vmatprep.subr.bf16.mxu0 %v2485_v36 }
  0xa8   : > { %2360 = vmatpush3.bf16.msra.mxu1 %v2357_v35  ;;  %v503_v35 = vld [vmem:[%s3158_s21 + $0x2] sm:$0xff] }
  0xa9   : > { %2488 = vmatpush3.bf16.msra.mxu0 %v2485_v36  ;;  %2362 = vmatprep.subr.bf16.mxu1 %v2361_v41  ;;  %v2385_v36 = vpack.c.bf16 %v523_v32, %v522_v31  ;;  %v659_v31 = vld [vmem:[#allocation5 + $0x1c0] sm:$0xff]  ;;  %v660_v32 = vld [vmem:[#allocation5 + $0x1c8] sm:$0xff] }
  0xaa   : > { %2490 = vmatprep.subr.bf16.mxu0 %v2489_v42 }
  0xac   : > { %2364 = vmatpush3.bf16.msra.mxu1 %v2361_v41  ;;  %v1079_v41 = vld [vmem:[#allocation5 + $0x368] sm:$0xff] }
  0xad   : > { %2492 = vmatpush3.bf16.msra.mxu0 %v2489_v42  ;;  %2366 = vmatprep.subr.bf16.mxu1 %v2365_v47  ;;  %v2389_v42 = vpack.c.bf16 %v525_v39, %v524_v38  ;;  %v2517_v43 = vpack.c.bf16 %v1079_v41, %v1078_v40  ;;  %v2541_v38 = vpack.c.bf16 %v1213_v34, %v1212_v33  ;;  %v661_v39 = vld [vmem:[#allocation5 + $0x1d0] sm:$0xff]  ;;  %v662_v40 = vld [vmem:[#allocation5 + $0x1d8] sm:$0xff] }
  0xae   : > { %2494 = vmatprep.subr.bf16.mxu0 %v2493_v48  ;;  %v1214_v41 = vld [vmem:[#allocation5 + $0x3d0] sm:$0xff] }
  0xaf   : > { %1982 = vmatmul.mubr.f32.vlgmr.msra.gmra.mrb[0].mxu1 %v3210_v53 }
  0xb0   : > { %2368 = vmatpush3.bf16.msra.mxu1 %v2365_v47  ;;  %2158 = vmatmul.mubr.f32.vlgmr.msra.gmra.mrb[0].mxu0 %v3213_v54  ;;  %v1081_v47 = vld [vmem:[#allocation5 + $0x378] sm:$0xff] }
  0xb1   : > { %2496 = vmatpush3.bf16.msra.mxu0 %v2493_v48  ;;  %2370 = vmatprep.subr.bf16.mxu1 %v2369_v55  ;;  %v2393_v48 = vpack.c.bf16 %v527_v45, %v526_v44  ;;  %v2521_v49 = vpack.c.bf16 %v1081_v47, %v1080_v46  ;;  %v663_v45 = vld [vmem:[#allocation5 + $0x1e0] sm:$0xff]  ;;  %v664_v46 = vld [vmem:[#allocation5 + $0x1e8] sm:$0xff] }
  0xb2   : > { %2498 = vmatprep.subr.bf16.mxu0 %v2497_v56  ;;  %1984 = vmatprep.mubr.f32.mxu1 %v3217_v62  ;;  %v1216_v47 = vld [vmem:[#allocation5 + $0x3e0] sm:$0xff] }
  0xb3   : > { %2160 = vmatprep.mubr.f32.mxu0 %v3221_v63  ;;  %1985 = vmatmul.mubr.f32.gmra.mrb[2].mxu1 %v3224_v0 }
  0xb4   : > { %2372 = vmatpush3.bf16.msra.mxu1 %v2369_v55  ;;  %2161 = vmatmul.mubr.f32.gmra.mrb[2].mxu0 %v3227_v2  ;;  %v1205_v55 = vld [vmem:[#allocation5 + $0x388] sm:$0xff] }
  0xb5   : > { %2500 = vmatpush3.bf16.msra.mxu0 %v2497_v56  ;;  %2374 = vmatprep.subr.bf16.mxu1 %v2373_v1  ;;  %v2397_v56 = vpack.c.bf16 %v652_v51, %v651_v50  ;;  %v2525_v57 = vpack.c.bf16 %v1205_v55, %v1204_v52  ;;  %v665_v51 = vld [vmem:[#allocation5 + $0x1f0] sm:$0xff]  ;;  %v666_v52 = vld [vmem:[#allocation5 + $0x1f8] sm:$0xff] }
  0xb6   : > { %2502 = vmatprep.subr.bf16.mxu0 %v2501_v4  ;;  %1987 = vmatprep.mubr.f32.mxu1 %v3233_v10  ;;  %v1218_v55 = vld [vmem:[#allocation5 + $0x3f0] sm:$0xff] }
  0xb7   : > { %2163 = vmatprep.mubr.f32.mxu0 %v3237_v12  ;;  %1988 = vmatmul.mubr.f32.gmra.mrb[4].mxu1 %v3240_v14 }
  0xb8   : > { %2376 = vmatpush3.bf16.msra.mxu1 %v2373_v1  ;;  %2164 = vmatmul.mubr.f32.gmra.mrb[4].mxu0 %v3243_v16  ;;  %v1207_v1 = vld [vmem:[#allocation5 + $0x398] sm:$0xff] }
  0xb9   : > { %2504 = vmatpush3.bf16.msra.mxu0 %v2501_v4  ;;  %2378 = vmatprep.subr.bf16.mxu1 %v2377_v15  ;;  %v2401_v4 = vpack.c.bf16 %v654_v59, %v653_v58  ;;  %v2529_v6 = vpack.c.bf16 %v1207_v1, %v1206_v61  ;;  %v1342_v58 = vld [vmem:[#allocation5 + $0x400] sm:$0xff]  ;;  %v1343_v59 = vld [vmem:[#allocation5 + $0x408] sm:$0xff]  ;;  %v1344_v61 = vld [vmem:[#allocation5 + $0x410] sm:$0xff] }
  0xba   : > { %2506 = vmatprep.subr.bf16.mxu0 %v2505_v17  ;;  %1990 = vmatprep.mubr.f32.mxu1 %v3249_v24  ;;  %v1345_v1 = vld [vmem:[#allocation5 + $0x418] sm:$0xff] }
  0xbb   : > { %2166 = vmatprep.mubr.f32.mxu0 %v3253_v25  ;;  %1991 = vmatmul.mubr.f32.gmra.mrb[6].mxu1 %v3256_v26 }
  0xbc   : > { %2380 = vmatpush3.bf16.msra.mxu1 %v2377_v15  ;;  %2167 = vmatmul.mubr.f32.gmra.mrb[6].mxu0 %v3259_v29  ;;  %v1209_v15 = vld [vmem:[#allocation5 + $0x3a8] sm:$0xff] }
  0xbd   : > { %2508 = vmatpush3.bf16.msra.mxu0 %v2505_v17  ;;  %2382 = vmatprep.subr.bf16.mxu1 %v2381_v27  ;;  %v2405_v17 = vpack.c.bf16 %v656_v8, %v655_v7  ;;  %v2533_v18 = vpack.c.bf16 %v1209_v15, %v1208_v9  ;;  %v1347_v7 = vld [vmem:[#allocation5 + $0x428] sm:$0xff]  ;;  %v1348_v9 = vld [vmem:[#allocation5 + $0x430] sm:$0xff]  ;;  %v1349_v15 = vld [vmem:[#allocation5 + $0x438] sm:$0xff] }
  0xbe   : > { %2510 = vmatprep.subr.bf16.mxu0 %v2509_v30  ;;  %2025 = vmatprep.mubr.f32.mxu1 %v503_v35  ;;  %v3278_v35 = vld [vmem:[%s3158_s21 + $0x80] sm:$0xff] }
  0xbf   : > { %2201 = vmatprep.mubr.f32.mxu0 %v3217_v62 }
  0xc0   : > { %2384 = vmatpush3.bf16.msra.mxu1 %v2381_v27  ;;  %v1211_v27 = vld [vmem:[#allocation5 + $0x3b8] sm:$0xff] }
  0xc1   : > { %2512 = vmatpush3.bf16.msra.mxu0 %v2509_v30  ;;  %2386 = vmatprep.subr.bf16.mxu1 %v2385_v36  ;;  %v2537_v30 = vpack.c.bf16 %v1211_v27, %v1210_v23 }
  0xc2   : > { %2514 = vmatprep.subr.bf16.mxu0 %v2513_v37 }
  0xc4   : > { %2388 = vmatpush3.bf16.msra.mxu1 %v2385_v36  ;;  %v2413_v36 = vpack.c.bf16 %v660_v32, %v659_v31 }
  0xc5   : > { %2516 = vmatpush3.bf16.msra.mxu0 %v2513_v37  ;;  %2390 = vmatprep.subr.bf16.mxu1 %v2389_v42  ;;  %v1665_v37 = vld [vmem:[%s3158_s21 + $0x90] sm:$0xff] }
  0xc6   : > { %2518 = vmatprep.subr.bf16.mxu0 %v2517_v43 }
  0xc8   : > { %2392 = vmatpush3.bf16.msra.mxu1 %v2389_v42  ;;  %v1215_v42 = vld [vmem:[#allocation5 + $0x3d8] sm:$0xff] }
  0xc9   : > { %2520 = vmatpush3.bf16.msra.mxu0 %v2517_v43  ;;  %2394 = vmatprep.subr.bf16.mxu1 %v2393_v48  ;;  %v2417_v43 = vpack.c.bf16 %v662_v40, %v661_v39  ;;  %v2545_v44 = vpack.c.bf16 %v1215_v42, %v1214_v41 }
  0xca   : > { %2522 = vmatprep.subr.bf16.mxu0 %v2521_v49 }
  0xcc   : > { %2396 = vmatpush3.bf16.msra.mxu1 %v2393_v48  ;;  %v1217_v48 = vld [vmem:[#allocation5 + $0x3e8] sm:$0xff] }
  0xcd   : > { %2524 = vmatpush3.bf16.msra.mxu0 %v2521_v49  ;;  %2398 = vmatprep.subr.bf16.mxu1 %v2397_v56  ;;  %v2421_v49 = vpack.c.bf16 %v664_v46, %v663_v45  ;;  %v2549_v50 = vpack.c.bf16 %v1217_v48, %v1216_v47 }
  0xce   : > { %2526 = vmatprep.subr.bf16.mxu0 %v2525_v57 }
  0xcf   : > { %2026 = vmatmul.mubr.f32.vlgmr.msra.gmra.mrb[0].mxu1 %v3206_v28  ;;  %v2409_v28 = vpack.c.bf16 %v658_v22, %v657_v20 }
  0xd0   : > { %2400 = vmatpush3.bf16.msra.mxu1 %v2397_v56  ;;  %2202 = vmatmul.mubr.f32.vlgmr.msra.gmra.mrb[0].mxu0 %v3224_v0  ;;  %v1219_v56 = vld [vmem:[#allocation5 + $0x3f8] sm:$0xff] }
  0xd1   : > { %2528 = vmatpush3.bf16.msra.mxu0 %v2525_v57  ;;  %2402 = vmatprep.subr.bf16.mxu1 %v2401_v4  ;;  %v2425_v57 = vpack.c.bf16 %v666_v52, %v665_v51 }
  0xd2   : > { %2530 = vmatprep.subr.bf16.mxu0 %v2529_v6  ;;  %2028 = vmatprep.mubr.f32.mxu1 %v3213_v54 }
  0xd3   : > { %2204 = vmatprep.mubr.f32.mxu0 %v3233_v10  ;;  %2029 = vmatmul.mubr.f32.gmra.mrb[2].mxu1 %v3221_v63 }
  0xd4   : > { %2404 = vmatpush3.bf16.msra.mxu1 %v2401_v4  ;;  %2205 = vmatmul.mubr.f32.gmra.mrb[2].mxu0 %v3240_v14  ;;  %v2561_v4 = vpack.c.bf16 %v1345_v1, %v1344_v61 }
  0xd5   : > { %2532 = vmatpush3.bf16.msra.mxu0 %v2529_v6  ;;  %2406 = vmatprep.subr.bf16.mxu1 %v2405_v17  ;;  %v1346_v6 = vld [vmem:[#allocation5 + $0x420] sm:$0xff] }
  0xd6   : > { %2534 = vmatprep.subr.bf16.mxu0 %v2533_v18  ;;  %2031 = vmatprep.mubr.f32.mxu1 %v3227_v2  ;;  %v2565_v8 = vpack.c.bf16 %v1347_v7, %v1346_v6 }
  0xd7   : > { %2207 = vmatprep.mubr.f32.mxu0 %v3249_v24  ;;  %2032 = vmatmul.mubr.f32.gmra.mrb[4].mxu1 %v3237_v12 }
  0xd8   : > { %2408 = vmatpush3.bf16.msra.mxu1 %v2405_v17  ;;  %2208 = vmatmul.mubr.f32.gmra.mrb[4].mxu0 %v3256_v26  ;;  %v1357_v17 = vld [vmem:[#allocation5 + $0x478] sm:$0xff] }
  0xd9   : > { %2536 = vmatpush3.bf16.msra.mxu0 %v2533_v18  ;;  %2410 = vmatprep.subr.bf16.mxu1 %v2409_v28 }
  0xda   : > { %2538 = vmatprep.subr.bf16.mxu0 %v2537_v30  ;;  %2034 = vmatprep.mubr.f32.mxu1 %v3243_v16 }
  0xdb   : > { %2210 = vmatprep.mubr.f32.mxu0 %v3278_v35  ;;  %2035 = vmatmul.mubr.f32.gmra.mrb[6].mxu1 %v3253_v25 }
  0xdc   : > { %2412 = vmatpush3.bf16.msra.mxu1 %v2409_v28  ;;  %2211 = vmatmul.mubr.f32.gmra.mrb[6].mxu0 %v1665_v37 }
  0xdd   : > { %2540 = vmatpush3.bf16.msra.mxu0 %v2537_v30  ;;  %2414 = vmatprep.subr.bf16.mxu1 %v2413_v36 }
  0xde   : > { %2542 = vmatprep.subr.bf16.mxu0 %v2541_v38  ;;  %2069 = vmatprep.mubr.f32.mxu1 %v3210_v53  ;;  %v2553_v53 = vpack.c.bf16 %v1219_v56, %v1218_v55 }
  0xdf   : > { %2245 = vmatprep.mubr.f32.mxu0 %v3171_v60  ;;  %v2557_v60 = vpack.c.bf16 %v1343_v59, %v1342_v58 }
  0xe0   : > { %2416 = vmatpush3.bf16.msra.mxu1 %v2413_v36  ;;  %v1682_v36 = vld [vmem:[#allocation7] ss:$0 sm:$0xff] }
  0xe1   : > { %2544 = vmatpush3.bf16.msra.mxu0 %v2541_v38  ;;  %2418 = vmatprep.subr.bf16.mxu1 %v2417_v43 }
  0xe2   : > { %2546 = vmatprep.subr.bf16.mxu0 %v2545_v44 }
  0xe4   : > { %2420 = vmatpush3.bf16.msra.mxu1 %v2417_v43 }
  0xe5   : > { %2548 = vmatpush3.bf16.msra.mxu0 %v2545_v44  ;;  %2422 = vmatprep.subr.bf16.mxu1 %v2421_v49 }
  0xe6   : > { %2550 = vmatprep.subr.bf16.mxu0 %v2549_v50 }
  0xe8   : > { %2424 = vmatpush3.bf16.msra.mxu1 %v2421_v49 }
  0xe9   : > { %2552 = vmatpush3.bf16.msra.mxu0 %v2549_v50  ;;  %2426 = vmatprep.subr.bf16.mxu1 %v2425_v57 }
  0xea   : > { %2554 = vmatprep.subr.bf16.mxu0 %v2553_v53 }
  0xec   : > { %2428 = vmatpush3.bf16.msra.mxu1 %v2425_v57 }
  0xed   : > { %2556 = vmatpush3.bf16.msra.mxu0 %v2553_v53  ;;  %2589 = vmatprep.subr.bf16.mxu1 %v2557_v60 }
  0xee   : > { %2558 = vmatprep.subr.bf16.mxu0 %v2557_v60 }
  0xef   : > { %2070 = vmatmul.mubr.f32.vlgmr.msra.gmra.mrb[0].mxu1 %v3217_v62  ;;  %v1350_v62 = vld [vmem:[#allocation5 + $0x440] sm:$0xff] }
  0xf0   : > { %2246 = vmatmul.mubr.f32.vlgmr.msra.gmra.mrb[0].mxu0 %v3175_v3  ;;  %2597 = vmatpush3.bf16.msra.mxu1 %v2557_v60  ;;  %v2569_v3 = vpack.c.bf16 %v1349_v15, %v1348_v9 }
  0xf1   : > { %2560 = vmatpush3.bf16.msra.mxu0 %v2557_v60  ;;  %2072 = vmatprep.mubr.f32.mxu1 %v3224_v0 }
  0xf2   : > { %2248 = vmatprep.mubr.f32.mxu0 %v3178_v5  ;;  %2562 = vmatprep.subr.bf16.mxu0 %v2561_v4  ;;  %v1351_v5 = vld [vmem:[#allocation5 + $0x448] sm:$0xff] }
  0xf3   : > { %2073 = vmatmul.mubr.f32.gmra.mrb[2].mxu1 %v3233_v10  ;;  %2590 = vmatprep.subr.bf16.mxu1 %v2561_v4  ;;  %v2573_v0 = vpack.c.bf16 %v1351_v5, %v1350_v62  ;;  %v1352_v10 = vld [vmem:[#allocation5 + $0x450] sm:$0xff] }
  0xf4   : > { %2249 = vmatmul.mubr.f32.gmra.mrb[2].mxu0 %v3185_v11  ;;  %2598 = vmatpush3.bf16.msra.mxu1 %v2561_v4  ;;  %v1673_v11 = vld [vmem:[%s3158_s21 + $0x91] sm:$0xff] }
  0xf5   : > { %2564 = vmatpush3.bf16.msra.mxu0 %v2561_v4  ;;  %2075 = vmatprep.mubr.f32.mxu1 %v3240_v14 }
  0xf6   : > { %2251 = vmatprep.mubr.f32.mxu0 %v3188_v13  ;;  %2566 = vmatprep.subr.bf16.mxu0 %v2565_v8  ;;  %v1353_v13 = vld [vmem:[#allocation5 + $0x458] sm:$0xff] }
  0xf7   : > { %2076 = vmatmul.mubr.f32.gmra.mrb[4].mxu1 %v3249_v24  ;;  %2591 = vmatprep.subr.bf16.mxu1 %v2565_v8  ;;  %v2577_v14 = vpack.c.bf16 %v1353_v13, %v1352_v10  ;;  %v1355_v24 = vld [vmem:[#allocation5 + $0x468] sm:$0xff] }
  0xf8   : > { %2252 = vmatmul.mubr.f32.gmra.mrb[4].mxu0 %v3195_v19  ;;  %2599 = vmatpush3.bf16.msra.mxu1 %v2565_v8  ;;  %v1354_v19 = vld [vmem:[#allocation5 + $0x460] sm:$0xff] }
  0xf9   : > { %2568 = vmatpush3.bf16.msra.mxu0 %v2565_v8  ;;  %2078 = vmatprep.mubr.f32.mxu1 %v3256_v26  ;;  %v1356_v26 = vld [vmem:[#allocation5 + $0x470] sm:$0xff] }
  0xfa   : > { %2254 = vmatprep.mubr.f32.mxu0 %v3198_v21  ;;  %2570 = vmatprep.subr.bf16.mxu0 %v2569_v3  ;;  %v2581_v21 = vpack.c.bf16 %v1355_v24, %v1354_v19  ;;  %v2585_v18 = vpack.c.bf16 %v1357_v17, %v1356_v26 }
  0xfb   : > { %2079 = vmatmul.mubr.f32.gmra.mrb[6].mxu1 %v3278_v35  ;;  %2592 = vmatprep.subr.bf16.mxu1 %v2569_v3 }
  0xfc   : > { %2255 = vmatmul.mubr.f32.gmra.mrb[6].mxu0 %v1673_v11  ;;  %2600 = vmatpush3.bf16.msra.mxu1 %v2569_v3 }
  0xfd   : > { %2572 = vmatpush3.bf16.msra.mxu0 %v2569_v3  ;;  %2593 = vmatprep.subr.bf16.mxu1 %v2573_v0 }
  0xfe   : > { %2574 = vmatprep.subr.bf16.mxu0 %v2573_v0  ;;  %2289 = vmatprep.mubr.f32.mxu0 %v3213_v54  ;;  %v1681_v54 = vld [vmem:[%s3158_s21 + $0x92] sm:$0xff] }
  0xff   : > { %2295 = vmatprep.mubr.f32.mxu1 %v3243_v16 }
 0x100   : > { %2601 = vmatpush3.bf16.msra.mxu1 %v2573_v0 }
 0x101   : > { %2576 = vmatpush3.bf16.msra.mxu0 %v2573_v0  ;;  %2594 = vmatprep.subr.bf16.mxu1 %v2577_v14 }
 0x102   : > { %2578 = vmatprep.subr.bf16.mxu0 %v2577_v14 }
 0x104   : > { %2602 = vmatpush3.bf16.msra.mxu1 %v2577_v14 }
 0x105   : > { %2580 = vmatpush3.bf16.msra.mxu0 %v2577_v14  ;;  %2595 = vmatprep.subr.bf16.mxu1 %v2581_v21 }
 0x106   : > { %2582 = vmatprep.subr.bf16.mxu0 %v2581_v21 }
 0x108   : > { %2603 = vmatpush3.bf16.msra.mxu1 %v2581_v21 }
 0x109   : > { %2584 = vmatpush3.bf16.msra.mxu0 %v2581_v21  ;;  %2596 = vmatprep.subr.bf16.mxu1 %v2585_v18 }
 0x10a   : > { %2586 = vmatprep.subr.bf16.mxu0 %v2585_v18 }
 0x10c   : > { %2604 = vmatpush3.bf16.msra.mxu1 %v2585_v18 }
 0x10d   : > { %2588 = vmatpush3.bf16.msra.mxu0 %v2585_v18 }
 0x10f   : > { %2296 = vmatmul.mubr.f32.vlgmr.msra.gmra.mrb[8].mxu1 %v3253_v25 }
 0x110   : > { %2290 = vmatmul.mubr.f32.vlgmr.msra.gmra.mrb[0].mxu0 %v3221_v63  ;;  %2298 = vmatprep.mubr.f32.mxu1 %v3259_v29 }
 0x111   : > { %2292 = vmatprep.mubr.f32.mxu0 %v3227_v2 }
 0x113   : > { %2299 = vmatmul.mubr.f32.gmra.mrb[10].mxu1 %v1681_v54 }
 0x114   : > { %2293 = vmatmul.mubr.f32.gmra.mrb[2].mxu0 %v3237_v12 }
 0x1c2   : > { %v2071_v16 = vpop.f32.mrb[0].mxu1 }
 0x1c3   : > { %v733_v20 = vpop.f32.mrb[1].mxu1 }
 0x1c6   : > { %v2074_v22 = vpop.f32.mrb[2].mxu1 }
 0x1c7   : > { %v743_v23 = vpop.f32.mrb[3].mxu1 }
 0x1ca   : > { %v2077_v27 = vpop.f32.mrb[4].mxu1 }
 0x1cb   : > { %v2253_v28 = vpop.f32.mrb[4].mxu0  ;;  %v753_v30 = vpop.f32.mrb[5].mxu1 }
 0x1cc   : > { %v2609_v31 = vadd.f32 %v2253_v28, %v2077_v27  ;;  %v1306_v25 = vpop.f32.mrb[5].mxu0 }
 0x1cd   : > { %v2611_v32 = vadd.f32 %v1306_v25, %v753_v30 }
 0x1ce   : > { %v2080_v63 = vpop.f32.mrb[6].mxu1 }
 0x1cf   : > { %v2256_v33 = vpop.f32.mrb[6].mxu0  ;;  %v763_v29 = vpop.f32.mrb[7].mxu1 }
 0x1d0   : > { %v2613_v34 = vadd.f32 %v2256_v33, %v2080_v63  ;;  %v1316_v35 = vpop.f32.mrb[7].mxu0 }
 0x1d1   : > { %v2615_v2 = vadd.f32 %v1316_v35, %v763_v29 }
 0x1e2   : > { %v2297_v37 = vpop.f32.mrb[8].mxu1 }
 0x1e3   : > { %v2291_v12 = vpop.f32.mrb[0].mxu0  ;;  %v2610_v38 = vadd.f32 %v2609_v31, %v2297_v37  ;;  %v1444_v39 = vpop.f32.mrb[9].mxu1 }
 0x1e4   : > { %v2605_v40 = vadd.f32 %v2291_v12, %v2071_v16  ;;  %v1424_v41 = vpop.f32.mrb[1].mxu0  ;;  %v2612_v42 = vadd.f32 %v2611_v32, %v1444_v39 }
 0x1e5   : > { %v1483_v43 = vadd.f32 %v2610_v38, %v1682_v36  ;;  %v2606_v44 = vadd.f32 %v1424_v41, %v733_v20 }
 0x1e6   : > { %v1479_v45 = vadd.f32 %v2605_v40, %v1682_v36  ;;  %v1482_v46 = vadd.f32 %v2612_v42, %v1682_v36  ;;  %v2300_v47 = vpop.f32.mrb[10].mxu1 }
 0x1e7   : > { %v1491_v48 = vmax.f32 %v1483_v43, 0.0  ;;  %v1478_v49 = vadd.f32 %v2606_v44, %v1682_v36  ;;  %v2294_v50 = vpop.f32.mrb[2].mxu0  ;;  %v2614_v51 = vadd.f32 %v2613_v34, %v2300_v47  ;;  %v1454_v52 = vpop.f32.mrb[11].mxu1 }
 0x1e8   : > { %v1487_v55 = vmax.f32 %v1479_v45, 0.0  ;;  %v1490_v56 = vmax.f32 %v1482_v46, 0.0  ;;  %v2607_v57 = vadd.f32 %v2294_v50, %v2074_v22  ;;  %v1434_v53 = vpop.f32.mrb[3].mxu0  ;;  %v2616_v58 = vadd.f32 %v2615_v2, %v1454_v52 }
 0x1e9   : > { %1499 = vst [vmem:[%s243_s22 + $0x28] sm:$0xff] %v1491_v48  ;;  %v1486_v59 = vmax.f32 %v1478_v49, 0.0  ;;  %v1485_v60 = vadd.f32 %v2614_v51, %v1682_v36  ;;  %v2608_v61 = vadd.f32 %v1434_v53, %v743_v23 }
 0x1ea   : > { %1495 = vst [vmem:[%s243_s22 + $0x8] sm:$0xff] %v1487_v55  ;;  %1498 = vst [vmem:[%s243_s22 + $0x20] sm:$0xff] %v1490_v56  ;;  %v1481_v1 = vadd.f32 %v2607_v57, %v1682_v36  ;;  %v1484_v4 = vadd.f32 %v2616_v58, %v1682_v36 }
 0x1eb   : > { %1494 = vst [vmem:[%s243_s22] sm:$0xff] %v1486_v59  ;;  %v1493_v6 = vmax.f32 %v1485_v60, 0.0  ;;  %v1480_v7 = vadd.f32 %v2608_v61, %v1682_v36 }
 0x1ec   : > { %v1489_v8 = vmax.f32 %v1481_v1, 0.0  ;;  %v1492_v9 = vmax.f32 %v1484_v4, 0.0 }
 0x1ed   : > { %1501 = vst [vmem:[%s243_s22 + $0x38] sm:$0xff] %v1493_v6  ;;  %v1488_v15 = vmax.f32 %v1480_v7, 0.0 }
 0x1ee   : > { %1497 = vst [vmem:[%s243_s22 + $0x18] sm:$0xff] %v1489_v8  ;;  %1500 = vst [vmem:[%s243_s22 + $0x30] sm:$0xff] %v1492_v9 }
 0x1ef   : > { %1496 = vst [vmem:[%s243_s22 + $0x10] sm:$0xff] %v1488_v15 }
 0x1f0   : > { %2858 = shalt.err (!%p2855_p2)
}
 0x1f1   : > { %s2859_s28 = scalar_lea.hbm %s3315_s15, 1024  ;;  %s2863_s8 = scalar_lea.hbm %s3367_s3, 2048 }
 0x1f2   : > { %p2860_p0 = scmp.ne.s32.totalorder %s3315_s15, %s2859_s28  ;;  %p2864_p6 = scmp.lt.u32.totalorder %s3315_s15, %s3367_s3 }
 0x1f3   : > { %p2865_p7 = scmp.lt.u32.totalorder %s2863_s8, %s2859_s28  ;;  %p2867_p8 = scmp.lt.u32.totalorder %s2859_s28, %s3315_s15 }
 0x1f4   : > { %p2861_p4 = pnand %p2860_p0, %p3382_p12 }
 0x1f5   : > { %p2866_p11 = por %p2865_p7, %p2864_p6 }
 0x1f6   : > { %p2862_p13 = pneg %p2861_p4 }
 0x1f7   : > { %p2868_p1 = por %p2867_p8, %p2866_p11 }
 0x1f9   : > { %p2869_p10 = pnand %p2868_p1, %p2862_p13 }
 0x1fb   : > { %2872 = shalt.err (!%p2869_p10)
}
 0x1fc   : > { %s2939_s22 = smov 128   ;;  %s2940_s11 = smov 8  }
 0x1fd   : > { %2682 = dma.vmem_to_hbm [thread:$0]  (%p3382_p12), %s3310_s24, 1024, %s3315_s15, %s1503_s26, %s2939_s22, %s2939_s22, %s2940_s11  }
 0x1fe PF: > { %s1532_s18 = sand.u32 1, %s2911_s12   ;;  %p3383_p3 = scmp.ne.s32.totalorder %s3375_s23, 0 }
 0x1ff   : > { %p3384_p5 = scmp.ge.s32.totalorder %s2931_s17, 2  ;;  %s1533_s5 = scalar_lea.sflag [#allocation4], %s1532_s18 }
 0x201   : > { %p2696_p9 = pnand %p3384_p5, %p3383_p3 }
 0x203   : > { %2906 = dma.done.wait (!%p2696_p9), %s1533_s5, 1024  }
 0x204   : > { %2908 = vsyncadd (!%p2696_p9), %s1533_s5, 4294966272  ;;  %s20_s17 = sadd.s32 1, %s2931_s17   ;;  %s3385_s12 = smov %s2915_s13 }
 0x205   : > { %p17_p2 = scmp.ge.s32.totalorder %s20_s17, 4   ;;  %s3386_s13 = smov %s2919_s14 }
 0x206   : > { %s3387_s14 = smov %s3110_s6  ;;  %s3388_s15 = smov %s2927_s16 }
 0x207   : > { %s3389_s16 = smov %s3391_s25  ;;  %19 = sbr.rel (!%p17_p2) target bundleno = 7 (0x7), region = 97 }
 0x20e   :  { %1538 = vsyncpa [#allocation3], 1 }
 0x20f   :  { %1540 = vsyncpa [#allocation3 + $0x1], 1 }
 0x210   :  { %1541 = vsyncpa [#allocation6], 1 }
 0x211   :  { %1542 = vsyncpa [#allocation4], 1 }
 0x212   :  { %1544 = vsyncpa [#allocation4 + $0x1], 1 }

// kernel: vgg_forward.10
= control target key start
LH: loop header
LB: loop body
LE: loop exit
PB: predicated region body
PF: predicated region fallthrough
CT: control target
= control target key end

     0   :  { %8 = vsyncpa [#allocation3], 0  ;;  %s434_s0 = inlined_call_operand.hbm [shape: f32[2,256], index: 0, kind: input, shape index: {}]   ;;  %s435_s1 = inlined_call_operand.hbm [shape: f32[256,128], index: 1, kind: input, shape index: {}]   ;;  %s436_s2 = inlined_call_operand.hbm [shape: f32[1,128], index: 2, kind: input, shape index: {}]   ;;  %s437_s3 = inlined_call_operand.hbm [shape: f32[2,128], index: 3, kind: output, shape index: {}]  }
   0x1   :  { %9 = vsyncpa [#allocation6], 0 }
   0x2   :  { %10 = vsyncpa [#allocation4], 0  ;;  %s360_s12 = smov [#allocation5]   ;;  %s266_s16 = scalar_lea.hbm %s435_s1, 4096 }
   0x3   :  { %s26_s13 = sshll.u32 %s360_s12, 4  ;;  %p267_p0 = scmp.ne.s32.totalorder %s435_s1, %s266_s16  ;;  %s27_s13 = int_to_ptr.vmem [resolvable:$true] %s26_s13 }
   0x4   :  { %p270_p1 = scmp.lt.u32.totalorder %s266_s16, %s435_s1 }
   0x6   :  { %p272_p2 = pnand %p270_p1, %p267_p0 }
   0x8   :  { %275 = shalt.err (!%p272_p2)
}
   0x9   :  { %s276_s21 = scalar_lea.vmem %s27_s13, 4096  ;;  %p281_p4 = scmp.lt.s32.totalorder %s27_s13, %s27_s13 }
   0xa   :  { %p277_p3 = scmp.ne.s32.totalorder %s27_s13, %s276_s21  ;;  %p282_p5 = scmp.lt.s32.totalorder %s276_s21, %s276_s21 }
   0xc   :  { %p283_p6 = por %p282_p5, %p281_p4 }
   0xe   :  { %p284_p7 = pnand %p283_p6, %p277_p3 }
  0x10   :  { %287 = shalt.err (!%p284_p7)
}
  0x11   :  { %s361_s22 = smov 128   ;;  %s362_s23 = smov 8  }
  0x12   :  { %32 = dma.hbm_to_vmem [thread:$0]  %s435_s1, 4096, %s27_s13, [#allocation6], %s361_s22, %s361_s22, %s362_s23  }
  0x13   :  { %s363_s26 = smov [#allocation2]   ;;  %s364_s28 = smov [#allocation7]  }
  0x14   :  { %s17_s27 = sshll.u32 %s363_s26, 4  ;;  %s39_s29 = sshll.u32 %s364_s28, 4  ;;  %s18_s27 = int_to_ptr.vmem [resolvable:$true] %s17_s27  ;;  %s40_s29 = int_to_ptr.vmem [resolvable:$true] %s39_s29 }
  0x15   :  { %s288_s5 = scalar_lea.hbm %s434_s0, 64 }
  0x16   :  { %p289_p8 = scmp.ne.s32.totalorder %s434_s0, %s288_s5  ;;  %p292_p9 = scmp.lt.u32.totalorder %s288_s5, %s434_s0 }
  0x18   :  { %p294_p10 = pnand %p292_p9, %p289_p8 }
  0x1a   :  { %297 = shalt.err (!%p294_p10)
}
  0x1b   :  { %s298_s1 = scalar_lea.vmem %s18_s27, 64  ;;  %p303_p12 = scmp.lt.s32.totalorder %s18_s27, %s18_s27 }
  0x1c   :  { %p299_p11 = scmp.ne.s32.totalorder %s18_s27, %s298_s1  ;;  %p304_p13 = scmp.lt.s32.totalorder %s298_s1, %s298_s1 }
  0x1e   :  { %p305_p0 = por %p304_p13, %p303_p12 }
  0x20   :  { %p306_p1 = pnand %p305_p0, %p299_p11 }
  0x22   :  { %309 = shalt.err (!%p306_p1)
}
  0x23   :  { %20 = dma.hbm_to_vmem [thread:$0]  %s434_s0, 64, %s18_s27, [#allocation3]  }
  0x24   :  { %s310_s14 = scalar_lea.hbm %s436_s2, 16 }
  0x25   :  { %p311_p2 = scmp.ne.s32.totalorder %s436_s2, %s310_s14  ;;  %p314_p3 = scmp.lt.u32.totalorder %s310_s14, %s436_s2 }
  0x27   :  { %p316_p4 = pnand %p314_p3, %p311_p2 }
  0x29   :  { %319 = shalt.err (!%p316_p4)
}
  0x2a   :  { %s320_s19 = scalar_lea.vmem %s40_s29, 16  ;;  %s324_s20 = scalar_lea.vmem %s40_s29, 32 }
  0x2b   :  { %p321_p5 = scmp.ne.s32.totalorder %s40_s29, %s320_s19  ;;  %p325_p6 = scmp.lt.s32.totalorder %s40_s29, %s40_s29 }
  0x2c   :  { %p326_p7 = scmp.lt.s32.totalorder %s324_s20, %s320_s19 }
  0x2e   :  { %p327_p8 = por %p326_p7, %p325_p6 }
  0x30   :  { %p328_p9 = pnand %p327_p8, %p321_p5 }
  0x32   :  { %331 = shalt.err (!%p328_p9)
}
  0x33   :  { %42 = dma.hbm_to_vmem [thread:$0]  %s436_s2, 16, %s40_s29, [#allocation6]  }
  0x34   :  { %354 = dma.done.wait [#allocation3], 64  }
  0x35   :  { %355 = vsyncadd [#allocation3], 4294967232 }
  0x36   :  { %356 = dma.done.wait [#allocation6], 4112  }
  0x37   :  { %357 = vsyncadd [#allocation6], 4294963184  ;;  %v69_v0 = vld [vmem:[#allocation5 + $0x80] sm:$0xff]  ;;  %v70_v1 = vld [vmem:[#allocation5 + $0x88] sm:$0xff]  ;;  %s365_s2 = smov [#allocation8]  }
  0x38   :  { %v53_v2 = vld [vmem:[#allocation5] sm:$0xff]  ;;  %v228_v3 = vpack.c.bf16 %v70_v1, %v69_v0  ;;  %v54_v4 = vld [vmem:[#allocation5 + $0x8] sm:$0xff]  ;;  %v71_v5 = vld [vmem:[#allocation5 + $0x90] sm:$0xff]  ;;  %s181_s22 = sshll.u32 %s365_s2, 4  ;;  %s182_s22 = int_to_ptr.vmem [resolvable:$true] %s181_s22 }
  0x39   :  { %v72_v6 = vld [vmem:[#allocation5 + $0x98] sm:$0xff]  ;;  %v230_v7 = vpack.c.bf16 %v54_v4, %v53_v2  ;;  %v55_v9 = vld [vmem:[#allocation5 + $0x10] sm:$0xff]  ;;  %v73_v11 = vld [vmem:[#allocation5 + $0xa0] sm:$0xff]  ;;  %s332_s23 = scalar_lea.vmem %s182_s22, 32  ;;  %p337_p11 = scmp.lt.s32.totalorder %s182_s22, %s182_s22 }
  0x3a   :  { %v232_v8 = vpack.c.bf16 %v72_v6, %v71_v5  ;;  %v56_v10 = vld [vmem:[#allocation5 + $0x18] sm:$0xff]  ;;  %229 = vmatprep.subr.bf16.mxu0 %v228_v3  ;;  %v74_v12 = vld [vmem:[#allocation5 + $0xa8] sm:$0xff]  ;;  %v57_v15 = vld [vmem:[#allocation5 + $0x20] sm:$0xff]  ;;  %p333_p10 = scmp.ne.s32.totalorder %s182_s22, %s332_s23  ;;  %p338_p12 = scmp.lt.s32.totalorder %s332_s23, %s332_s23 }
  0x3b   :  { %231 = vmatpush3.bf16.msra.mxu0 %v230_v7  ;;  %v234_v13 = vpack.c.bf16 %v56_v10, %v55_v9  ;;  %v236_v14 = vpack.c.bf16 %v74_v12, %v73_v11  ;;  %v58_v16 = vld [vmem:[#allocation5 + $0x28] sm:$0xff]  ;;  %v75_v17 = vld [vmem:[#allocation5 + $0xb0] sm:$0xff]  ;;  %v76_v18 = vld [vmem:[#allocation5 + $0xb8] sm:$0xff] }
  0x3c   :  { %233 = vmatprep.subr.bf16.mxu0 %v232_v8  ;;  %v238_v19 = vpack.c.bf16 %v58_v16, %v57_v15  ;;  %v240_v20 = vpack.c.bf16 %v76_v18, %v75_v17  ;;  %v59_v21 = vld [vmem:[#allocation5 + $0x30] sm:$0xff]  ;;  %v60_v22 = vld [vmem:[#allocation5 + $0x38] sm:$0xff]  ;;  %v77_v23 = vld [vmem:[#allocation5 + $0xc0] sm:$0xff]  ;;  %p339_p13 = por %p338_p12, %p337_p11 }
  0x3d   :  { %v78_v24 = vld [vmem:[#allocation5 + $0xc8] sm:$0xff]  ;;  %v192_v25 = vld.sshfl [vmem:[#allocation2] sm:$0x33 pattern:$0x76325410]  ;;  %v242_v27 = vpack.c.bf16 %v60_v22, %v59_v21  ;;  %v61_v29 = vld [vmem:[#allocation5 + $0x40] sm:$0xff] }
  0x3e   :  { %v100_v26 = vcombine.high %v192_v25, %v192_v25  ;;  %v244_v28 = vpack.c.bf16 %v78_v24, %v77_v23  ;;  %v62_v30 = vld [vmem:[#allocation5 + $0x48] sm:$0xff]  ;;  %v79_v31 = vld [vmem:[#allocation5 + $0xd0] sm:$0xff]  ;;  %v80_v32 = vld [vmem:[#allocation5 + $0xd8] sm:$0xff]  ;;  %p340_p0 = pnand %p339_p13, %p333_p10 }
  0x3f   :  { %235 = vmatpush3.bf16.msra.mxu0 %v234_v13  ;;  %v246_v33 = vpack.c.bf16 %v62_v30, %v61_v29  ;;  %v248_v34 = vpack.c.bf16 %v80_v32, %v79_v31  ;;  %v63_v35 = vld [vmem:[#allocation5 + $0x50] sm:$0xff]  ;;  %v64_v36 = vld [vmem:[#allocation5 + $0x58] sm:$0xff]  ;;  %v81_v37 = vld [vmem:[#allocation5 + $0xe0] sm:$0xff] }
  0x40   :  { %237 = vmatprep.subr.bf16.mxu0 %v236_v14  ;;  %167 = vmatprep.mubr.f32.mxu0 %v100_v26  ;;  %v82_v38 = vld [vmem:[#allocation5 + $0xe8] sm:$0xff]  ;;  %v250_v39 = vpack.c.bf16 %v64_v36, %v63_v35  ;;  %v65_v41 = vld [vmem:[#allocation5 + $0x60] sm:$0xff]  ;;  %v83_v43 = vld [vmem:[#allocation5 + $0xf0] sm:$0xff] }
  0x41   :  { %v252_v40 = vpack.c.bf16 %v82_v38, %v81_v37  ;;  %v66_v42 = vld [vmem:[#allocation5 + $0x68] sm:$0xff]  ;;  %v84_v44 = vld [vmem:[#allocation5 + $0xf8] sm:$0xff]  ;;  %v67_v47 = vld [vmem:[#allocation5 + $0x70] sm:$0xff] }
  0x42   :  { %v254_v45 = vpack.c.bf16 %v66_v42, %v65_v41  ;;  %v256_v46 = vpack.c.bf16 %v84_v44, %v83_v43  ;;  %v68_v48 = vld [vmem:[#allocation5 + $0x78] sm:$0xff]  ;;  %v191_v51 = vld [vmem:[#allocation7] ss:$0 sm:$0xff] }
  0x43   :  { %239 = vmatpush3.bf16.msra.mxu0 %v238_v19  ;;  %v258_v49 = vpack.c.bf16 %v68_v48, %v67_v47 }
  0x44   :  { %241 = vmatprep.subr.bf16.mxu0 %v240_v20 }
  0x47   :  { %243 = vmatpush3.bf16.msra.mxu0 %v242_v27 }
  0x48   :  { %245 = vmatprep.subr.bf16.mxu0 %v244_v28 }
  0x4b   :  { %247 = vmatpush3.bf16.msra.mxu0 %v246_v33 }
  0x4c   :  { %249 = vmatprep.subr.bf16.mxu0 %v248_v34 }
  0x4f   :  { %251 = vmatpush3.bf16.msra.mxu0 %v250_v39 }
  0x50   :  { %253 = vmatprep.subr.bf16.mxu0 %v252_v40 }
  0x53   :  { %255 = vmatpush3.bf16.msra.mxu0 %v254_v45 }
  0x54   :  { %257 = vmatprep.subr.bf16.mxu0 %v256_v46 }
  0x57   :  { %259 = vmatpush3.bf16.msra.mxu0 %v258_v49 }
  0x5a   :  { %168 = vmatmul.mubr.f32.vlgmr.msra.gmra.mrb[0].mxu0 %v192_v25 }
 0x12d   :  { %v225_v50 = vpop.f32.mrb[0].mxu0 }
 0x12e   :  { %v226_v52 = vpop.f32.mrb[1].mxu0 }
 0x12f   :  { %v227_v53 = vadd.f32 %v226_v52, %v225_v50 }
 0x131   :  { %v170_v54 = vadd.f32 %v227_v53, %v191_v51 }
 0x133   :  { %v173_v55 = vmax.f32 %v170_v54, 0.0 }
 0x135   :  { %174 = vst [vmem:[#allocation8] sm:$0x3] %v173_v55 }
 0x136   :  { %343 = shalt.err (!%p340_p0)
}
 0x137   :  { %s344_s26 = scalar_lea.hbm %s437_s3, 32 }
 0x138   :  { %p345_p1 = scmp.ne.s32.totalorder %s437_s3, %s344_s26  ;;  %p348_p2 = scmp.lt.u32.totalorder %s344_s26, %s437_s3 }
 0x13a   :  { %p350_p3 = pnand %p348_p2, %p345_p1 }
 0x13c   :  { %353 = shalt.err (!%p350_p3)
}
 0x13d   :  { %184 = dma.vmem_to_hbm [thread:$0]  %s182_s22, 32, %s437_s3, [#allocation4]  }
 0x13e   :  { %358 = dma.done.wait [#allocation4], 32  }
 0x13f   :  { %359 = vsyncadd [#allocation4], 4294967264 }
 0x140   :  { %188 = vsyncpa [#allocation3], 1 }
 0x141   :  { %189 = vsyncpa [#allocation6], 1 }
 0x142   :  { %190 = vsyncpa [#allocation4], 1 }

// kernel: vgg_forward.11
= control target key start
LH: loop header
LB: loop body
LE: loop exit
PB: predicated region body
PF: predicated region fallthrough
CT: control target
= control target key end

     0   :  { %8 = vsyncpa [#allocation3], 0  ;;  %s420_s0 = inlined_call_operand.hbm [shape: f32[2,128], index: 0, kind: input, shape index: {}]   ;;  %s421_s1 = inlined_call_operand.hbm [shape: f32[128,128], index: 1, kind: input, shape index: {}]   ;;  %s422_s2 = inlined_call_operand.hbm [shape: f32[1,128], index: 2, kind: input, shape index: {}]   ;;  %s423_s3 = inlined_call_operand.hbm [shape: f32[2,128], index: 3, kind: output, shape index: {}]  }
   0x1   :  { %9 = vsyncpa [#allocation6], 0 }
   0x2   :  { %10 = vsyncpa [#allocation4], 0  ;;  %s343_s12 = smov [#allocation5]   ;;  %s249_s16 = scalar_lea.hbm %s421_s1, 2048 }
   0x3   :  { %s26_s13 = sshll.u32 %s343_s12, 4  ;;  %p250_p0 = scmp.ne.s32.totalorder %s421_s1, %s249_s16  ;;  %s27_s13 = int_to_ptr.vmem [resolvable:$true] %s26_s13 }
   0x4   :  { %p253_p1 = scmp.lt.u32.totalorder %s249_s16, %s421_s1 }
   0x6   :  { %p255_p2 = pnand %p253_p1, %p250_p0 }
   0x8   :  { %258 = shalt.err (!%p255_p2)
}
   0x9   :  { %s259_s21 = scalar_lea.vmem %s27_s13, 2048  ;;  %p264_p4 = scmp.lt.s32.totalorder %s27_s13, %s27_s13 }
   0xa   :  { %p260_p3 = scmp.ne.s32.totalorder %s27_s13, %s259_s21  ;;  %p265_p5 = scmp.lt.s32.totalorder %s259_s21, %s259_s21 }
   0xc   :  { %p266_p6 = por %p265_p5, %p264_p4 }
   0xe   :  { %p267_p7 = pnand %p266_p6, %p260_p3 }
  0x10   :  { %270 = shalt.err (!%p267_p7)
}
  0x11   :  { %s344_s22 = smov 128   ;;  %s345_s23 = smov 8  }
  0x12   :  { %32 = dma.hbm_to_vmem [thread:$0]  %s421_s1, 2048, %s27_s13, [#allocation6], %s344_s22, %s344_s22, %s345_s23  }
  0x13   :  { %s346_s26 = smov [#allocation2]   ;;  %s347_s28 = smov [#allocation7]  }
  0x14   :  { %s17_s27 = sshll.u32 %s346_s26, 4  ;;  %s39_s29 = sshll.u32 %s347_s28, 4  ;;  %s18_s27 = int_to_ptr.vmem [resolvable:$true] %s17_s27  ;;  %s40_s29 = int_to_ptr.vmem [resolvable:$true] %s39_s29 }
  0x15   :  { %s271_s5 = scalar_lea.hbm %s420_s0, 32 }
  0x16   :  { %p272_p8 = scmp.ne.s32.totalorder %s420_s0, %s271_s5  ;;  %p275_p9 = scmp.lt.u32.totalorder %s271_s5, %s420_s0 }
  0x18   :  { %p277_p10 = pnand %p275_p9, %p272_p8 }
  0x1a   :  { %280 = shalt.err (!%p277_p10)
}
  0x1b   :  { %s281_s1 = scalar_lea.vmem %s18_s27, 32  ;;  %p286_p12 = scmp.lt.s32.totalorder %s18_s27, %s18_s27 }
  0x1c   :  { %p282_p11 = scmp.ne.s32.totalorder %s18_s27, %s281_s1  ;;  %p287_p13 = scmp.lt.s32.totalorder %s281_s1, %s281_s1 }
  0x1e   :  { %p288_p0 = por %p287_p13, %p286_p12 }
  0x20   :  { %p289_p1 = pnand %p288_p0, %p282_p11 }
  0x22   :  { %292 = shalt.err (!%p289_p1)
}
  0x23   :  { %20 = dma.hbm_to_vmem [thread:$0]  %s420_s0, 32, %s18_s27, [#allocation3]  }
  0x24   :  { %s293_s14 = scalar_lea.hbm %s422_s2, 16 }
  0x25   :  { %p294_p2 = scmp.ne.s32.totalorder %s422_s2, %s293_s14  ;;  %p297_p3 = scmp.lt.u32.totalorder %s293_s14, %s422_s2 }
  0x27   :  { %p299_p4 = pnand %p297_p3, %p294_p2 }
  0x29   :  { %302 = shalt.err (!%p299_p4)
}
  0x2a   :  { %s303_s19 = scalar_lea.vmem %s40_s29, 16  ;;  %s307_s20 = scalar_lea.vmem %s40_s29, 32 }
  0x2b   :  { %p304_p5 = scmp.ne.s32.totalorder %s40_s29, %s303_s19  ;;  %p308_p6 = scmp.lt.s32.totalorder %s40_s29, %s40_s29 }
  0x2c   :  { %p309_p7 = scmp.lt.s32.totalorder %s307_s20, %s303_s19 }
  0x2e   :  { %p310_p8 = por %p309_p7, %p308_p6 }
  0x30   :  { %p311_p9 = pnand %p310_p8, %p304_p5 }
  0x32   :  { %314 = shalt.err (!%p311_p9)
}
  0x33   :  { %42 = dma.hbm_to_vmem [thread:$0]  %s422_s2, 16, %s40_s29, [#allocation6]  }
  0x34   :  { %337 = dma.done.wait [#allocation3], 32  }
  0x35   :  { %338 = vsyncadd [#allocation3], 4294967264 }
  0x36   :  { %339 = dma.done.wait [#allocation6], 2064  }
  0x37   :  { %340 = vsyncadd [#allocation6], 4294965232  ;;  %v348_v0 = vmov 0.0|0.0   ;;  %vm349_vm0 = vmmov 0   ;;  %v350_v1 = vmov 0.0   ;;  %v53_v2 = vld [vmem:[#allocation5] sm:$0xff] }
  0x38   :  { %216 = vmatprep.subr.bf16.mxu0 %v348_v0  ;;  %213 = vmatprep.mubr.msk.f32.mxu0 %vm349_vm0, %v350_v1  ;;  %v54_v3 = vld [vmem:[#allocation5 + $0x8] sm:$0xff]  ;;  %v55_v4 = vld [vmem:[#allocation5 + $0x10] sm:$0xff]  ;;  %v56_v6 = vld [vmem:[#allocation5 + $0x18] sm:$0xff]  ;;  %s351_s2 = smov [#allocation8]  }
  0x39   :  { %v217_v5 = vpack.c.bf16 %v54_v3, %v53_v2  ;;  %v220_v7 = vpack.c.bf16 %v56_v6, %v55_v4  ;;  %v57_v8 = vld [vmem:[#allocation5 + $0x20] sm:$0xff]  ;;  %v58_v9 = vld [vmem:[#allocation5 + $0x28] sm:$0xff]  ;;  %v59_v11 = vld [vmem:[#allocation5 + $0x30] sm:$0xff]  ;;  %s153_s22 = sshll.u32 %s351_s2, 4  ;;  %s154_s22 = int_to_ptr.vmem [resolvable:$true] %s153_s22 }
  0x3a   :  { %v223_v10 = vpack.c.bf16 %v58_v9, %v57_v8  ;;  %v60_v12 = vld [vmem:[#allocation5 + $0x38] sm:$0xff]  ;;  %v61_v14 = vld [vmem:[#allocation5 + $0x40] sm:$0xff]  ;;  %v62_v15 = vld [vmem:[#allocation5 + $0x48] sm:$0xff]  ;;  %s315_s23 = scalar_lea.vmem %s154_s22, 32  ;;  %p320_p11 = scmp.lt.s32.totalorder %s154_s22, %s154_s22 }
  0x3b   :  { %218 = vmatpush3.bf16.msra.mxu0 %v217_v5  ;;  %v226_v13 = vpack.c.bf16 %v60_v12, %v59_v11  ;;  %v229_v16 = vpack.c.bf16 %v62_v15, %v61_v14  ;;  %v63_v17 = vld [vmem:[#allocation5 + $0x50] sm:$0xff]  ;;  %v64_v18 = vld [vmem:[#allocation5 + $0x58] sm:$0xff]  ;;  %v65_v20 = vld [vmem:[#allocation5 + $0x60] sm:$0xff]  ;;  %p316_p10 = scmp.ne.s32.totalorder %s154_s22, %s315_s23  ;;  %p321_p12 = scmp.lt.s32.totalorder %s315_s23, %s315_s23 }
  0x3c   :  { %219 = vmatprep.subr.bf16.mxu0 %v348_v0  ;;  %v232_v19 = vpack.c.bf16 %v64_v18, %v63_v17  ;;  %v66_v21 = vld [vmem:[#allocation5 + $0x68] sm:$0xff]  ;;  %v67_v23 = vld [vmem:[#allocation5 + $0x70] sm:$0xff]  ;;  %v68_v24 = vld [vmem:[#allocation5 + $0x78] sm:$0xff] }
  0x3d   :  { %v235_v22 = vpack.c.bf16 %v66_v21, %v65_v20  ;;  %v238_v25 = vpack.c.bf16 %v68_v24, %v67_v23  ;;  %v52_v26 = vld [vmem:[#allocation2] sm:$0x3]  ;;  %v163_v27 = vld [vmem:[#allocation7] ss:$0 sm:$0xff]  ;;  %p322_p13 = por %p321_p12, %p320_p11 }
  0x3f   :  { %221 = vmatpush3.bf16.msra.mxu0 %v220_v7  ;;  %p323_p0 = pnand %p322_p13, %p316_p10 }
  0x40   :  { %222 = vmatprep.subr.bf16.mxu0 %v348_v0 }
  0x43   :  { %224 = vmatpush3.bf16.msra.mxu0 %v223_v10 }
  0x44   :  { %225 = vmatprep.subr.bf16.mxu0 %v348_v0 }
  0x47   :  { %227 = vmatpush3.bf16.msra.mxu0 %v226_v13 }
  0x48   :  { %228 = vmatprep.subr.bf16.mxu0 %v348_v0 }
  0x4b   :  { %230 = vmatpush3.bf16.msra.mxu0 %v229_v16 }
  0x4c   :  { %231 = vmatprep.subr.bf16.mxu0 %v348_v0 }
  0x4f   :  { %233 = vmatpush3.bf16.msra.mxu0 %v232_v19 }
  0x50   :  { %234 = vmatprep.subr.bf16.mxu0 %v348_v0 }
  0x53   :  { %236 = vmatpush3.bf16.msra.mxu0 %v235_v22 }
  0x54   :  { %237 = vmatprep.subr.bf16.mxu0 %v348_v0 }
  0x57   :  { %239 = vmatpush3.bf16.msra.mxu0 %v238_v25 }
  0x5a   :  { %214 = vmatmul.mubr.f32.vlgmr.msra.gmra.mrb[0].mxu0 %v52_v26 }
 0x12d   :  { %v142_v28 = vpop.f32.mrb[0].mxu0 }
 0x12e   :  { %v143_v29 = vadd.f32 %v163_v27, %v142_v28  ;;  %v215_v30 = vpop.f32.mrb[1].mxu0 }
 0x130   :  { %146 = vst [vmem:[#allocation8] sm:$0x3] %v143_v29 }
 0x131   :  { %326 = shalt.err (!%p323_p0)
}
 0x132   :  { %s327_s26 = scalar_lea.hbm %s423_s3, 32 }
 0x133   :  { %p328_p1 = scmp.ne.s32.totalorder %s423_s3, %s327_s26  ;;  %p331_p2 = scmp.lt.u32.totalorder %s327_s26, %s423_s3 }
 0x135   :  { %p333_p3 = pnand %p331_p2, %p328_p1 }
 0x137   :  { %336 = shalt.err (!%p333_p3)
}
 0x138   :  { %156 = dma.vmem_to_hbm [thread:$0]  %s154_s22, 32, %s423_s3, [#allocation4]  }
 0x139   :  { %341 = dma.done.wait [#allocation4], 32  }
 0x13a   :  { %342 = vsyncadd [#allocation4], 4294967264 }
 0x13b   :  { %160 = vsyncpa [#allocation3], 1 }
 0x13c   :  { %161 = vsyncpa [#allocation6], 1 }
 0x13d   :  { %162 = vsyncpa [#allocation4], 1 }

// kernel: vgg_forward.6
= control target key start
LH: loop header
LB: loop body
LE: loop exit
PB: predicated region body
PF: predicated region fallthrough
CT: control target
= control target key end

     0   :  { %s7415_s0 = inlined_call_operand.hbm [shape: f32[2,18,18,8], index: 0, kind: input, shape index: {}]   ;;  %s7416_s1 = inlined_call_operand.hbm [shape: f32[3,3,8,128], index: 1, kind: input, shape index: {}]   ;;  %s7417_s2 = inlined_call_operand.hbm [shape: f32[1,128], index: 2, kind: input, shape index: {}]   ;;  %s7418_s3 = inlined_call_operand.hbm [shape: f32[2,256,128], index: 3, kind: output, shape index: {0}]   ;;  %s7419_s4 = inlined_call_operand.hbm [shape: f32[1,128], index: 4, kind: output, shape index: {1}]   ;;  %s7420_s5 = inlined_call_operand.hbm [shape: f32[1,128], index: 5, kind: output, shape index: {2}]  }
   0x1   :  { %7474 = sst [smem:[#allocation47_spill]] %s7416_s1 }
   0x2   :  { %11 = vsyncpa [#allocation3], 0 }
   0x3   :  { %13 = vsyncpa [#allocation3 + $0x1], 0 }
   0x4   :  { %14 = vsyncpa [#allocation6], 0 }
   0x5   :  { %15 = vsyncpa [#allocation4], 0 }
   0x6   :  { %17 = vsyncpa [#allocation4 + $0x1], 0 }
   0x7   :  { %18 = vsyncpa [#allocation10], 0  ;;  %s5970_s18 = smov 0   ;;  %s5972_s19 = smov 0  }
   0x8   :  { %s5974_s20 = smov 0   ;;  %s5976_s21 = smov 0  }
   0x9   :  { %s5978_s22 = smov 0   ;;  %s5980_s23 = smov 0  }
   0xa LB: > { %s4086_s24 = sadd.s32 4294967295, %s5927_s23   ;;  %s4087_s25 = sadd.s32 4294967294, %s5927_s23   ;;  %s5927_s23 = sphi %s5980_s23, %s24_s23   ;;  %s5923_s22 = sphi %s5978_s22, %s7560_s22   ;;  %s5919_s21 = sphi %s5976_s21, %s7559_s21   ;;  %s5915_s20 = sphi %s5974_s20, %s7558_s20   ;;  %s5911_s19 = sphi %s5972_s19, %s7557_s19   ;;  %s5907_s18 = sphi %s5970_s18, %s7556_s18  }
   0xb   : > { %p56_p0 = scmp.ne.s32.totalorder %s5911_s19, %s5907_s18  ;;  %p6004_p1 = scmp.eq.s32.totalorder %s4086_s24, 0 }
   0xc   : > { %p6008_p2 = scmp.eq.s32.totalorder %s4086_s24, 1  ;;  %p140_p3 = scmp.eq.s32.totalorder %s4087_s25, 1 }
   0xd   : > { %s7475_s26 = scalar_select %p6004_p1, 1, 0 }
   0xe   : > { %s7476_s27 = scalar_select %p6008_p2, 1, 0 }
   0xf   : > { %p6014_p4 = por %p6004_p1, %p56_p0  ;;  %p4088_p5 = scmp.ge.s32.totalorder %s5927_s23, 1 }
  0x10   : > { %p6019_p6 = por %p140_p3, %p56_p0  ;;  %p199_p7 = scmp.lt.s32.totalorder %s5927_s23, 3 }
  0x11   : > { %s7477_s28 = scalar_select %p6014_p4, 1, 0 }
  0x12   : > { %s7478_s29 = scalar_select %p6019_p6, 1, 0 }
  0x13   : > { %p6024_p8 = pnand %p4088_p5, %p199_p7  ;;  %s5929_s6 = smov [#allocation5]  }
  0x14   : > { %s213_s7 = sshll.u32 %s5929_s6, 4  ;;  %s5930_s9 = smov [#allocation7]   ;;  %s6028_s7 = int_to_ptr.vmem [resolvable:$true] %s213_s7 }
  0x15   : > { %p5617_p9 = pneg %p6024_p8  ;;  %s229_s10 = sshll.u32 %s5930_s9, 4  ;;  %s6039_s10 = int_to_ptr.vmem [resolvable:$true] %s229_s10 }
  0x16   : > { %s7481_s1 = sld [smem:[#allocation47_spill]] }
  0x17   : > { %p6035_p11 = pnand %p5617_p9, %p6004_p1 }
  0x19   : > { %p5701_p13 = pneg %p6035_p11 }
  0x1c   : > { %s5699_s13 = scalar_lea.hbm %s7481_s1, 1152 }
  0x1d   : > { %p5700_p12 = scmp.ne.s32.totalorder %s7481_s1, %s5699_s13  ;;  %p5706_p5 = scmp.lt.u32.totalorder %s5699_s13, %s7481_s1 }
  0x1f   : > { %p5702_p0 = pnand %p5701_p13, %p5700_p12 }
  0x21   : > { %p5703_p3 = pneg %p5702_p0 }
  0x23   : > { %p5708_p7 = pnand %p5706_p5, %p5703_p3 }
  0x25   : > { %5711 = shalt.err (!%p5708_p7)
}
  0x26   : > { %s5712_s24 = scalar_lea.vmem %s6028_s7, 1152  ;;  %p5720_p1 = scmp.lt.s32.totalorder %s6028_s7, %s6028_s7 }
  0x27   : > { %p5713_p9 = scmp.ne.s32.totalorder %s6028_s7, %s5712_s24  ;;  %p5721_p12 = scmp.lt.s32.totalorder %s5712_s24, %s5712_s24 }
  0x29   : > { %p5715_p10 = pnand %p5713_p9, %p5701_p13  ;;  %p5722_p0 = por %p5721_p12, %p5720_p1 }
  0x2b   : > { %p5716_p6 = pneg %p5715_p10 }
  0x2d   : > { %p5723_p4 = pnand %p5722_p0, %p5716_p6 }
  0x2f   : > { %5726 = shalt.err (!%p5723_p4)
}
  0x30   : > { %s7424_s25 = smov 128   ;;  %s7425_s6 = smov 8  }
  0x31   : > { %5620 = dma.hbm_to_vmem [thread:$0]  (!%p6035_p11), %s7481_s1, 1152, %s6028_s7, [#allocation6], %s7424_s25, %s7424_s25, %s7425_s6  }
  0x32   : > { %s5727_s14 = scalar_lea.hbm %s7417_s2, 16 }
  0x33   : > { %p5728_p1 = scmp.ne.s32.totalorder %s7417_s2, %s5727_s14  ;;  %p5734_p10 = scmp.lt.u32.totalorder %s5727_s14, %s7417_s2 }
  0x35   : > { %p5730_p4 = pnand %p5728_p1, %p5701_p13 }
  0x37   : > { %p5731_p6 = pneg %p5730_p4 }
  0x39   : > { %p5736_p3 = pnand %p5734_p10, %p5731_p6 }
  0x3b   : > { %5739 = shalt.err (!%p5736_p3)
}
  0x3c   : > { %s5740_s7 = scalar_lea.vmem %s6039_s10, 16  ;;  %s5747_s9 = scalar_lea.vmem %s6039_s10, 32 }
  0x3d   : > { %p5741_p5 = scmp.ne.s32.totalorder %s6039_s10, %s5740_s7  ;;  %p5748_p12 = scmp.lt.s32.totalorder %s6039_s10, %s6039_s10 }
  0x3e   : > { %p5749_p0 = scmp.lt.s32.totalorder %s5747_s9, %s5740_s7 }
  0x3f   : > { %p5743_p7 = pnand %p5741_p5, %p5701_p13 }
  0x40   : > { %p5750_p1 = por %p5749_p0, %p5748_p12 }
  0x41   : > { %p5744_p9 = pneg %p5743_p7 }
  0x43   : > { %p5751_p4 = pnand %p5750_p1, %p5744_p9 }
  0x45   : > { %5754 = shalt.err (!%p5751_p4)
}
  0x46   : > { %5623 = dma.hbm_to_vmem [thread:$0]  (!%p6035_p11), %s7417_s2, 16, %s6039_s10, [#allocation6]  }
  0x47   : > { %s33_s13 = sadd.s32 1, %s5923_s22  ;;  %s43_s14 = sadd.s32 1, %s5915_s20 }
  0x48   : > { %p34_p13 = scmp.ge.s32.totalorder %s33_s13, 2  ;;  %p50_p6 = scmp.ne.s32.totalorder %s5915_s20, %s5911_s19 }
  0x49   : > { %p51_p10 = scmp.eq.s32.totalorder %s5927_s23, 0  ;;  %p5634_p3 = scmp.lt.s32.totalorder %s5927_s23, 2 }
  0x4a   : > { %s7562_s13 = smov (%p34_p13, %s33_s13), 0  ;;  %p6107_p7 = por %p6008_p2, %p50_p6 }
  0x4b   : > { %p52_p5 = por %p51_p10, %p50_p6  ;;  %s40_s15 = ssub.s32 %s5923_s22, %s7562_s13 }
  0x4c   : > { %s7482_s8 = scalar_select %p6107_p7, 1, 0 }
  0x4d   : > { %s240_s16 = sand.u32 1, %s5915_s20   ;;  %p41_p9 = scmp.eq.s32.totalorder %s40_s15, 0 }
  0x4e   : > { %s5594_s10 = smul.u32 432, %s240_s16  ;;  %p6114_p11 = pnand %p5634_p3, %p52_p5 }
  0x4f   : > { %s6119_s24 = scalar_select %p41_p9, %s5915_s20, %s43_s14  }
  0x50   : > { %s5595_s7 = smul.u32 6912, %s5923_s22  ;;  %s244_s9 = scalar_lea.vmem [#allocation2], %s5594_s10 }
  0x51   : > { %s251_s11 = sshll.u32 %s244_s9, 4  ;;  %s6129_s15 = scalar_lea.sflag [#allocation3], %s240_s16  ;;  %s6127_s11 = int_to_ptr.vmem [resolvable:$true] %s251_s11 }
  0x52   : > { %s6125_s6 = scalar_lea.hbm %s7415_s0, %s5595_s7  ;;  %p5757_p0 = pneg %p6114_p11 }
  0x53   : > { %s5755_s1 = scalar_lea.hbm %s6125_s6, 6912  ;;  %s5760_s10 = scalar_lea.hbm %s7415_s0, 13824 }
  0x54   : > { %p5756_p12 = scmp.ne.s32.totalorder %s6125_s6, %s5755_s1  ;;  %p5761_p13 = scmp.lt.u32.totalorder %s6125_s6, %s7415_s0 }
  0x55   : > { %p5762_p6 = scmp.lt.u32.totalorder %s5760_s10, %s5755_s1  ;;  %p5764_p3 = scmp.lt.u32.totalorder %s5755_s1, %s6125_s6 }
  0x56   : > { %p5758_p1 = pnand %p5757_p0, %p5756_p12 }
  0x57   : > { %p5763_p10 = por %p5762_p6, %p5761_p13 }
  0x58   : > { %p5759_p4 = pneg %p5758_p1 }
  0x59   : > { %p5765_p5 = por %p5764_p3, %p5763_p10 }
  0x5b   : > { %p5766_p9 = pnand %p5765_p5, %p5759_p4 }
  0x5d   : > { %5769 = shalt.err (!%p5766_p9)
}
  0x5e   : > { %s5770_s16 = scalar_lea.vmem %s6127_s11, 6912  ;;  %s5933_s12 = smov [#allocation2]  }
  0x5f   : > { %p5771_p12 = scmp.ne.s32.totalorder %s6127_s11, %s5770_s16  ;;  %s5775_s14 = sshll.u32 %s5933_s12, 4  ;;  %s5776_s14 = int_to_ptr.vmem [resolvable:$false] %s5775_s14 }
  0x60   : > { %s5777_s25 = scalar_lea.vmem %s5776_s14, 13824  ;;  %p5778_p7 = scmp.lt.s32.totalorder %s6127_s11, %s5776_s14 }
  0x61   : > { %p5773_p1 = pnand %p5771_p12, %p5757_p0  ;;  %p5779_p13 = scmp.lt.s32.totalorder %s5777_s25, %s5770_s16 }
  0x63   : > { %p5774_p2 = pneg %p5773_p1  ;;  %p5780_p6 = por %p5779_p13, %p5778_p7 }
  0x65   : > { %p5781_p10 = pnand %p5780_p6, %p5774_p2 }
  0x67   : > { %5784 = shalt.err (!%p5781_p10)
}
  0x68   : > { %s7484_s1 = smov 8   ;;  %s7485_s10 = smov 128  }
  0x69   : > { %5627 = dma.hbm_to_vmem [thread:$0]  (!%p6114_p11), %s6125_s6, 6912, %s6127_s11, %s6129_s15, %s7485_s10, %s7485_s10, %s7484_s1  }
  0x6a   : > { %263 = sbr.rel (%p6024_p8) target bundleno = 760 (0x2f8), region = 32 }
  0x71   : > { %s6163_s7 = sand.u32 1, %s5911_s19   ;;  %p7486_p2 = scmp.ne.s32.totalorder %s7477_s28, 0 }
  0x72   : > { %s5596_s9 = smul.u32 432, %s6163_s7  ;;  %s266_s16 = scalar_lea.sflag [#allocation3], %s6163_s7 }
  0x74   : > { %s6167_s12 = scalar_lea.vmem [#allocation2], %s5596_s9 }
  0x75   : > { %5890 = dma.done.wait (%p7486_p2), %s266_s16, 6912  }
  0x76   : > { %5892 = vsyncadd (%p7486_p2), %s266_s16, 4294960384  ;;  %p7487_p7 = scmp.ne.s32.totalorder %s7475_s26, 0 }
  0x78   : > { %5894 = dma.done.wait (%p7487_p7), [#allocation6], 1168  }
  0x79   : > { %5896 = vsyncadd (%p7487_p7), [#allocation6], 4294966128  ;;  %s4096_s30 = sshll.u32 %s6163_s7, 8  ;;  %vm371_vm0 = vcmask 64512   ;;  %v370_v0 = vld [vmem:[#allocation5 + $0x8] sm:$0xff]  ;;  %v6178_v1 = vld [vmem:[#allocation5 + $0x20] sm:$0xff] }
  0x7a   : > { %v337_v2 = vld [vmem:[%s6167_s12 + $0x1] sm:$0xff]  ;;  %4886 = vmatprep.subr.mxu1 %v370_v0  ;;  %5086 = vmatprep.subr.mxu0 %v6178_v1  ;;  %v4257_v3 = vld [vmem:[%s6167_s12 + $0x19] sm:$0xff]  ;;  %v338_v4 = vld [vmem:[%s6167_s12 + $0x9] sm:$0xff]  ;;  %s7156_s26 = scalar_lea.vmem [#allocation8], %s4096_s30  ;;  %p4578_p8 = scmp.ne.s32.totalorder %s5919_s21, 0 }
  0x7b   : > { %v336_v5 = vld [vmem:[#allocation5] sm:$0xff]  ;;  %4887 = vmatpush3.msra.mxu1 %v370_v0  ;;  %4888 = vmatprep.mubr.msk.f32.mxu1 %vm371_vm0, %v337_v2  ;;  %v2209_v7 = vld [vmem:[#allocation5 + $0x28] sm:$0xff]  ;;  %v2597_v11 = vld [vmem:[#allocation5 + $0x30] sm:$0xff] }
  0x7c   : > { %v4258_v6 = vld [vmem:[%s6167_s12 + $0x21] sm:$0xff]  ;;  %5087 = vmatpush3.msra.mxu0 %v6178_v1  ;;  %5088 = vmatprep.mubr.msk.f32.mxu0 %vm371_vm0, %v4257_v3  ;;  %v6190_v8 = vld [vmem:[%s6167_s12 + $0x31] sm:$0xff]  ;;  %v6194_v9 = vld [vmem:[%s6167_s12 + $0x39] sm:$0xff] }
  0x7d   : > { %4889 = vmatmul.mubr.msk.f32.vlgmr.msra.gmra.mrb[0].mxu1 %vm371_vm0, %v338_v4  ;;  %4936 = vmatprep.subr.mxu1 %v336_v5  ;;  %v6200_v10 = vld [vmem:[%s6167_s12 + $0x49] sm:$0xff]  ;;  %v6210_v12 = vld [vmem:[%s6167_s12 + $0x51] sm:$0xff]  ;;  %v6213_v13 = vld [vmem:[%s6167_s12 + $0x61] sm:$0xff] }
  0x7e   : > { %5089 = vmatmul.mubr.msk.f32.vlgmr.msra.gmra.mrb[0].mxu0 %vm371_vm0, %v4258_v6  ;;  %5136 = vmatprep.subr.mxu0 %v2209_v7  ;;  %v6224_v14 = vld [vmem:[%s6167_s12 + $0x69] sm:$0xff]  ;;  %v6227_v15 = vld [vmem:[%s6167_s12 + $0x79] sm:$0xff]  ;;  %v6238_v16 = vld [vmem:[%s6167_s12 + $0x81] sm:$0xff] }
  0x7f   : > { %4937 = vmatpush3.msra.mxu1 %v336_v5  ;;  %5137 = vmatpush3.msra.mxu0 %v2209_v7  ;;  %v6240_v17 = vld [vmem:[#allocation5 + $0x10] sm:$0xff]  ;;  %v6307_v28 = vld [vmem:[#allocation5 + $0x38] sm:$0xff] }
  0x80   : > { %4891 = vmatprep.mubr.msk.f32.mxu1 %vm371_vm0, %v4257_v3  ;;  %5091 = vmatprep.mubr.msk.f32.mxu0 %vm371_vm0, %v6190_v8  ;;  %v6243_v18 = vld [vmem:[%s6167_s12 + $0x91] sm:$0xff]  ;;  %v6255_v19 = vld [vmem:[%s6167_s12 + $0x99] sm:$0xff]  ;;  %v6258_v20 = vld [vmem:[%s6167_s12 + $0xa9] sm:$0xff] }
  0x81   : > { %4892 = vmatmul.mubr.msk.f32.gmra.mrb[2].mxu1 %vm371_vm0, %v4258_v6  ;;  %5186 = vmatprep.subr.mxu0 %v2597_v11  ;;  %v6269_v21 = vld [vmem:[%s6167_s12 + $0xb1] sm:$0xff]  ;;  %v6272_v22 = vld [vmem:[%s6167_s12 + $0xc1] sm:$0xff]  ;;  %v6283_v23 = vld [vmem:[%s6167_s12 + $0xc9] sm:$0xff] }
  0x82   : > { %5092 = vmatmul.mubr.msk.f32.gmra.mrb[2].mxu0 %vm371_vm0, %v6194_v9  ;;  %4894 = vmatprep.mubr.msk.f32.mxu1 %vm371_vm0, %v6190_v8  ;;  %v6286_v24 = vld [vmem:[%s6167_s12 + $0x1a] sm:$0xff]  ;;  %v6297_v25 = vld [vmem:[%s6167_s12 + $0x22] sm:$0xff]  ;;  %v6303_v27 = vld [vmem:[%s6167_s12 + $0x32] sm:$0xff] }
  0x83   : > { %5094 = vmatprep.mubr.msk.f32.mxu0 %vm371_vm0, %v6200_v10  ;;  %4986 = vmatprep.subr.mxu1 %v6240_v17  ;;  %v6300_v26 = vld [vmem:[%s6167_s12 + $0xd9] sm:$0xff]  ;;  %v6314_v29 = vld [vmem:[%s6167_s12 + $0xe1] sm:$0xff]  ;;  %v6322_v31 = vld [vmem:[%s6167_s12 + $0xf1] sm:$0xff] }
  0x84   : > { %7488 = vst [vmem:[#allocation16_spill] sm:$0xff] %v6314_v29  ;;  %v6319_v30 = vld [vmem:[%s6167_s12 + $0x3a] sm:$0xff]  ;;  %7489 = vst [vmem:[#allocation17_spill] sm:$0xff] %v6322_v31  ;;  %v6325_v32 = vld [vmem:[%s6167_s12 + $0x4a] sm:$0xff] }
  0x85   : > { %4895 = vmatmul.mubr.msk.f32.gmra.mrb[4].mxu1 %vm371_vm0, %v6194_v9  ;;  %v6335_v33 = vld [vmem:[%s6167_s12 + $0xf9] sm:$0xff]  ;;  %v6343_v35 = vld [vmem:[%s6167_s12 + $0x109] sm:$0xff]  ;;  %v6355_v37 = vld [vmem:[%s6167_s12 + $0x111] sm:$0xff] }
  0x86   : > { %5095 = vmatmul.mubr.msk.f32.gmra.mrb[4].mxu0 %vm371_vm0, %v6210_v12  ;;  %4897 = vmatprep.mubr.msk.f32.mxu1 %vm371_vm0, %v6200_v10  ;;  %7490 = vst [vmem:[#allocation18_spill] sm:$0xff] %v6335_v33  ;;  %v6340_v34 = vld [vmem:[%s6167_s12 + $0x52] sm:$0xff]  ;;  %7491 = vst [vmem:[#allocation19_spill] sm:$0xff] %v6343_v35  ;;  %v6346_v36 = vld [vmem:[%s6167_s12 + $0x62] sm:$0xff] }
  0x87   : > { %5097 = vmatprep.mubr.msk.f32.mxu0 %vm371_vm0, %v6213_v13  ;;  %7492 = vst [vmem:[#allocation20_spill] sm:$0xff] %v6355_v37  ;;  %v6360_v38 = vld [vmem:[%s6167_s12 + $0x6a] sm:$0xff]  ;;  %v6363_v39 = vld [vmem:[%s6167_s12 + $0x121] sm:$0xff]  ;;  %v6383_v43 = vld [vmem:[%s6167_s12 + $0x139] sm:$0xff] }
  0x88   : > { %7493 = vst [vmem:[#allocation21_spill] sm:$0xff] %v6363_v39  ;;  %v6366_v40 = vld [vmem:[%s6167_s12 + $0x7a] sm:$0xff]  ;;  %v6375_v41 = vld [vmem:[%s6167_s12 + $0x129] sm:$0xff]  ;;  %7495 = vst [vmem:[#allocation23_spill] sm:$0xff] %v6383_v43 }
  0x89   : > { %4898 = vmatmul.mubr.msk.f32.gmra.mrb[6].mxu1 %vm371_vm0, %v6210_v12  ;;  %7494 = vst [vmem:[#allocation22_spill] sm:$0xff] %v6375_v41  ;;  %v6380_v42 = vld [vmem:[%s6167_s12 + $0x82] sm:$0xff]  ;;  %v6386_v44 = vld [vmem:[%s6167_s12 + $0x92] sm:$0xff]  ;;  %v6400_v46 = vld [vmem:[%s6167_s12 + $0x9a] sm:$0xff] }
  0x8a   : > { %5098 = vmatmul.mubr.msk.f32.gmra.mrb[6].mxu0 %vm371_vm0, %v6224_v14  ;;  %4900 = vmatprep.mubr.msk.f32.mxu1 %vm371_vm0, %v6213_v13  ;;  %v6395_v45 = vld [vmem:[%s6167_s12 + $0x141] sm:$0xff]  ;;  %v6403_v47 = vld [vmem:[%s6167_s12 + $0x151] sm:$0xff]  ;;  %v6415_v49 = vld [vmem:[%s6167_s12 + $0x159] sm:$0xff] }
  0x8b   : > { %5100 = vmatprep.mubr.msk.f32.mxu0 %vm371_vm0, %v6227_v15  ;;  %7496 = vst [vmem:[#allocation24_spill] sm:$0xff] %v6395_v45  ;;  %7497 = vst [vmem:[#allocation25_spill] sm:$0xff] %v6403_v47  ;;  %v6406_v48 = vld [vmem:[%s6167_s12 + $0xaa] sm:$0xff]  ;;  %v6420_v50 = vld [vmem:[%s6167_s12 + $0xb2] sm:$0xff] }
  0x8c   : > { %7498 = vst [vmem:[#allocation26_spill] sm:$0xff] %v6415_v49  ;;  %v6423_v51 = vld [vmem:[%s6167_s12 + $0x169] sm:$0xff]  ;;  %v6435_v53 = vld [vmem:[%s6167_s12 + $0x171] sm:$0xff]  ;;  %v304_v55 = vld [vmem:[%s6167_s12] sm:$0xff] }
  0x8d   : > { %4901 = vmatmul.mubr.msk.f32.gmra.mrb[8].mxu1 %vm371_vm0, %v6224_v14  ;;  %7499 = vst [vmem:[#allocation27_spill] sm:$0xff] %v6423_v51  ;;  %v6426_v52 = vld [vmem:[%s6167_s12 + $0xc2] sm:$0xff]  ;;  %7500 = vst [vmem:[#allocation28_spill] sm:$0xff] %v6435_v53  ;;  %v6440_v54 = vld [vmem:[%s6167_s12 + $0xca] sm:$0xff] }
  0x8e   : > { %5101 = vmatmul.mubr.msk.f32.gmra.mrb[8].mxu0 %vm371_vm0, %v6238_v16  ;;  %4903 = vmatprep.mubr.msk.f32.mxu1 %vm371_vm0, %v6227_v15  ;;  %v6444_v56 = vld [vmem:[%s6167_s12 + $0xda] sm:$0xff]  ;;  %v305_v57 = vld [vmem:[%s6167_s12 + $0x8] sm:$0xff]  ;;  %v6461_v60 = vld [vmem:[%s6167_s12 + $0xf2] sm:$0xff] }
  0x8f   : > { %5103 = vmatprep.mubr.msk.f32.mxu0 %vm371_vm0, %v6243_v18  ;;  %v6455_v58 = vld [vmem:[%s6167_s12 + $0xe2] sm:$0xff]  ;;  %v6458_v59 = vld [vmem:[%s6167_s12 + $0x18] sm:$0xff]  ;;  %v6480_v0 = vld [vmem:[%s6167_s12 + $0x30] sm:$0xff] }
  0x90   : > { %7501 = vst [vmem:[#allocation29_spill] sm:$0xff] %v6458_v59  ;;  %v6464_v61 = vld [vmem:[#allocation5 + $0x18] sm:$0xff]  ;;  %v6470_v62 = vld [vmem:[%s6167_s12 + $0x20] sm:$0xff]  ;;  %7503 = vst [vmem:[#allocation31_spill] sm:$0xff] %v6480_v0 }
  0x91   : > { %4904 = vmatmul.mubr.msk.f32.gmra.mrb[10].mxu1 %vm371_vm0, %v6238_v16  ;;  %7502 = vst [vmem:[#allocation30_spill] sm:$0xff] %v6470_v62  ;;  %v6477_v63 = vld [vmem:[%s6167_s12 + $0xfa] sm:$0xff]  ;;  %v6483_v2 = vld [vmem:[%s6167_s12 + $0x10a] sm:$0xff]  ;;  %v6498_v4 = vld [vmem:[%s6167_s12 + $0x112] sm:$0xff] }
  0x92   : > { %5104 = vmatmul.mubr.msk.f32.gmra.mrb[10].mxu0 %vm371_vm0, %v6255_v19  ;;  %4906 = vmatprep.mubr.msk.f32.mxu1 %vm371_vm0, %v6243_v18  ;;  %v6493_v3 = vld [vmem:[%s6167_s12 + $0x38] sm:$0xff]  ;;  %v6501_v5 = vld [vmem:[%s6167_s12 + $0x48] sm:$0xff]  ;;  %v6513_v7 = vld [vmem:[%s6167_s12 + $0x50] sm:$0xff] }
  0x93   : > { %5106 = vmatprep.mubr.msk.f32.mxu0 %vm371_vm0, %v6258_v20  ;;  %7504 = vst [vmem:[#allocation32_spill] sm:$0xff] %v6493_v3  ;;  %7505 = vst [vmem:[#allocation33_spill] sm:$0xff] %v6501_v5  ;;  %v6504_v6 = vld [vmem:[%s6167_s12 + $0x122] sm:$0xff] }
  0x94   : > { %7506 = vst [vmem:[#allocation34_spill] sm:$0xff] %v6513_v7 }
  0x95   : > { %4907 = vmatmul.mubr.msk.f32.gmra.mrb[12].mxu1 %vm371_vm0, %v6255_v19 }
  0x96   : > { %5107 = vmatmul.mubr.msk.f32.gmra.mrb[12].mxu0 %vm371_vm0, %v6269_v21  ;;  %4909 = vmatprep.mubr.msk.f32.mxu1 %vm371_vm0, %v6258_v20 }
  0x97   : > { %5109 = vmatprep.mubr.msk.f32.mxu0 %vm371_vm0, %v6272_v22 }
  0x99   : > { %4910 = vmatmul.mubr.msk.f32.gmra.mrb[14].mxu1 %vm371_vm0, %v6269_v21 }
  0x9a   : > { %5110 = vmatmul.mubr.msk.f32.gmra.mrb[14].mxu0 %vm371_vm0, %v6283_v23  ;;  %4912 = vmatprep.mubr.msk.f32.mxu1 %vm371_vm0, %v6272_v22 }
  0x9b   : > { %5138 = vmatprep.mubr.msk.f32.mxu0 %vm371_vm0, %v6286_v24 }
  0x9d   : > { %4913 = vmatmul.mubr.msk.f32.gmra.mrb[16].mxu1 %vm371_vm0, %v6283_v23 }
  0x9e   : > { %5139 = vmatmul.mubr.msk.f32.vlgmr.msra.gmra.mrb[0].mxu0 %vm371_vm0, %v6297_v25  ;;  %4915 = vmatprep.mubr.msk.f32.mxu1 %vm371_vm0, %v6300_v26 }
  0x9f   : > { %5187 = vmatpush3.msra.mxu0 %v2597_v11  ;;  %5141 = vmatprep.mubr.msk.f32.mxu0 %vm371_vm0, %v6303_v27  ;;  %v6518_v11 = vld [vmem:[%s6167_s12 + $0x12a] sm:$0xff] }
  0xa0   : > { %5236 = vmatprep.subr.mxu0 %v6307_v28 }
  0xa1   : > { %4916 = vmatmul.mubr.msk.f32.gmra.mrb[18].mxu1 %vm371_vm0, %v6314_v29  ;;  %v6610_v29 = vld [vmem:[%s6167_s12 + $0xc8] sm:$0xff] }
  0xa2   : > { %5142 = vmatmul.mubr.msk.f32.gmra.mrb[2].mxu0 %vm371_vm0, %v6319_v30  ;;  %4918 = vmatprep.mubr.msk.f32.mxu1 %vm371_vm0, %v6322_v31  ;;  %v6598_v31 = vld [vmem:[%s6167_s12 + $0x18a] sm:$0xff] }
  0xa3   : > { %5144 = vmatprep.mubr.msk.f32.mxu0 %vm371_vm0, %v6325_v32  ;;  %7517 = vst [vmem:[#allocation45_spill] sm:$0xff] %v6598_v31 }
  0xa5   : > { %4919 = vmatmul.mubr.msk.f32.gmra.mrb[20].mxu1 %vm371_vm0, %v6335_v33  ;;  %v6584_v33 = vld [vmem:[%s6167_s12 + $0x182] sm:$0xff] }
  0xa6   : > { %5145 = vmatmul.mubr.msk.f32.gmra.mrb[4].mxu0 %vm371_vm0, %v6340_v34  ;;  %4921 = vmatprep.mubr.msk.f32.mxu1 %vm371_vm0, %v6343_v35  ;;  %v6581_v35 = vld [vmem:[%s6167_s12 + $0xa8] sm:$0xff]  ;;  %7515 = vst [vmem:[#allocation43_spill] sm:$0xff] %v6584_v33 }
  0xa7   : > { %5147 = vmatprep.mubr.msk.f32.mxu0 %vm371_vm0, %v6346_v36  ;;  %7514 = vst [vmem:[#allocation42_spill] sm:$0xff] %v6581_v35 }
  0xa9   : > { %4922 = vmatmul.mubr.msk.f32.gmra.mrb[22].mxu1 %vm371_vm0, %v6355_v37  ;;  %v6578_v37 = vld [vmem:[%s6167_s12 + $0x172] sm:$0xff] }
  0xaa   : > { %5148 = vmatmul.mubr.msk.f32.gmra.mrb[6].mxu0 %vm371_vm0, %v6360_v38  ;;  %4924 = vmatprep.mubr.msk.f32.mxu1 %vm371_vm0, %v6363_v39  ;;  %v6573_v39 = vld [vmem:[%s6167_s12 + $0x98] sm:$0xff]  ;;  %7513 = vst [vmem:[#allocation41_spill] sm:$0xff] %v6578_v37 }
  0xab   : > { %5150 = vmatprep.mubr.msk.f32.mxu0 %vm371_vm0, %v6366_v40  ;;  %7512 = vst [vmem:[#allocation40_spill] sm:$0xff] %v6573_v39 }
  0xad   : > { %4925 = vmatmul.mubr.msk.f32.gmra.mrb[24].mxu1 %vm371_vm0, %v6375_v41  ;;  %v6564_v41 = vld [vmem:[%s6167_s12 + $0x16a] sm:$0xff] }
  0xae   : > { %5151 = vmatmul.mubr.msk.f32.gmra.mrb[8].mxu0 %vm371_vm0, %v6380_v42  ;;  %4927 = vmatprep.mubr.msk.f32.mxu1 %vm371_vm0, %v6383_v43  ;;  %v6561_v43 = vld [vmem:[%s6167_s12 + $0x90] sm:$0xff] }
  0xaf   : > { %5153 = vmatprep.mubr.msk.f32.mxu0 %vm371_vm0, %v6386_v44  ;;  %7511 = vst [vmem:[#allocation39_spill] sm:$0xff] %v6561_v43 }
  0xb1   : > { %4928 = vmatmul.mubr.msk.f32.gmra.mrb[26].mxu1 %vm371_vm0, %v6395_v45  ;;  %v6558_v45 = vld [vmem:[%s6167_s12 + $0x15a] sm:$0xff] }
  0xb2   : > { %5154 = vmatmul.mubr.msk.f32.gmra.mrb[10].mxu0 %vm371_vm0, %v6400_v46  ;;  %4930 = vmatprep.mubr.msk.f32.mxu1 %vm371_vm0, %v6403_v47  ;;  %v6553_v47 = vld [vmem:[%s6167_s12 + $0x80] sm:$0xff] }
  0xb3   : > { %5156 = vmatprep.mubr.msk.f32.mxu0 %vm371_vm0, %v6406_v48  ;;  %7510 = vst [vmem:[#allocation38_spill] sm:$0xff] %v6553_v47 }
  0xb5   : > { %4931 = vmatmul.mubr.msk.f32.gmra.mrb[28].mxu1 %vm371_vm0, %v6415_v49  ;;  %v6544_v49 = vld [vmem:[%s6167_s12 + $0x152] sm:$0xff] }
  0xb6   : > { %5157 = vmatmul.mubr.msk.f32.gmra.mrb[12].mxu0 %vm371_vm0, %v6420_v50  ;;  %4933 = vmatprep.mubr.msk.f32.mxu1 %vm371_vm0, %v6423_v51  ;;  %v6541_v51 = vld [vmem:[%s6167_s12 + $0x78] sm:$0xff] }
  0xb7   : > { %5159 = vmatprep.mubr.msk.f32.mxu0 %vm371_vm0, %v6426_v52  ;;  %7509 = vst [vmem:[#allocation37_spill] sm:$0xff] %v6541_v51 }
  0xb9   : > { %4934 = vmatmul.mubr.msk.f32.gmra.mrb[30].mxu1 %vm371_vm0, %v6435_v53  ;;  %v6538_v53 = vld [vmem:[%s6167_s12 + $0x142] sm:$0xff] }
  0xba   : > { %5160 = vmatmul.mubr.msk.f32.gmra.mrb[14].mxu0 %vm371_vm0, %v6440_v54  ;;  %4938 = vmatprep.mubr.msk.f32.mxu1 %vm371_vm0, %v304_v55  ;;  %v6524_v55 = vld [vmem:[%s6167_s12 + $0x13a] sm:$0xff] }
  0xbb   : > { %5162 = vmatprep.mubr.msk.f32.mxu0 %vm371_vm0, %v6444_v56 }
  0xbd   : > { %4939 = vmatmul.mubr.msk.f32.vlgmr.msra.gmra.mrb[0].mxu1 %vm371_vm0, %v305_v57  ;;  %v6533_v57 = vld [vmem:[%s6167_s12 + $0x68] sm:$0xff] }
  0xbe   : > { %5163 = vmatmul.mubr.msk.f32.gmra.mrb[16].mxu0 %vm371_vm0, %v6455_v58  ;;  %4987 = vmatpush3.msra.mxu1 %v6240_v17  ;;  %v6521_v17 = vld [vmem:[%s6167_s12 + $0x60] sm:$0xff]  ;;  %7508 = vst [vmem:[#allocation36_spill] sm:$0xff] %v6533_v57 }
  0xbf   : > { %4941 = vmatprep.mubr.msk.f32.mxu1 %vm371_vm0, %v6458_v59  ;;  %5165 = vmatprep.mubr.msk.f32.mxu0 %vm371_vm0, %v6461_v60  ;;  %7507 = vst [vmem:[#allocation35_spill] sm:$0xff] %v6521_v17  ;;  %v6601_v59 = vld [vmem:[%s6167_s12 + $0xc0] sm:$0xff] }
  0xc0   : > { %5036 = vmatprep.subr.mxu1 %v6464_v61  ;;  %7518 = vst [vmem:[#allocation46_spill] sm:$0xff] %v6601_v59 }
  0xc1   : > { %4942 = vmatmul.mubr.msk.f32.gmra.mrb[2].mxu1 %vm371_vm0, %v6470_v62  ;;  %v6593_v62 = vld [vmem:[%s6167_s12 + $0xb0] sm:$0xff] }
  0xc2   : > { %5166 = vmatmul.mubr.msk.f32.gmra.mrb[18].mxu0 %vm371_vm0, %v6477_v63  ;;  %4944 = vmatprep.mubr.msk.f32.mxu1 %vm371_vm0, %v6480_v0  ;;  %7516 = vst [vmem:[#allocation44_spill] sm:$0xff] %v6593_v62 }
  0xc3   : > { %5168 = vmatprep.mubr.msk.f32.mxu0 %vm371_vm0, %v6483_v2 }
  0xc5   : > { %4945 = vmatmul.mubr.msk.f32.gmra.mrb[4].mxu1 %vm371_vm0, %v6493_v3 }
  0xc6   : > { %5169 = vmatmul.mubr.msk.f32.gmra.mrb[20].mxu0 %vm371_vm0, %v6498_v4  ;;  %4947 = vmatprep.mubr.msk.f32.mxu1 %vm371_vm0, %v6501_v5 }
  0xc7   : > { %5171 = vmatprep.mubr.msk.f32.mxu0 %vm371_vm0, %v6504_v6 }
  0xc9   : > { %4948 = vmatmul.mubr.msk.f32.gmra.mrb[6].mxu1 %vm371_vm0, %v6513_v7 }
  0xca   : > { %5172 = vmatmul.mubr.msk.f32.gmra.mrb[22].mxu0 %vm371_vm0, %v6518_v11  ;;  %4950 = vmatprep.mubr.msk.f32.mxu1 %vm371_vm0, %v6521_v17 }
  0xcb   : > { %5174 = vmatprep.mubr.msk.f32.mxu0 %vm371_vm0, %v6524_v55 }
  0xcd   : > { %4951 = vmatmul.mubr.msk.f32.gmra.mrb[8].mxu1 %vm371_vm0, %v6533_v57 }
  0xce   : > { %5175 = vmatmul.mubr.msk.f32.gmra.mrb[24].mxu0 %vm371_vm0, %v6538_v53  ;;  %4953 = vmatprep.mubr.msk.f32.mxu1 %vm371_vm0, %v6541_v51 }
  0xcf   : > { %5177 = vmatprep.mubr.msk.f32.mxu0 %vm371_vm0, %v6544_v49 }
  0xd1   : > { %4954 = vmatmul.mubr.msk.f32.gmra.mrb[10].mxu1 %vm371_vm0, %v6553_v47 }
  0xd2   : > { %5178 = vmatmul.mubr.msk.f32.gmra.mrb[26].mxu0 %vm371_vm0, %v6558_v45  ;;  %4956 = vmatprep.mubr.msk.f32.mxu1 %vm371_vm0, %v6561_v43 }
  0xd3   : > { %5180 = vmatprep.mubr.msk.f32.mxu0 %vm371_vm0, %v6564_v41 }
  0xd5   : > { %4957 = vmatmul.mubr.msk.f32.gmra.mrb[12].mxu1 %vm371_vm0, %v6573_v39 }
  0xd6   : > { %5181 = vmatmul.mubr.msk.f32.gmra.mrb[28].mxu0 %vm371_vm0, %v6578_v37  ;;  %4959 = vmatprep.mubr.msk.f32.mxu1 %vm371_vm0, %v6581_v35  ;;  %v6619_v37 = vld [vmem:[#allocation5 + $0x40] sm:$0xff] }
  0xd7   : > { %5183 = vmatprep.mubr.msk.f32.mxu0 %vm371_vm0, %v6584_v33  ;;  %v6615_v33 = vld [vmem:[%s6167_s12 + $0xd8] sm:$0xff] }
  0xd9   : > { %4960 = vmatmul.mubr.msk.f32.gmra.mrb[14].mxu1 %vm371_vm0, %v6593_v62 }
  0xda   : > { %5184 = vmatmul.mubr.msk.f32.gmra.mrb[30].mxu0 %vm371_vm0, %v6598_v31  ;;  %4962 = vmatprep.mubr.msk.f32.mxu1 %vm371_vm0, %v6601_v59  ;;  %v6626_v31 = vld [vmem:[%s6167_s12 + $0xe0] sm:$0xff] }
  0xdb   : > { %5188 = vmatprep.mubr.msk.f32.mxu0 %vm371_vm0, %v6480_v0  ;;  %v6632_v0 = vld [vmem:[%s6167_s12 + $0xf0] sm:$0xff] }
  0xdd   : > { %4963 = vmatmul.mubr.msk.f32.gmra.mrb[16].mxu1 %vm371_vm0, %v6610_v29 }
  0xde   : > { %5189 = vmatmul.mubr.msk.f32.vlgmr.msra.gmra.mrb[0].mxu0 %vm371_vm0, %v6493_v3  ;;  %4965 = vmatprep.mubr.msk.f32.mxu1 %vm371_vm0, %v6615_v33  ;;  %v6642_v3 = vld [vmem:[%s6167_s12 + $0xf8] sm:$0xff] }
  0xdf   : > { %5237 = vmatpush3.msra.mxu0 %v6307_v28  ;;  %5191 = vmatprep.mubr.msk.f32.mxu0 %vm371_vm0, %v6501_v5  ;;  %v6647_v28 = vld [vmem:[%s6167_s12 + $0x108] sm:$0xff]  ;;  %v6661_v5 = vld [vmem:[%s6167_s12 + $0x120] sm:$0xff] }
  0xe0   : > { %5286 = vmatprep.subr.mxu0 %v6619_v37 }
  0xe1   : > { %4966 = vmatmul.mubr.msk.f32.gmra.mrb[18].mxu1 %vm371_vm0, %v6626_v31 }
  0xe2   : > { %5192 = vmatmul.mubr.msk.f32.gmra.mrb[2].mxu0 %vm371_vm0, %v6513_v7  ;;  %4968 = vmatprep.mubr.msk.f32.mxu1 %vm371_vm0, %v6632_v0  ;;  %v6656_v7 = vld [vmem:[%s6167_s12 + $0x110] sm:$0xff] }
  0xe3   : > { %5194 = vmatprep.mubr.msk.f32.mxu0 %vm371_vm0, %v6521_v17  ;;  %v6675_v17 = vld [vmem:[%s6167_s12 + $0x138] sm:$0xff] }
  0xe5   : > { %4969 = vmatmul.mubr.msk.f32.gmra.mrb[20].mxu1 %vm371_vm0, %v6642_v3 }
  0xe6   : > { %5195 = vmatmul.mubr.msk.f32.gmra.mrb[4].mxu0 %vm371_vm0, %v6533_v57  ;;  %4971 = vmatprep.mubr.msk.f32.mxu1 %vm371_vm0, %v6647_v28  ;;  %v6670_v57 = vld [vmem:[%s6167_s12 + $0x128] sm:$0xff] }
  0xe7   : > { %5197 = vmatprep.mubr.msk.f32.mxu0 %vm371_vm0, %v6541_v51  ;;  %v6689_v51 = vld [vmem:[%s6167_s12 + $0x150] sm:$0xff] }
  0xe9   : > { %4972 = vmatmul.mubr.msk.f32.gmra.mrb[22].mxu1 %vm371_vm0, %v6656_v7 }
  0xea   : > { %5198 = vmatmul.mubr.msk.f32.gmra.mrb[6].mxu0 %vm371_vm0, %v6553_v47  ;;  %4974 = vmatprep.mubr.msk.f32.mxu1 %vm371_vm0, %v6661_v5  ;;  %v6684_v47 = vld [vmem:[%s6167_s12 + $0x140] sm:$0xff] }
  0xeb   : > { %5200 = vmatprep.mubr.msk.f32.mxu0 %vm371_vm0, %v6561_v43  ;;  %v6703_v43 = vld [vmem:[%s6167_s12 + $0x168] sm:$0xff] }
  0xed   : > { %4975 = vmatmul.mubr.msk.f32.gmra.mrb[24].mxu1 %vm371_vm0, %v6670_v57 }
  0xee   : > { %5201 = vmatmul.mubr.msk.f32.gmra.mrb[8].mxu0 %vm371_vm0, %v6573_v39  ;;  %4977 = vmatprep.mubr.msk.f32.mxu1 %vm371_vm0, %v6675_v17  ;;  %v6698_v39 = vld [vmem:[%s6167_s12 + $0x158] sm:$0xff] }
  0xef   : > { %5203 = vmatprep.mubr.msk.f32.mxu0 %vm371_vm0, %v6581_v35  ;;  %v1014_v35 = vld [vmem:[%s6167_s12 + $0x2] sm:$0xff] }
  0xf1   : > { %4978 = vmatmul.mubr.msk.f32.gmra.mrb[26].mxu1 %vm371_vm0, %v6684_v47 }
  0xf2   : > { %5204 = vmatmul.mubr.msk.f32.gmra.mrb[10].mxu0 %vm371_vm0, %v6593_v62  ;;  %4980 = vmatprep.mubr.msk.f32.mxu1 %vm371_vm0, %v6689_v51  ;;  %v6712_v62 = vld [vmem:[%s6167_s12 + $0x170] sm:$0xff] }
  0xf3   : > { %5206 = vmatprep.mubr.msk.f32.mxu0 %vm371_vm0, %v6601_v59  ;;  %v1015_v59 = vld [vmem:[%s6167_s12 + $0xa] sm:$0xff] }
  0xf5   : > { %4981 = vmatmul.mubr.msk.f32.gmra.mrb[28].mxu1 %vm371_vm0, %v6698_v39 }
  0xf6   : > { %5207 = vmatmul.mubr.msk.f32.gmra.mrb[12].mxu0 %vm371_vm0, %v6610_v29  ;;  %4983 = vmatprep.mubr.msk.f32.mxu1 %vm371_vm0, %v6703_v43 }
  0xf7   : > { %5209 = vmatprep.mubr.msk.f32.mxu0 %vm371_vm0, %v6615_v33 }
  0xf9   : > { %4984 = vmatmul.mubr.msk.f32.gmra.mrb[30].mxu1 %vm371_vm0, %v6712_v62 }
  0xfa   : > { %5210 = vmatmul.mubr.msk.f32.gmra.mrb[14].mxu0 %vm371_vm0, %v6626_v31  ;;  %4988 = vmatprep.mubr.msk.f32.mxu1 %vm371_vm0, %v1014_v35  ;;  %v4415_v35 = vld [vmem:[%s6167_s12 + $0x198] sm:$0xff] }
  0xfb   : > { %5212 = vmatprep.mubr.msk.f32.mxu0 %vm371_vm0, %v6632_v0 }
  0xfd   : > { %4989 = vmatmul.mubr.msk.f32.vlgmr.msra.gmra.mrb[0].mxu1 %vm371_vm0, %v1015_v59  ;;  %v4416_v59 = vld [vmem:[%s6167_s12 + $0x1a0] sm:$0xff] }
  0xfe   : > { %5213 = vmatmul.mubr.msk.f32.gmra.mrb[16].mxu0 %vm371_vm0, %v6642_v3  ;;  %5037 = vmatpush3.msra.mxu1 %v6464_v61  ;;  %v7535_v61 = vld [vmem:[#allocation36_spill] sm:$0xff] }
  0xff   : > { %4991 = vmatprep.mubr.msk.f32.mxu1 %vm371_vm0, %v6286_v24  ;;  %5215 = vmatprep.mubr.msk.f32.mxu0 %vm371_vm0, %v6647_v28  ;;  %v6767_v24 = vld [vmem:[%s6167_s12 + $0x180] sm:$0xff] }
 0x100   : > { %5336 = vmatprep.subr.mxu1 %v6178_v1 }
 0x101   : > { %4992 = vmatmul.mubr.msk.f32.gmra.mrb[2].mxu1 %vm371_vm0, %v6297_v25  ;;  %v6778_v25 = vld [vmem:[%s6167_s12 + $0x188] sm:$0xff] }
 0x102   : > { %5216 = vmatmul.mubr.msk.f32.gmra.mrb[18].mxu0 %vm371_vm0, %v6656_v7  ;;  %4994 = vmatprep.mubr.msk.f32.mxu1 %vm371_vm0, %v6303_v27 }
 0x103   : > { %5218 = vmatprep.mubr.msk.f32.mxu0 %vm371_vm0, %v6661_v5 }
 0x105   : > { %4995 = vmatmul.mubr.msk.f32.gmra.mrb[4].mxu1 %vm371_vm0, %v6319_v30 }
 0x106   : > { %5219 = vmatmul.mubr.msk.f32.gmra.mrb[20].mxu0 %vm371_vm0, %v6670_v57  ;;  %4997 = vmatprep.mubr.msk.f32.mxu1 %vm371_vm0, %v6325_v32 }
 0x107   : > { %5221 = vmatprep.mubr.msk.f32.mxu0 %vm371_vm0, %v6675_v17 }
 0x109   : > { %4998 = vmatmul.mubr.msk.f32.gmra.mrb[6].mxu1 %vm371_vm0, %v6340_v34 }
 0x10a   : > { %5222 = vmatmul.mubr.msk.f32.gmra.mrb[22].mxu0 %vm371_vm0, %v6684_v47  ;;  %5000 = vmatprep.mubr.msk.f32.mxu1 %vm371_vm0, %v6346_v36 }
 0x10b   : > { %5224 = vmatprep.mubr.msk.f32.mxu0 %vm371_vm0, %v6689_v51 }
 0x10d   : > { %5001 = vmatmul.mubr.msk.f32.gmra.mrb[8].mxu1 %vm371_vm0, %v6360_v38 }
 0x10e   : > { %5225 = vmatmul.mubr.msk.f32.gmra.mrb[24].mxu0 %vm371_vm0, %v6698_v39  ;;  %5003 = vmatprep.mubr.msk.f32.mxu1 %vm371_vm0, %v6366_v40 }
 0x10f   : > { %5227 = vmatprep.mubr.msk.f32.mxu0 %vm371_vm0, %v6703_v43 }
 0x111   : > { %5004 = vmatmul.mubr.msk.f32.gmra.mrb[10].mxu1 %vm371_vm0, %v6380_v42 }
 0x112   : > { %5228 = vmatmul.mubr.msk.f32.gmra.mrb[26].mxu0 %vm371_vm0, %v6712_v62  ;;  %5006 = vmatprep.mubr.msk.f32.mxu1 %vm371_vm0, %v6386_v44 }
 0x113   : > { %5230 = vmatprep.mubr.msk.f32.mxu0 %vm371_vm0, %v6767_v24 }
 0x115   : > { %5007 = vmatmul.mubr.msk.f32.gmra.mrb[12].mxu1 %vm371_vm0, %v6400_v46 }
 0x116   : > { %5231 = vmatmul.mubr.msk.f32.gmra.mrb[28].mxu0 %vm371_vm0, %v6778_v25  ;;  %5009 = vmatprep.mubr.msk.f32.mxu1 %vm371_vm0, %v6406_v48 }
 0x117   : > { %5233 = vmatprep.mubr.msk.f32.mxu0 %vm371_vm0, %v4415_v35  ;;  %v7536_v35 = vld [vmem:[#allocation24_spill] sm:$0xff] }
 0x119   : > { %5010 = vmatmul.mubr.msk.f32.gmra.mrb[14].mxu1 %vm371_vm0, %v6420_v50 }
 0x11a   : > { %5234 = vmatmul.mubr.msk.f32.gmra.mrb[30].mxu0 %vm371_vm0, %v4416_v59  ;;  %5012 = vmatprep.mubr.msk.f32.mxu1 %vm371_vm0, %v6426_v52  ;;  %v7537_v59 = vld [vmem:[#allocation37_spill] sm:$0xff] }
 0x11b   : > { %5238 = vmatprep.mubr.msk.f32.mxu0 %vm371_vm0, %v6190_v8  ;;  %v7519_v8 = vld [vmem:[#allocation41_spill] sm:$0xff] }
 0x11d   : > { %5013 = vmatmul.mubr.msk.f32.gmra.mrb[16].mxu1 %vm371_vm0, %v6440_v54 }
 0x11e   : > { %5239 = vmatmul.mubr.msk.f32.vlgmr.msra.gmra.mrb[0].mxu0 %vm371_vm0, %v6194_v9  ;;  %5015 = vmatprep.mubr.msk.f32.mxu1 %vm371_vm0, %v6444_v56  ;;  %v7520_v9 = vld [vmem:[#allocation16_spill] sm:$0xff] }
 0x11f   : > { %5287 = vmatpush3.msra.mxu0 %v6619_v37  ;;  %5241 = vmatprep.mubr.msk.f32.mxu0 %vm371_vm0, %v6200_v10  ;;  %v7521_v10 = vld [vmem:[#allocation29_spill] sm:$0xff]  ;;  %v7534_v37 = vld [vmem:[#allocation23_spill] sm:$0xff] }
 0x121   : > { %5016 = vmatmul.mubr.msk.f32.gmra.mrb[18].mxu1 %vm371_vm0, %v6455_v58 }
 0x122   : > { %5242 = vmatmul.mubr.msk.f32.gmra.mrb[2].mxu0 %vm371_vm0, %v6210_v12  ;;  %5018 = vmatprep.mubr.msk.f32.mxu1 %vm371_vm0, %v6461_v60  ;;  %v7522_v12 = vld [vmem:[#allocation17_spill] sm:$0xff] }
 0x123   : > { %5244 = vmatprep.mubr.msk.f32.mxu0 %vm371_vm0, %v6213_v13  ;;  %v7523_v13 = vld [vmem:[#allocation30_spill] sm:$0xff] }
 0x125   : > { %5019 = vmatmul.mubr.msk.f32.gmra.mrb[20].mxu1 %vm371_vm0, %v6477_v63 }
 0x126   : > { %5245 = vmatmul.mubr.msk.f32.gmra.mrb[4].mxu0 %vm371_vm0, %v6224_v14  ;;  %5021 = vmatprep.mubr.msk.f32.mxu1 %vm371_vm0, %v6483_v2  ;;  %v7524_v14 = vld [vmem:[#allocation18_spill] sm:$0xff] }
 0x127   : > { %5247 = vmatprep.mubr.msk.f32.mxu0 %vm371_vm0, %v6227_v15  ;;  %v7525_v15 = vld [vmem:[#allocation31_spill] sm:$0xff] }
 0x129   : > { %5022 = vmatmul.mubr.msk.f32.gmra.mrb[22].mxu1 %vm371_vm0, %v6498_v4 }
 0x12a   : > { %5248 = vmatmul.mubr.msk.f32.gmra.mrb[6].mxu0 %vm371_vm0, %v6238_v16  ;;  %5024 = vmatprep.mubr.msk.f32.mxu1 %vm371_vm0, %v6504_v6  ;;  %v7526_v16 = vld [vmem:[#allocation19_spill] sm:$0xff] }
 0x12b   : > { %5250 = vmatprep.mubr.msk.f32.mxu0 %vm371_vm0, %v6243_v18  ;;  %v7527_v18 = vld [vmem:[#allocation32_spill] sm:$0xff] }
 0x12d   : > { %5025 = vmatmul.mubr.msk.f32.gmra.mrb[24].mxu1 %vm371_vm0, %v6518_v11 }
 0x12e   : > { %5251 = vmatmul.mubr.msk.f32.gmra.mrb[8].mxu0 %vm371_vm0, %v6255_v19  ;;  %5027 = vmatprep.mubr.msk.f32.mxu1 %vm371_vm0, %v6524_v55  ;;  %v7528_v19 = vld [vmem:[#allocation20_spill] sm:$0xff] }
 0x12f   : > { %5253 = vmatprep.mubr.msk.f32.mxu0 %vm371_vm0, %v6258_v20  ;;  %v7529_v20 = vld [vmem:[#allocation33_spill] sm:$0xff] }
 0x131   : > { %5028 = vmatmul.mubr.msk.f32.gmra.mrb[26].mxu1 %vm371_vm0, %v6538_v53 }
 0x132   : > { %5254 = vmatmul.mubr.msk.f32.gmra.mrb[10].mxu0 %vm371_vm0, %v6269_v21  ;;  %5030 = vmatprep.mubr.msk.f32.mxu1 %vm371_vm0, %v6544_v49  ;;  %v7530_v21 = vld [vmem:[#allocation21_spill] sm:$0xff] }
 0x133   : > { %5256 = vmatprep.mubr.msk.f32.mxu0 %vm371_vm0, %v6272_v22  ;;  %v7532_v22 = vld [vmem:[#allocation22_spill] sm:$0xff] }
 0x135   : > { %5031 = vmatmul.mubr.msk.f32.gmra.mrb[28].mxu1 %vm371_vm0, %v6558_v45 }
 0x136   : > { %5257 = vmatmul.mubr.msk.f32.gmra.mrb[12].mxu0 %vm371_vm0, %v6283_v23  ;;  %5033 = vmatprep.mubr.msk.f32.mxu1 %vm371_vm0, %v6564_v41  ;;  %v7533_v23 = vld [vmem:[#allocation35_spill] sm:$0xff] }
 0x137   : > { %5259 = vmatprep.mubr.msk.f32.mxu0 %vm371_vm0, %v6300_v26 }
 0x139   : > { %5034 = vmatmul.mubr.msk.f32.gmra.mrb[30].mxu1 %vm371_vm0, %v7519_v8  ;;  %v7546_v8 = vld [vmem:[#allocation44_spill] sm:$0xff] }
 0x13a   : > { %5260 = vmatmul.mubr.msk.f32.gmra.mrb[14].mxu0 %vm371_vm0, %v7520_v9  ;;  %5038 = vmatprep.mubr.msk.f32.mxu1 %vm371_vm0, %v7521_v10  ;;  %v7538_v10 = vld [vmem:[#allocation25_spill] sm:$0xff] }
 0x13b   : > { %5262 = vmatprep.mubr.msk.f32.mxu0 %vm371_vm0, %v7522_v12 }
 0x13d   : > { %5039 = vmatmul.mubr.msk.f32.vlgmr.msra.gmra.mrb[0].mxu1 %vm371_vm0, %v7523_v13  ;;  %v7539_v13 = vld [vmem:[#allocation38_spill] sm:$0xff] }
 0x13e   : > { %5263 = vmatmul.mubr.msk.f32.gmra.mrb[16].mxu0 %vm371_vm0, %v7524_v14  ;;  %5337 = vmatpush3.msra.mxu1 %v6178_v1  ;;  %v7531_v1 = vld [vmem:[#allocation34_spill] sm:$0xff] }
 0x13f   : > { %5041 = vmatprep.mubr.msk.f32.mxu1 %vm371_vm0, %v7525_v15  ;;  %5265 = vmatprep.mubr.msk.f32.mxu0 %vm371_vm0, %v7526_v16  ;;  %v7540_v15 = vld [vmem:[#allocation26_spill] sm:$0xff] }
 0x141   : > { %5042 = vmatmul.mubr.msk.f32.gmra.mrb[2].mxu1 %vm371_vm0, %v7527_v18  ;;  %v7541_v18 = vld [vmem:[#allocation39_spill] sm:$0xff] }
 0x142   : > { %5266 = vmatmul.mubr.msk.f32.gmra.mrb[18].mxu0 %vm371_vm0, %v7528_v19  ;;  %5044 = vmatprep.mubr.msk.f32.mxu1 %vm371_vm0, %v7529_v20  ;;  %v7542_v20 = vld [vmem:[#allocation27_spill] sm:$0xff] }
 0x143   : > { %5268 = vmatprep.mubr.msk.f32.mxu0 %vm371_vm0, %v7530_v21 }
 0x145   : > { %5045 = vmatmul.mubr.msk.f32.gmra.mrb[4].mxu1 %vm371_vm0, %v7531_v1  ;;  %v6903_v1 = vld [vmem:[%s6167_s12 + $0x181] sm:$0xff] }
 0x146   : > { %5269 = vmatmul.mubr.msk.f32.gmra.mrb[20].mxu0 %vm371_vm0, %v7532_v22  ;;  %5047 = vmatprep.mubr.msk.f32.mxu1 %vm371_vm0, %v7533_v23  ;;  %v7543_v23 = vld [vmem:[#allocation40_spill] sm:$0xff] }
 0x147   : > { %5271 = vmatprep.mubr.msk.f32.mxu0 %vm371_vm0, %v7534_v37 }
 0x149   : > { %5048 = vmatmul.mubr.msk.f32.gmra.mrb[6].mxu1 %vm371_vm0, %v7535_v61  ;;  %v7544_v61 = vld [vmem:[#allocation28_spill] sm:$0xff] }
 0x14a   : > { %5272 = vmatmul.mubr.msk.f32.gmra.mrb[22].mxu0 %vm371_vm0, %v7536_v35  ;;  %5050 = vmatprep.mubr.msk.f32.mxu1 %vm371_vm0, %v7537_v59  ;;  %v7545_v59 = vld [vmem:[#allocation42_spill] sm:$0xff] }
 0x14b   : > { %5274 = vmatprep.mubr.msk.f32.mxu0 %vm371_vm0, %v7538_v10 }
 0x14d   : > { %5051 = vmatmul.mubr.msk.f32.gmra.mrb[8].mxu1 %vm371_vm0, %v7539_v13  ;;  %v6914_v13 = vld [vmem:[%s6167_s12 + $0x189] sm:$0xff] }
 0x14e   : > { %5275 = vmatmul.mubr.msk.f32.gmra.mrb[24].mxu0 %vm371_vm0, %v7540_v15  ;;  %5053 = vmatprep.mubr.msk.f32.mxu1 %vm371_vm0, %v7541_v18  ;;  %v4479_v18 = vld [vmem:[%s6167_s12 + $0x199] sm:$0xff] }
 0x14f   : > { %5277 = vmatprep.mubr.msk.f32.mxu0 %vm371_vm0, %v7542_v20  ;;  %v7547_v20 = vld [vmem:[#allocation46_spill] sm:$0xff] }
 0x151   : > { %5054 = vmatmul.mubr.msk.f32.gmra.mrb[10].mxu1 %vm371_vm0, %v7543_v23  ;;  %v4480_v23 = vld [vmem:[%s6167_s12 + $0x1a1] sm:$0xff] }
 0x152   : > { %5278 = vmatmul.mubr.msk.f32.gmra.mrb[26].mxu0 %vm371_vm0, %v7544_v61  ;;  %5056 = vmatprep.mubr.msk.f32.mxu1 %vm371_vm0, %v7545_v59 }
 0x153   : > { %5280 = vmatprep.mubr.msk.f32.mxu0 %vm371_vm0, %v6903_v1 }
 0x155   : > { %5057 = vmatmul.mubr.msk.f32.gmra.mrb[12].mxu1 %vm371_vm0, %v7546_v8 }
 0x156   : > { %5281 = vmatmul.mubr.msk.f32.gmra.mrb[28].mxu0 %vm371_vm0, %v6914_v13  ;;  %5059 = vmatprep.mubr.msk.f32.mxu1 %vm371_vm0, %v7547_v20 }
 0x157   : > { %5283 = vmatprep.mubr.msk.f32.mxu0 %vm371_vm0, %v4479_v18 }
 0x159   : > { %5060 = vmatmul.mubr.msk.f32.gmra.mrb[14].mxu1 %vm371_vm0, %v6610_v29  ;;  %v7550_v29 = vld [vmem:[#allocation43_spill] sm:$0xff] }
 0x15a   : > { %5284 = vmatmul.mubr.msk.f32.gmra.mrb[30].mxu0 %vm371_vm0, %v4480_v23  ;;  %5062 = vmatprep.mubr.msk.f32.mxu1 %vm371_vm0, %v6615_v33 }
 0x15b   : > { %5288 = vmatprep.mubr.msk.f32.mxu0 %vm371_vm0, %v6303_v27  ;;  %v7549_v27 = vld [vmem:[#allocation27_spill] sm:$0xff] }
 0x15d   : > { %5063 = vmatmul.mubr.msk.f32.gmra.mrb[16].mxu1 %vm371_vm0, %v6626_v31  ;;  %v7551_v31 = vld [vmem:[#allocation45_spill] sm:$0xff] }
 0x15e   : > { %5289 = vmatmul.mubr.msk.f32.vlgmr.msra.gmra.mrb[0].mxu0 %vm371_vm0, %v6319_v30  ;;  %5065 = vmatprep.mubr.msk.f32.mxu1 %vm371_vm0, %v6632_v0  ;;  %v4543_v30 = vld [vmem:[%s6167_s12 + $0x19a] sm:$0xff] }
 0x15f   : > { %5291 = vmatprep.mubr.msk.f32.mxu0 %vm371_vm0, %v6325_v32  ;;  %v4544_v32 = vld [vmem:[%s6167_s12 + $0x1a2] sm:$0xff] }
 0x161   : > { %5066 = vmatmul.mubr.msk.f32.gmra.mrb[18].mxu1 %vm371_vm0, %v6642_v3 }
 0x162   : > { %5292 = vmatmul.mubr.msk.f32.gmra.mrb[2].mxu0 %vm371_vm0, %v6340_v34  ;;  %5068 = vmatprep.mubr.msk.f32.mxu1 %vm371_vm0, %v6647_v28 }
 0x163   : > { %5294 = vmatprep.mubr.msk.f32.mxu0 %vm371_vm0, %v6346_v36 }
 0x165   : > { %5069 = vmatmul.mubr.msk.f32.gmra.mrb[20].mxu1 %vm371_vm0, %v6656_v7 }
 0x166   : > { %5295 = vmatmul.mubr.msk.f32.gmra.mrb[4].mxu0 %vm371_vm0, %v6360_v38  ;;  %5071 = vmatprep.mubr.msk.f32.mxu1 %vm371_vm0, %v6661_v5 }
 0x167   : > { %5297 = vmatprep.mubr.msk.f32.mxu0 %vm371_vm0, %v6366_v40 }
 0x169   : > { %5072 = vmatmul.mubr.msk.f32.gmra.mrb[22].mxu1 %vm371_vm0, %v6670_v57 }
 0x16a   : > { %5298 = vmatmul.mubr.msk.f32.gmra.mrb[6].mxu0 %vm371_vm0, %v6380_v42  ;;  %5074 = vmatprep.mubr.msk.f32.mxu1 %vm371_vm0, %v6675_v17 }
 0x16b   : > { %5300 = vmatprep.mubr.msk.f32.mxu0 %vm371_vm0, %v6386_v44 }
 0x16d   : > { %5075 = vmatmul.mubr.msk.f32.gmra.mrb[24].mxu1 %vm371_vm0, %v6684_v47 }
 0x16e   : > { %5301 = vmatmul.mubr.msk.f32.gmra.mrb[8].mxu0 %vm371_vm0, %v6400_v46  ;;  %5077 = vmatprep.mubr.msk.f32.mxu1 %vm371_vm0, %v6689_v51 }
 0x16f   : > { %5303 = vmatprep.mubr.msk.f32.mxu0 %vm371_vm0, %v6406_v48 }
 0x171   : > { %5078 = vmatmul.mubr.msk.f32.gmra.mrb[26].mxu1 %vm371_vm0, %v6698_v39 }
 0x172   : > { %5304 = vmatmul.mubr.msk.f32.gmra.mrb[10].mxu0 %vm371_vm0, %v6420_v50  ;;  %5080 = vmatprep.mubr.msk.f32.mxu1 %vm371_vm0, %v6703_v43 }
 0x173   : > { %5306 = vmatprep.mubr.msk.f32.mxu0 %vm371_vm0, %v6426_v52  ;;  %v7056_v52 = vld [vmem:[#allocation7] ss:$0 sm:$0xff] }
 0x175   : > { %5081 = vmatmul.mubr.msk.f32.gmra.mrb[28].mxu1 %vm371_vm0, %v6712_v62 }
 0x176   : > { %5307 = vmatmul.mubr.msk.f32.gmra.mrb[12].mxu0 %vm371_vm0, %v6440_v54  ;;  %5083 = vmatprep.mubr.msk.f32.mxu1 %vm371_vm0, %v6767_v24 }
 0x177   : > { %5309 = vmatprep.mubr.msk.f32.mxu0 %vm371_vm0, %v6444_v56 }
 0x179   : > { %5084 = vmatmul.mubr.msk.f32.gmra.mrb[30].mxu1 %vm371_vm0, %v6778_v25 }
 0x17a   : > { %5310 = vmatmul.mubr.msk.f32.gmra.mrb[14].mxu0 %vm371_vm0, %v6455_v58  ;;  %5112 = vmatprep.mubr.msk.f32.mxu1 %vm371_vm0, %v6300_v26  ;;  %v7548_v26 = vld [vmem:[#allocation41_spill] sm:$0xff] }
 0x17b   : > { %5312 = vmatprep.mubr.msk.f32.mxu0 %vm371_vm0, %v6461_v60 }
 0x17d   : > { %5113 = vmatmul.mubr.msk.f32.vlgmr.msra.gmra.mrb[16].mxu1 %vm371_vm0, %v7520_v9 }
 0x17e   : > { %5313 = vmatmul.mubr.msk.f32.gmra.mrb[16].mxu0 %vm371_vm0, %v6477_v63  ;;  %5115 = vmatprep.mubr.msk.f32.mxu1 %vm371_vm0, %v7522_v12 }
 0x17f   : > { %5315 = vmatprep.mubr.msk.f32.mxu0 %vm371_vm0, %v6483_v2 }
 0x181   : > { %5116 = vmatmul.mubr.msk.f32.gmra.mrb[18].mxu1 %vm371_vm0, %v7524_v14 }
 0x182   : > { %5316 = vmatmul.mubr.msk.f32.gmra.mrb[18].mxu0 %vm371_vm0, %v6498_v4  ;;  %5118 = vmatprep.mubr.msk.f32.mxu1 %vm371_vm0, %v7526_v16 }
 0x183   : > { %5318 = vmatprep.mubr.msk.f32.mxu0 %vm371_vm0, %v6504_v6 }
 0x185   : > { %5119 = vmatmul.mubr.msk.f32.gmra.mrb[20].mxu1 %vm371_vm0, %v7528_v19 }
 0x186   : > { %5319 = vmatmul.mubr.msk.f32.gmra.mrb[20].mxu0 %vm371_vm0, %v6518_v11  ;;  %5121 = vmatprep.mubr.msk.f32.mxu1 %vm371_vm0, %v7530_v21 }
 0x187   : > { %5321 = vmatprep.mubr.msk.f32.mxu0 %vm371_vm0, %v6524_v55 }
 0x189   : > { %5122 = vmatmul.mubr.msk.f32.gmra.mrb[22].mxu1 %vm371_vm0, %v7532_v22 }
 0x18a   : > { %5322 = vmatmul.mubr.msk.f32.gmra.mrb[22].mxu0 %vm371_vm0, %v6538_v53  ;;  %5124 = vmatprep.mubr.msk.f32.mxu1 %vm371_vm0, %v7534_v37 }
 0x18b   : > { %5324 = vmatprep.mubr.msk.f32.mxu0 %vm371_vm0, %v6544_v49 }
 0x18d   : > { %5125 = vmatmul.mubr.msk.f32.gmra.mrb[24].mxu1 %vm371_vm0, %v7536_v35 }
 0x18e   : > { %5325 = vmatmul.mubr.msk.f32.gmra.mrb[24].mxu0 %vm371_vm0, %v6558_v45  ;;  %5127 = vmatprep.mubr.msk.f32.mxu1 %vm371_vm0, %v7538_v10 }
 0x18f   : > { %5327 = vmatprep.mubr.msk.f32.mxu0 %vm371_vm0, %v6564_v41 }
 0x191   : > { %5128 = vmatmul.mubr.msk.f32.gmra.mrb[26].mxu1 %vm371_vm0, %v7540_v15 }
 0x192   : > { %5328 = vmatmul.mubr.msk.f32.gmra.mrb[26].mxu0 %vm371_vm0, %v7548_v26  ;;  %5130 = vmatprep.mubr.msk.f32.mxu1 %vm371_vm0, %v7549_v27 }
 0x193   : > { %5330 = vmatprep.mubr.msk.f32.mxu0 %vm371_vm0, %v7550_v29 }
 0x195   : > { %5131 = vmatmul.mubr.msk.f32.gmra.mrb[28].mxu1 %vm371_vm0, %v7544_v61 }
 0x196   : > { %5331 = vmatmul.mubr.msk.f32.gmra.mrb[28].mxu0 %vm371_vm0, %v7551_v31  ;;  %5133 = vmatprep.mubr.msk.f32.mxu1 %vm371_vm0, %v6903_v1 }
 0x197   : > { %5333 = vmatprep.mubr.msk.f32.mxu0 %vm371_vm0, %v4543_v30 }
 0x199   : > { %5134 = vmatmul.mubr.msk.f32.gmra.mrb[30].mxu1 %vm371_vm0, %v6914_v13 }
 0x19a   : > { %5334 = vmatmul.mubr.msk.f32.gmra.mrb[30].mxu0 %vm371_vm0, %v4544_v32 }
 0x210   : > { %v5040_v33 = vpop.f32.mrb[0].mxu1 }
 0x211   : > { %v1598_v34 = vpop.f32.mrb[1].mxu1 }
 0x214   : > { %v5043_v36 = vpop.f32.mrb[2].mxu1 }
 0x215   : > { %v1608_v38 = vpop.f32.mrb[3].mxu1 }
 0x218   : > { %v5046_v39 = vpop.f32.mrb[4].mxu1 }
 0x219   : > { %v1618_v40 = vpop.f32.mrb[5].mxu1 }
 0x21c   : > { %v5049_v41 = vpop.f32.mrb[6].mxu1 }
 0x21d   : > { %v1628_v42 = vpop.f32.mrb[7].mxu1 }
 0x220   : > { %v5052_v43 = vpop.f32.mrb[8].mxu1 }
 0x221   : > { %v1638_v44 = vpop.f32.mrb[9].mxu1 }
 0x224   : > { %v5055_v45 = vpop.f32.mrb[10].mxu1 }
 0x225   : > { %v1648_v46 = vpop.f32.mrb[11].mxu1 }
 0x228   : > { %v5058_v47 = vpop.f32.mrb[12].mxu1 }
 0x229   : > { %v1658_v48 = vpop.f32.mrb[13].mxu1 }
 0x22c   : > { %v5061_v49 = vpop.f32.mrb[14].mxu1 }
 0x22d   : > { %v1668_v50 = vpop.f32.mrb[15].mxu1 }
 0x231   : > { %v5290_v51 = vpop.f32.mrb[0].mxu0 }
 0x232   : > { %v5338_v53 = vadd.f32 %v5290_v51, %v5040_v33  ;;  %v3534_v54 = vpop.f32.mrb[1].mxu0 }
 0x233   : > { %v5339_v56 = vadd.f32 %v3534_v54, %v1598_v34 }
 0x234   : > { %v7059_v58 = vadd.f32 %v5338_v53, %v7056_v52 }
 0x235   : > { %v7062_v60 = vadd.f32 %v5339_v56, %v7056_v52  ;;  %v5293_v62 = vpop.f32.mrb[2].mxu0 }
 0x236   : > { %v5340_v63 = vadd.f32 %v5293_v62, %v5043_v36  ;;  %v3544_v0 = vpop.f32.mrb[3].mxu0 }
 0x237   : > { %v5341_v2 = vadd.f32 %v3544_v0, %v1608_v38 }
 0x238   : > { %v7065_v3 = vadd.f32 %v5340_v63, %v7056_v52 }
 0x239   : > { %v7068_v4 = vadd.f32 %v5341_v2, %v7056_v52  ;;  %v5296_v5 = vpop.f32.mrb[4].mxu0 }
 0x23a   : > { %v5342_v6 = vadd.f32 %v5296_v5, %v5046_v39  ;;  %v3554_v7 = vpop.f32.mrb[5].mxu0 }
 0x23b   : > { %v5343_v11 = vadd.f32 %v3554_v7, %v1618_v40 }
 0x23c   : > { %v7071_v17 = vadd.f32 %v5342_v6, %v7056_v52 }
 0x23d   : > { %v7074_v55 = vadd.f32 %v5343_v11, %v7056_v52  ;;  %v5299_v57 = vpop.f32.mrb[6].mxu0 }
 0x23e   : > { %v5344_v28 = vadd.f32 %v5299_v57, %v5049_v41  ;;  %v3564_v24 = vpop.f32.mrb[7].mxu0 }
 0x23f   : > { %v5345_v25 = vadd.f32 %v3564_v24, %v1628_v42 }
 0x240   : > { %v7077_v8 = vadd.f32 %v5344_v28, %v7056_v52 }
 0x241   : > { %v7080_v9 = vadd.f32 %v5345_v25, %v7056_v52  ;;  %v5302_v12 = vpop.f32.mrb[8].mxu0 }
 0x242   : > { %v5346_v14 = vadd.f32 %v5302_v12, %v5052_v43  ;;  %v3574_v16 = vpop.f32.mrb[9].mxu0 }
 0x243   : > { %v5347_v19 = vadd.f32 %v3574_v16, %v1638_v44 }
 0x244   : > { %v7083_v21 = vadd.f32 %v5346_v14, %v7056_v52 }
 0x245   : > { %v7086_v22 = vadd.f32 %v5347_v19, %v7056_v52  ;;  %v5305_v37 = vpop.f32.mrb[10].mxu0 }
 0x246   : > { %v5348_v35 = vadd.f32 %v5305_v37, %v5055_v45  ;;  %v3584_v10 = vpop.f32.mrb[11].mxu0 }
 0x247   : > { %v5349_v15 = vadd.f32 %v3584_v10, %v1648_v46 }
 0x248   : > { %v7089_v20 = vadd.f32 %v5348_v35, %v7056_v52 }
 0x249   : > { %v7092_v1 = vadd.f32 %v5349_v15, %v7056_v52  ;;  %v5308_v61 = vpop.f32.mrb[12].mxu0 }
 0x24a   : > { %v5350_v59 = vadd.f32 %v5308_v61, %v5058_v47  ;;  %v3594_v13 = vpop.f32.mrb[13].mxu0 }
 0x24b   : > { %v5351_v18 = vadd.f32 %v3594_v13, %v1658_v48 }
 0x24c   : > { %v7095_v23 = vadd.f32 %v5350_v59, %v7056_v52 }
 0x24d   : > { %v7098_v26 = vadd.f32 %v5351_v18, %v7056_v52  ;;  %v5311_v27 = vpop.f32.mrb[14].mxu0 }
 0x24e   : > { %v5352_v29 = vadd.f32 %v5311_v27, %v5061_v49  ;;  %v3604_v30 = vpop.f32.mrb[15].mxu0 }
 0x24f   : > { %v5353_v31 = vadd.f32 %v3604_v30, %v1668_v50 }
 0x250   : > { %v7101_v32 = vadd.f32 %v5352_v29, %v7056_v52  ;;  %v5114_v33 = vpop.f32.mrb[16].mxu1 }
 0x251   : > { %v7104_v34 = vadd.f32 %v5353_v31, %v7056_v52  ;;  %v5314_v36 = vpop.f32.mrb[16].mxu0  ;;  %v2065_v38 = vpop.f32.mrb[17].mxu1 }
 0x252   : > { %v5354_v39 = vadd.f32 %v5314_v36, %v5114_v33  ;;  %v3614_v40 = vpop.f32.mrb[17].mxu0 }
 0x253   : > { %v5355_v41 = vadd.f32 %v3614_v40, %v2065_v38 }
 0x254   : > { %v7107_v42 = vadd.f32 %v5354_v39, %v7056_v52  ;;  %v5117_v43 = vpop.f32.mrb[18].mxu1 }
 0x255   : > { %v7110_v44 = vadd.f32 %v5355_v41, %v7056_v52  ;;  %v5317_v45 = vpop.f32.mrb[18].mxu0  ;;  %v2075_v46 = vpop.f32.mrb[19].mxu1 }
 0x256   : > { %v5356_v47 = vadd.f32 %v5317_v45, %v5117_v43  ;;  %v3624_v48 = vpop.f32.mrb[19].mxu0 }
 0x257   : > { %v5357_v49 = vadd.f32 %v3624_v48, %v2075_v46 }
 0x258   : > { %v7113_v50 = vadd.f32 %v5356_v47, %v7056_v52  ;;  %v5120_v51 = vpop.f32.mrb[20].mxu1 }
 0x259   : > { %v7116_v53 = vadd.f32 %v5357_v49, %v7056_v52  ;;  %v5320_v54 = vpop.f32.mrb[20].mxu0  ;;  %v2085_v56 = vpop.f32.mrb[21].mxu1 }
 0x25a   : > { %v5358_v62 = vadd.f32 %v5320_v54, %v5120_v51  ;;  %v3634_v63 = vpop.f32.mrb[21].mxu0 }
 0x25b   : > { %v5359_v0 = vadd.f32 %v3634_v63, %v2085_v56 }
 0x25c   : > { %v7119_v2 = vadd.f32 %v5358_v62, %v7056_v52  ;;  %v5123_v5 = vpop.f32.mrb[22].mxu1 }
 0x25d   : > { %v7122_v6 = vadd.f32 %v5359_v0, %v7056_v52  ;;  %v5323_v7 = vpop.f32.mrb[22].mxu0  ;;  %v2095_v11 = vpop.f32.mrb[23].mxu1  ;;  %v5934_v0 = vmov (!%p4578_p8), 0.0  }
 0x25e   : > { %v5360_v57 = vadd.f32 %v5323_v7, %v5123_v5  ;;  %v3644_v28 = vpop.f32.mrb[23].mxu0  ;;  %3768 = vst [vmem:[#allocation9] sm:$0x1] (!%p4578_p8), %v5934_v0  ;;  %3769 = vst [vmem:[#allocation11] sm:$0x1] (!%p4578_p8), %v5934_v0 }
 0x25f   : > { %v5361_v24 = vadd.f32 %v3644_v28, %v2095_v11 }
 0x260   : > { %v7125_v25 = vadd.f32 %v5360_v57, %v7056_v52  ;;  %v5126_v12 = vpop.f32.mrb[24].mxu1 }
 0x261   : > { %v7128_v14 = vadd.f32 %v5361_v24, %v7056_v52  ;;  %v5326_v16 = vpop.f32.mrb[24].mxu0  ;;  %v2105_v19 = vpop.f32.mrb[25].mxu1 }
 0x262   : > { %v5362_v37 = vadd.f32 %v5326_v16, %v5126_v12  ;;  %v3654_v35 = vpop.f32.mrb[25].mxu0 }
 0x263   : > { %v5363_v10 = vadd.f32 %v3654_v35, %v2105_v19 }
 0x264   : > { %v7131_v15 = vadd.f32 %v5362_v37, %v7056_v52  ;;  %v5129_v61 = vpop.f32.mrb[26].mxu1 }
 0x265   : > { %v7134_v59 = vadd.f32 %v5363_v10, %v7056_v52  ;;  %v5329_v13 = vpop.f32.mrb[26].mxu0  ;;  %v2115_v18 = vpop.f32.mrb[27].mxu1 }
 0x266   : > { %v5364_v27 = vadd.f32 %v5329_v13, %v5129_v61  ;;  %v3664_v29 = vpop.f32.mrb[27].mxu0 }
 0x267   : > { %v5365_v30 = vadd.f32 %v3664_v29, %v2115_v18 }
 0x268   : > { %v7137_v31 = vadd.f32 %v5364_v27, %v7056_v52  ;;  %v5132_v33 = vpop.f32.mrb[28].mxu1 }
 0x269   : > { %v7140_v36 = vadd.f32 %v5365_v30, %v7056_v52  ;;  %v5332_v38 = vpop.f32.mrb[28].mxu0  ;;  %v2125_v39 = vpop.f32.mrb[29].mxu1 }
 0x26a   : > { %v5366_v40 = vadd.f32 %v5332_v38, %v5132_v33  ;;  %v3674_v41 = vpop.f32.mrb[29].mxu0 }
 0x26b   : > { %v5367_v43 = vadd.f32 %v3674_v41, %v2125_v39  ;;  %3767 = sbr.rel (%p4578_p8) target bundleno = 626 (0x272), region = 48 }
 0x26c   : > { %v7143_v45 = vadd.f32 %v5366_v40, %v7056_v52  ;;  %v5135_v46 = vpop.f32.mrb[30].mxu1 }
 0x26d   : > { %v7146_v47 = vadd.f32 %v5367_v43, %v7056_v52  ;;  %v5335_v48 = vpop.f32.mrb[30].mxu0  ;;  %v2135_v49 = vpop.f32.mrb[31].mxu1 }
 0x26e   : > { %v5368_v51 = vadd.f32 %v5335_v48, %v5135_v46  ;;  %v3684_v54 = vpop.f32.mrb[31].mxu0 }
 0x26f   : > { %v5369_v56 = vadd.f32 %v3684_v54, %v2135_v49 }
 0x270   : > { %v7149_v62 = vadd.f32 %v5368_v51, %v7056_v52 }
 0x271   : > { %v7152_v63 = vadd.f32 %v5369_v56, %v7056_v52 }
 0x272 PF: > { %v3771_v52 = vadd.f32 %v7059_v58, %v7062_v60  ;;  %3882 = vst [vmem:[%s7156_s26] sm:$0xff] %v7062_v60  ;;  %3883 = vst [vmem:[%s7156_s26 + $0x8] sm:$0xff] %v7059_v58  ;;  %s4588_s28 = sshll.u32 %s5919_s21, 12  ;;  %s3929_s15 = sshll.u32 %s7156_s26, 4  ;;  %v3811_v11 = vmul.f32 %v7062_v60, %v7062_v60  ;;  %v3812_v57 = vmul.f32 %v7059_v58, %v7059_v58  ;;  %s7234_s15 = int_to_ptr.vmem [resolvable:$true] %s3929_s15 }
 0x273   : > { %3884 = vst [vmem:[%s7156_s26 + $0x10] sm:$0xff] %v7068_v4  ;;  %3885 = vst [vmem:[%s7156_s26 + $0x18] sm:$0xff] %v7065_v3  ;;  %s7230_s11 = scalar_lea.hbm %s7418_s3, %s4588_s28  ;;  %s3915_s21 = scalar_lea.sflag [#allocation4], %s6163_s7 }
 0x274   : > { %3886 = vst [vmem:[%s7156_s26 + $0x20] sm:$0xff] %v7074_v55  ;;  %3887 = vst [vmem:[%s7156_s26 + $0x28] sm:$0xff] %v7071_v17  ;;  %v3772_v5 = vadd.f32 %v3771_v52, %v7068_v4  ;;  %s5785_s14 = scalar_lea.vmem %s7234_s15, 4096  ;;  %p7552_p0 = scmp.ne.s32.totalorder %s7482_s8, 0 }
 0x275   : > { %3888 = vst [vmem:[%s7156_s26 + $0x30] sm:$0xff] %v7080_v9  ;;  %3889 = vst [vmem:[%s7156_s26 + $0x38] sm:$0xff] %v7077_v8  ;;  %p5786_p11 = scmp.ne.s32.totalorder %s7234_s15, %s5785_s14  ;;  %s5935_s25 = smov [#allocation8]  }
 0x276   : > { %3890 = vst [vmem:[%s7156_s26 + $0x40] sm:$0xff] %v7086_v22  ;;  %3891 = vst [vmem:[%s7156_s26 + $0x48] sm:$0xff] %v7083_v21  ;;  %v3773_v7 = vadd.f32 %v3772_v5, %v7065_v3  ;;  %s5789_s1 = sshll.u32 %s5935_s25, 4  ;;  %s5790_s1 = int_to_ptr.vmem [resolvable:$false] %s5789_s1 }
 0x277   : > { %3892 = vst [vmem:[%s7156_s26 + $0x50] sm:$0xff] %v7092_v1  ;;  %3893 = vst [vmem:[%s7156_s26 + $0x58] sm:$0xff] %v7089_v20  ;;  %p5787_p4 = pnand %p5786_p11, %p7552_p0  ;;  %s5791_s10 = scalar_lea.vmem %s5790_s1, 8192 }
 0x278   : > { %3894 = vst [vmem:[%s7156_s26 + $0x60] sm:$0xff] %v7098_v26  ;;  %3895 = vst [vmem:[%s7156_s26 + $0x68] sm:$0xff] %v7095_v23  ;;  %v3774_v28 = vadd.f32 %v3773_v7, %v7074_v55  ;;  %p5792_p5 = scmp.lt.s32.totalorder %s7234_s15, %s5790_s1  ;;  %p5793_p9 = scmp.lt.s32.totalorder %s5791_s10, %s5785_s14 }
 0x279   : > { %3896 = vst [vmem:[%s7156_s26 + $0x70] sm:$0xff] %v7104_v34  ;;  %3897 = vst [vmem:[%s7156_s26 + $0x78] sm:$0xff] %v7101_v32  ;;  %p5788_p3 = pneg %p5787_p4 }
 0x27a   : > { %3898 = vst [vmem:[%s7156_s26 + $0x80] sm:$0xff] %v7110_v44  ;;  %3899 = vst [vmem:[%s7156_s26 + $0x88] sm:$0xff] %v7107_v42  ;;  %p5794_p12 = por %p5793_p9, %p5792_p5 }
 0x27b   : > { %3900 = vst [vmem:[%s7156_s26 + $0x90] sm:$0xff] %v7116_v53  ;;  %3901 = vst [vmem:[%s7156_s26 + $0x98] sm:$0xff] %v7113_v50 }
 0x27c   : > { %3902 = vst [vmem:[%s7156_s26 + $0xa0] sm:$0xff] %v7122_v6  ;;  %3903 = vst [vmem:[%s7156_s26 + $0xa8] sm:$0xff] %v7119_v2  ;;  %p5795_p1 = pnand %p5794_p12, %p5788_p3 }
 0x27d   : > { %3904 = vst [vmem:[%s7156_s26 + $0xb0] sm:$0xff] %v7128_v14  ;;  %3905 = vst [vmem:[%s7156_s26 + $0xb8] sm:$0xff] %v7125_v25 }
 0x27e   : > { %3906 = vst [vmem:[%s7156_s26 + $0xc0] sm:$0xff] %v7134_v59  ;;  %3907 = vst [vmem:[%s7156_s26 + $0xc8] sm:$0xff] %v7131_v15 }
 0x27f   : > { %3908 = vst [vmem:[%s7156_s26 + $0xd0] sm:$0xff] %v7140_v36  ;;  %3909 = vst [vmem:[%s7156_s26 + $0xd8] sm:$0xff] %v7137_v31 }
 0x280   : > { %3910 = vst [vmem:[%s7156_s26 + $0xe0] sm:$0xff] %v7146_v47  ;;  %3911 = vst [vmem:[%s7156_s26 + $0xe8] sm:$0xff] %v7143_v45 }
 0x281   : > { %3912 = vst [vmem:[%s7156_s26 + $0xf0] sm:$0xff] %v7152_v63  ;;  %3913 = vst [vmem:[%s7156_s26 + $0xf8] sm:$0xff] %v7149_v62 }
 0x282   : > { %5798 = shalt.err (!%p5795_p1)
}
 0x283   : > { %s5799_s9 = scalar_lea.hbm %s7230_s11, 4096  ;;  %s5803_s30 = scalar_lea.hbm %s7418_s3, 8192 }
 0x284   : > { %p5800_p13 = scmp.ne.s32.totalorder %s7230_s11, %s5799_s9  ;;  %p5804_p2 = scmp.lt.u32.totalorder %s7230_s11, %s7418_s3 }
 0x285   : > { %p5805_p7 = scmp.lt.u32.totalorder %s5803_s30, %s5799_s9  ;;  %p5807_p11 = scmp.lt.u32.totalorder %s5799_s9, %s7230_s11 }
 0x286   : > { %p5801_p6 = pnand %p5800_p13, %p7552_p0 }
 0x287   : > { %p5806_p8 = por %p5805_p7, %p5804_p2 }
 0x288   : > { %p5802_p10 = pneg %p5801_p6 }
 0x289   : > { %p5808_p4 = por %p5807_p11, %p5806_p8 }
 0x28b   : > { %p5809_p3 = pnand %p5808_p4, %p5802_p10 }
 0x28d   : > { %5812 = shalt.err (!%p5809_p3)
}
 0x28e   : > { %s5936_s6 = smov 128   ;;  %s5937_s17 = smov 8   ;;  %v3813_v58 = vmul.f32 %v7068_v4, %v7068_v4  ;;  %v3775_v60 = vadd.f32 %v3774_v28, %v7071_v17  ;;  %v3814_v24 = vmul.f32 %v7065_v3, %v7065_v3  ;;  %v3843_v12 = vadd.f32 %v3812_v57, %v3811_v11 }
 0x28f   : > { %5607 = dma.vmem_to_hbm [thread:$0]  (%p7552_p0), %s7234_s15, 4096, %s7230_s11, %s3915_s21, %s5936_s6, %s5936_s6, %s5937_s17   ;;  %v3815_v19 = vmul.f32 %v7074_v55, %v7074_v55  ;;  %v3816_v10 = vmul.f32 %v7071_v17, %v7071_v17  ;;  %v3817_v13 = vmul.f32 %v7080_v9, %v7080_v9  ;;  %v3818_v27 = vmul.f32 %v7077_v8, %v7077_v8 }
 0x290   : > { %v3776_v16 = vadd.f32 %v3775_v60, %v7080_v9  ;;  %v3844_v37 = vadd.f32 %v3843_v12, %v3813_v58  ;;  %v3819_v30 = vmul.f32 %v7086_v22, %v7086_v22  ;;  %v3820_v38 = vmul.f32 %v7083_v21, %v7083_v21  ;;  %s5938_s8 = smov [#allocation9]   ;;  %p7553_p5 = scmp.ne.s32.totalorder %s7476_s27, 0 }
 0x291   : > { %v3821_v40 = vmul.f32 %v7092_v1, %v7092_v1  ;;  %v3822_v43 = vmul.f32 %v7089_v20, %v7089_v20  ;;  %v3823_v48 = vmul.f32 %v7098_v26, %v7098_v26  ;;  %v3824_v51 = vmul.f32 %v7095_v23, %v7095_v23  ;;  %s3945_s7 = sshll.u32 %s5938_s8, 4  ;;  %s3946_s7 = int_to_ptr.vmem [resolvable:$true] %s3945_s7 }
 0x292   : > { %v3777_v35 = vadd.f32 %v3776_v16, %v7077_v8  ;;  %v3845_v61 = vadd.f32 %v3844_v37, %v3814_v24  ;;  %v3825_v56 = vmul.f32 %v7104_v34, %v7104_v34  ;;  %v3826_v52 = vmul.f32 %v7101_v32, %v7101_v32  ;;  %s5813_s11 = scalar_lea.vmem %s3946_s7, 16  ;;  %s5819_s15 = scalar_lea.vmem %s3946_s7, 32 }
 0x293   : > { %v3827_v7 = vmul.f32 %v7110_v44, %v7110_v44  ;;  %v3828_v57 = vmul.f32 %v7107_v42, %v7107_v42  ;;  %v3829_v58 = vmul.f32 %v7116_v53, %v7116_v53  ;;  %v3830_v24 = vmul.f32 %v7113_v50, %v7113_v50  ;;  %p5814_p0 = scmp.ne.s32.totalorder %s3946_s7, %s5813_s11  ;;  %p5820_p1 = scmp.lt.s32.totalorder %s3946_s7, %s3946_s7 }
 0x294   : > { %v3778_v4 = vadd.f32 %v3777_v35, %v7086_v22  ;;  %v3846_v18 = vadd.f32 %v3845_v61, %v3815_v19  ;;  %v3831_v16 = vmul.f32 %v7122_v6, %v7122_v6  ;;  %v3832_v37 = vmul.f32 %v7119_v2, %v7119_v2  ;;  %p5821_p13 = scmp.lt.s32.totalorder %s5819_s15, %s5813_s11 }
 0x295   : > { %p5815_p9 = pnand %p5814_p0, %p7553_p5 }
 0x296   : > { %v3779_v3 = vadd.f32 %v3778_v4, %v7083_v21  ;;  %v3847_v29 = vadd.f32 %v3846_v18, %v3816_v10  ;;  %v3833_v10 = vmul.f32 %v7128_v14, %v7128_v14  ;;  %v3834_v4 = vmul.f32 %v7125_v25, %v7125_v25  ;;  %p5822_p6 = por %p5821_p13, %p5820_p1 }
 0x297   : > { %v3835_v18 = vmul.f32 %v7134_v59, %v7134_v59  ;;  %p5816_p12 = pneg %p5815_p9 }
 0x298   : > { %v3780_v55 = vadd.f32 %v3779_v3, %v7092_v1  ;;  %v3848_v33 = vadd.f32 %v3847_v29, %v3817_v13 }
 0x299   : > { %p5823_p10 = pnand %p5822_p6, %p5816_p12 }
 0x29a   : > { %v3781_v17 = vadd.f32 %v3780_v55, %v7089_v20  ;;  %v3849_v39 = vadd.f32 %v3848_v33, %v3818_v27  ;;  %v3836_v27 = vmul.f32 %v7131_v15, %v7131_v15  ;;  %v3837_v55 = vmul.f32 %v7140_v36, %v7140_v36 }
 0x29b   : > { %v3838_v33 = vmul.f32 %v7137_v31, %v7137_v31 }
 0x29c   : > { %v3782_v9 = vadd.f32 %v3781_v17, %v7098_v26  ;;  %v3850_v41 = vadd.f32 %v3849_v39, %v3819_v30 }
 0x29e   : > { %v3783_v8 = vadd.f32 %v3782_v9, %v7095_v23  ;;  %v3851_v46 = vadd.f32 %v3850_v41, %v3820_v38  ;;  %v3839_v38 = vmul.f32 %v7146_v47, %v7146_v47  ;;  %v3840_v9 = vmul.f32 %v7143_v45, %v7143_v45 }
 0x29f   : > { %v3841_v41 = vmul.f32 %v7152_v63, %v7152_v63 }
 0x2a0   : > { %v3784_v22 = vadd.f32 %v3783_v8, %v7104_v34  ;;  %v3852_v49 = vadd.f32 %v3851_v46, %v3821_v40 }
 0x2a2   : > { %v3785_v21 = vadd.f32 %v3784_v22, %v7101_v32  ;;  %v3853_v54 = vadd.f32 %v3852_v49, %v3822_v43 }
 0x2a4   : > { %v3786_v1 = vadd.f32 %v3785_v21, %v7110_v44  ;;  %v3854_v0 = vadd.f32 %v3853_v54, %v3823_v48 }
 0x2a6   : > { %v3787_v20 = vadd.f32 %v3786_v1, %v7107_v42  ;;  %v3855_v5 = vadd.f32 %v3854_v0, %v3824_v51  ;;  %v3770_v51 = vld [vmem:[#allocation9] sm:$0x1] }
 0x2a8   : > { %v3788_v26 = vadd.f32 %v3787_v20, %v7116_v53  ;;  %v3856_v11 = vadd.f32 %v3855_v5, %v3825_v56 }
 0x2aa   : > { %v3789_v23 = vadd.f32 %v3788_v26, %v7113_v50  ;;  %v3857_v28 = vadd.f32 %v3856_v11, %v3826_v52 }
 0x2ac   : > { %v3790_v34 = vadd.f32 %v3789_v23, %v7122_v6  ;;  %v3858_v60 = vadd.f32 %v3857_v28, %v3827_v7 }
 0x2ae   : > { %v3791_v32 = vadd.f32 %v3790_v34, %v7119_v2  ;;  %v3859_v12 = vadd.f32 %v3858_v60, %v3828_v57 }
 0x2b0   : > { %v3792_v44 = vadd.f32 %v3791_v32, %v7128_v14  ;;  %v3860_v19 = vadd.f32 %v3859_v12, %v3829_v58 }
 0x2b2   : > { %v3793_v42 = vadd.f32 %v3792_v44, %v7125_v25  ;;  %v3861_v35 = vadd.f32 %v3860_v19, %v3830_v24 }
 0x2b4   : > { %v3794_v53 = vadd.f32 %v3793_v42, %v7134_v59  ;;  %v3862_v61 = vadd.f32 %v3861_v35, %v3831_v16 }
 0x2b6   : > { %v3795_v50 = vadd.f32 %v3794_v53, %v7131_v15  ;;  %v3863_v13 = vadd.f32 %v3862_v61, %v3832_v37 }
 0x2b8   : > { %v3796_v6 = vadd.f32 %v3795_v50, %v7140_v36  ;;  %v3864_v3 = vadd.f32 %v3863_v13, %v3833_v10 }
 0x2ba   : > { %v3797_v2 = vadd.f32 %v3796_v6, %v7137_v31  ;;  %v3865_v29 = vadd.f32 %v3864_v3, %v3834_v4  ;;  %v3842_v31 = vmul.f32 %v7149_v62, %v7149_v62 }
 0x2bc   : > { %v3798_v14 = vadd.f32 %v3797_v2, %v7146_v47  ;;  %v3866_v30 = vadd.f32 %v3865_v29, %v3835_v18 }
 0x2be   : > { %v3799_v25 = vadd.f32 %v3798_v14, %v7143_v45  ;;  %v3867_v17 = vadd.f32 %v3866_v30, %v3836_v27 }
 0x2c0   : > { %v3800_v59 = vadd.f32 %v3799_v25, %v7152_v63  ;;  %v3868_v39 = vadd.f32 %v3867_v17, %v3837_v55 }
 0x2c2   : > { %v3801_v15 = vadd.f32 %v3800_v59, %v7149_v62  ;;  %v3869_v40 = vadd.f32 %v3868_v39, %v3838_v33 }
 0x2c4   : > { %v3802_v36 = vrot.slane %v3801_v15, 4  ;;  %v3870_v8 = vadd.f32 %v3869_v40, %v3839_v38 }
 0x2c6   : > { %v3803_v43 = vadd.f32 %v3802_v36, %v3801_v15  ;;  %v3871_v46 = vadd.f32 %v3870_v8, %v3840_v9 }
 0x2c8   : > { %v3804_v22 = vrot.slane %v3803_v43, 2  ;;  %v3872_v48 = vadd.f32 %v3871_v46, %v3841_v41 }
 0x2ca   : > { %v3805_v47 = vadd.f32 %v3804_v22, %v3803_v43  ;;  %v3873_v49 = vadd.f32 %v3872_v48, %v3842_v31 }
 0x2cc   : > { %v3806_v21 = vrot.slane %v3805_v47, 1  ;;  %v3874_v54 = vrot.slane %v3873_v49, 4 }
 0x2ce   : > { %v3807_v45 = vadd.f32 %v3806_v21, %v3805_v47  ;;  %v3875_v1 = vadd.f32 %v3874_v54, %v3873_v49 }
 0x2d0   : > { %v3808_v56 = vadd.f32 %v3807_v45, %v3770_v51  ;;  %v3876_v63 = vrot.slane %v3875_v1, 2 }
 0x2d2   : > { %3809 = vst [vmem:[#allocation9] sm:$0x1] %v3808_v56  ;;  %v3877_v0 = vadd.f32 %v3876_v63, %v3875_v1 }
 0x2d3   : > { %5826 = shalt.err (!%p5823_p10)
}
 0x2d4   : > { %s5827_s25 = scalar_lea.hbm %s7419_s4, 16 }
 0x2d5   : > { %p5828_p2 = scmp.ne.s32.totalorder %s7419_s4, %s5827_s25  ;;  %p5833_p11 = scmp.lt.u32.totalorder %s5827_s25, %s7419_s4 }
 0x2d7   : > { %p5829_p7 = pnand %p5828_p2, %p7553_p5 }
 0x2d9   : > { %p5830_p8 = pneg %p5829_p7 }
 0x2db   : > { %p5835_p4 = pnand %p5833_p11, %p5830_p8 }
 0x2dd   : > { %5838 = shalt.err (!%p5835_p4)
}
 0x2de   : > { %5609 = dma.vmem_to_hbm [thread:$0]  (%p7553_p5), %s3946_s7, 16, %s7419_s4, [#allocation10]   ;;  %v3878_v62 = vrot.slane %v3877_v0, 1  ;;  %v3810_v20 = vld [vmem:[#allocation11] sm:$0x1] }
 0x2df   : > { %s5939_s26 = smov [#allocation11]  }
 0x2e0   : > { %s3958_s28 = sshll.u32 %s5939_s26, 4  ;;  %v3879_v52 = vadd.f32 %v3878_v62, %v3877_v0  ;;  %s3959_s28 = int_to_ptr.vmem [resolvable:$true] %s3958_s28 }
 0x2e1   : > { %s5839_s6 = scalar_lea.vmem %s3959_s28, 16  ;;  %s5845_s17 = scalar_lea.vmem %s3959_s28, 32 }
 0x2e2   : > { %v3880_v5 = vadd.f32 %v3879_v52, %v3810_v20  ;;  %p5840_p3 = scmp.ne.s32.totalorder %s3959_s28, %s5839_s6  ;;  %p5846_p12 = scmp.lt.s32.totalorder %s3959_s28, %s3959_s28 }
 0x2e3   : > { %p5847_p1 = scmp.lt.s32.totalorder %s5845_s17, %s5839_s6 }
 0x2e4   : > { %3881 = vst [vmem:[#allocation11] sm:$0x1] %v3880_v5  ;;  %p5841_p0 = pnand %p5840_p3, %p7553_p5 }
 0x2e5   : > { %p5848_p13 = por %p5847_p1, %p5846_p12 }
 0x2e6   : > { %p5842_p9 = pneg %p5841_p0 }
 0x2e8   : > { %p5849_p6 = pnand %p5848_p13, %p5842_p9 }
 0x2ea   : > { %5852 = shalt.err (!%p5849_p6)
}
 0x2eb   : > { %s5853_s11 = scalar_lea.hbm %s7420_s5, 16 }
 0x2ec   : > { %p5854_p10 = scmp.ne.s32.totalorder %s7420_s5, %s5853_s11  ;;  %p5859_p8 = scmp.lt.u32.totalorder %s5853_s11, %s7420_s5 }
 0x2ee   : > { %p5855_p2 = pnand %p5854_p10, %p7553_p5 }
 0x2f0   : > { %p5856_p7 = pneg %p5855_p2 }
 0x2f2   : > { %p5861_p11 = pnand %p5859_p8, %p5856_p7 }
 0x2f4   : > { %5864 = shalt.err (!%p5861_p11)
}
 0x2f5   : > { %5611 = dma.vmem_to_hbm [thread:$0]  (%p7553_p5), %s3959_s28, 16, %s7420_s5, [#allocation10]  }
 0x2f6   : > { %5898 = dma.done.wait (%p7553_p5), [#allocation10], 32  }
 0x2f7   : > { %5900 = vsyncadd (%p7553_p5), [#allocation10], 4294967264 }
 0x2f8 PF: > { %s3978_s9 = sand.u32 1, %s5907_s18   ;;  %p7554_p4 = scmp.ne.s32.totalorder %s7478_s29, 0 }
 0x2f9   : > { %p7555_p3 = scmp.ge.s32.totalorder %s5927_s23, 2  ;;  %s3979_s16 = scalar_lea.sflag [#allocation4], %s3978_s9 }
 0x2fb   : > { %p5629_p0 = pnand %p7555_p3, %p7554_p4 }
 0x2fd   : > { %5902 = dma.done.wait (!%p5629_p0), %s3979_s16, 4096  }
 0x2fe   : > { %5904 = vsyncadd (!%p5629_p0), %s3979_s16, 4294963200  ;;  %s24_s23 = sadd.s32 1, %s5927_s23   ;;  %s7556_s18 = smov %s5911_s19 }
 0x2ff   : > { %p21_p9 = scmp.ge.s32.totalorder %s24_s23, 4   ;;  %s7557_s19 = smov %s5915_s20 }
 0x300   : > { %s7558_s20 = smov %s6119_s24  ;;  %s7559_s21 = smov %s5923_s22 }
 0x301   : > { %s7560_s22 = smov %s7562_s13  ;;  %23 = sbr.rel (!%p21_p9) target bundleno = 10 (0xa), region = 119 }
 0x308   :  { %3984 = vsyncpa [#allocation3], 1 }
 0x309   :  { %3986 = vsyncpa [#allocation3 + $0x1], 1 }
 0x30a   :  { %3987 = vsyncpa [#allocation6], 1 }
 0x30b   :  { %3988 = vsyncpa [#allocation4], 1 }
 0x30c   :  { %3990 = vsyncpa [#allocation4 + $0x1], 1 }
 0x30d   :  { %3991 = vsyncpa [#allocation10], 1 }

</bundles_post_ra>
